<compile_context>
chip_gen: v5e
topology: v5e:2x2
jax: 0.10.0
libtpu: 0.0.40
codegen_flags: <defaults>
</compile_context>

<pallas_src>
import math

import jax
import jax.numpy as jnp
from jax.experimental import pallas as pl
from jax.experimental.pallas import tpu as pltpu

# ----------------------------- configuration -------------------------------
B = 2            # batch
M = 16           # number of query points
L = 8            # number of latent tokens
IN_DIM = 3       # xyz query coordinates
NUM_FREQS = 4    # Fourier frequencies
NPARTS = 2 * NUM_FREQS + 1          # [x, sin(f_i x)..., cos(f_i x)...]
E = IN_DIM * NPARTS                 # embedder.out_dim = 27
KEMB = 32                           # E padded to 32 -> one aligned K=32 matmul
W = 64           # width
H = 4            # num_heads
D = W // H       # head dim
O = 1            # out_features (occupancy logit)
EPS = 1e-6       # module default (eps=1e-06)
FREQS = tuple(float((2.0 ** i) * math.pi) for i in range(NUM_FREQS))
BM, BL = B * M, B * L
NEG_INF = -1e30  # finite masked score (exp only ever sees it max-shifted)

# ---------------------- packed-parameter slab layout ------------------------
# slab A (bf16, W x 384): wide weights at 128-aligned lane offsets, no padding.
COL_WKV, COL_WM1 = 0, 128
COLS_A = 384
# slab B (bf16, 480 x W): sublane-stacked weights at 16-row-aligned offsets
# (16-row alignment keeps packed-bf16 sublane tiles aligned).
ROW_QI1, ROW_WQ, ROW_WO, ROW_QI2, ROW_WM2 = 0, 32, 96, 160, 224
ROWS_B = ROW_WM2 + 4 * W                        # 480
# vec slab (f32, 20 x 256): Fourier freq/phase/id-mask rows + all 1-D params.
(ROW_FREQ, ROW_PHASE, ROW_IDMASK,
 ROW_B_QI1, ROW_B_QI2, ROW_BQ, ROW_BKV, ROW_BO, ROW_BM1, ROW_BM2,
 ROW_G1, ROW_BE1, ROW_G2, ROW_BE2, ROW_G3, ROW_BE3, ROW_GF, ROW_BEF,
 ROW_WH, ROW_BH) = range(20)
VEC_ROWS = 20
VEC_COLS = 4 * W                                # 256


# ------------------------------- the kernel --------------------------------
def decoder_kernel(q_ref, lat_ref, wa_ref, wb_ref, vec_ref, out_ref):
    f32 = jnp.float32

    def vrow(row, width):
        return vec_ref[row:row + 1, 0:width]               # (1, width), f32

    def wdot(x, w_bf16):                                    # f32 act x bf16 weight
        return jnp.dot(x, w_bf16.astype(f32), preferred_element_type=f32)

    def layernorm(t, grow, brow):
        # var = E[x^2] - E[x]^2: the two cross-lane reductions are independent.
        inv_n = 1.0 / W
        mu = jnp.sum(t, axis=-1, keepdims=True) * inv_n
        ex2 = jnp.sum(t * t, axis=-1, keepdims=True) * inv_n
        var = ex2 - mu * mu
        return (t - mu) * jax.lax.rsqrt(var + EPS) * vrow(grow, W) + vrow(brow, W)

    # ---- Fourier embedding: ONE sin over the lane-tiled (BM, 32) query tile -
    xt = q_ref[...]                                          # (BM, KEMB), xyz tiled
    emb = (jnp.sin(xt * vrow(ROW_FREQ, KEMB) + vrow(ROW_PHASE, KEMB))
           + vrow(ROW_IDMASK, KEMB) * xt)                    # (BM, KEMB)
    # query_in: Linear (K=32, zero-padded) -> SiLU -> Linear
    h = wdot(emb, wb_ref[ROW_QI1:ROW_QI1 + KEMB, :]) + vrow(ROW_B_QI1, W)
    h = h * jax.nn.sigmoid(h)                                # SiLU
    q_tok = wdot(h, wb_ref[ROW_QI2:ROW_QI2 + W, :]) + vrow(ROW_B_QI2, W)   # (BM, W)

    # ---- cross attention: x + attn(ln1(x), ln2(latents)), batch folded ------
    qn = layernorm(q_tok, ROW_G1, ROW_BE1)
    qp = wdot(qn, wb_ref[ROW_WQ:ROW_WQ + W, :]) + vrow(ROW_BQ, W)          # (BM, W)
    dn = layernorm(lat_ref[...], ROW_G2, ROW_BE2)                          # (BL, W)
    kv = wdot(dn, wa_ref[:, COL_WKV:COL_WKV + 2 * W]) + vrow(ROW_BKV, 2 * W)

    # block-diagonal additive mask: 0 within a batch, NEG_INF across batches
    ri = jax.lax.broadcasted_iota(jnp.int32, (BM, BL), 0)
    ci = jax.lax.broadcasted_iota(jnp.int32, (BM, BL), 1)

    def batch_block(b):
        return ((ri >= b * M) & (ri < (b + 1) * M)
                & (ci >= b * L) & (ci < (b + 1) * L))

    same = batch_block(0)
    for b in range(1, B):
        same = same | batch_block(b)
    bmask = jnp.where(same, 0.0, NEG_INF).astype(f32)                      # (BM, BL)

    scale = 1.0 / math.sqrt(D)
    nt = (((1,), (1,)), ((), ()))                            # contract last dims: A @ B.T
    heads = []
    for hd in range(H):                                      # static loop, H = 4
        lo = hd * D
        s = jax.lax.dot_general(qp[:, lo:lo + D], kv[:, lo:lo + D], nt,
                                preferred_element_type=f32) * scale + bmask   # (BM, BL)
        s = s - jnp.max(s, axis=-1, keepdims=True)
        p = jnp.exp(s)
        p = p * pl.reciprocal(jnp.sum(p, axis=-1, keepdims=True), approx=True)
        heads.append(jnp.dot(p, kv[:, W + lo:W + lo + D],
                             preferred_element_type=f32))    # (BM, D)
    o_all = jnp.concatenate(heads, axis=-1)                  # (BM, W), one wo matmul
    x1 = q_tok + wdot(o_all, wb_ref[ROW_WO:ROW_WO + W, :]) + vrow(ROW_BO, W)

    # ---- residual MLP: x + mlp(ln3(x)) --------------------------------------
    x1n = layernorm(x1, ROW_G3, ROW_BE3)
    mh = wdot(x1n, wa_ref[:, COL_WM1:COL_WM1 + 4 * W]) + vrow(ROW_BM1, 4 * W)
    # TODO(synk): PyTorch nn.GELU defaults to exact erf; tanh-approx GELU used here
    # (the EncoderCrossAttentionLayer body is not in the spec; matches reference).
    mh = jax.nn.gelu(mh)
    x2 = x1 + wdot(mh, wb_ref[ROW_WM2:ROW_WM2 + 4 * W, :]) + vrow(ROW_BM2, W)

    # ---- ln_f + c_head, emitted lane-dense as (1, BM) ------------------------
    y = layernorm(x2, ROW_GF, ROW_BEF)
    out = jax.lax.dot_general(vrow(ROW_WH, W), y, nt, preferred_element_type=f32)
    out_ref[...] = (out + vrow(ROW_BH, 1)).astype(out_ref.dtype)


# --------------------------- parameter packing ------------------------------
def pack_params(p):
    wa = jnp.zeros((W, COLS_A), jnp.float32)
    wa = wa.at[:, COL_WKV:COL_WKV + 2 * W].set(p["wkv"])
    wa = wa.at[:, COL_WM1:COL_WM1 + 4 * W].set(p["w_m1"])

    wb = jnp.zeros((ROWS_B, W), jnp.float32)
    wb = wb.at[ROW_QI1:ROW_QI1 + E, :].set(p["w_qi1"])       # rows 27..31 stay zero
    wb = wb.at[ROW_WQ:ROW_WQ + W, :].set(p["wq"])
    wb = wb.at[ROW_WO:ROW_WO + W, :].set(p["wo"])
    wb = wb.at[ROW_QI2:ROW_QI2 + W, :].set(p["w_qi2"])
    wb = wb.at[ROW_WM2:ROW_WM2 + 4 * W, :].set(p["w_m2"])

    # Fourier rows: tiled-input column 3j+c holds coordinate c; layout is
    # [x | sin(f0 x)..sin(f3 x) | cos(f0 x)..cos(f3 x)], cos via sin(.+pi/2).
    freq = jnp.zeros((KEMB,), jnp.float32)
    phase = jnp.zeros((KEMB,), jnp.float32)
    idmask = jnp.zeros((KEMB,), jnp.float32).at[0:IN_DIM].set(1.0)
    for j, fr in enumerate(FREQS):
        s0 = IN_DIM * (1 + j)
        c0 = IN_DIM * (1 + NUM_FREQS + j)
        freq = freq.at[s0:s0 + IN_DIM].set(fr).at[c0:c0 + IN_DIM].set(fr)
        phase = phase.at[c0:c0 + IN_DIM].set(math.pi / 2.0)

    vec = jnp.zeros((VEC_ROWS, VEC_COLS), jnp.float32)
    vec = vec.at[ROW_FREQ, :KEMB].set(freq)
    vec = vec.at[ROW_PHASE, :KEMB].set(phase)
    vec = vec.at[ROW_IDMASK, :KEMB].set(idmask)
    vec = vec.at[ROW_B_QI1, :W].set(p["b_qi1"])
    vec = vec.at[ROW_B_QI2, :W].set(p["b_qi2"])
    vec = vec.at[ROW_BQ, :W].set(p["bq"])
    vec = vec.at[ROW_BKV, :2 * W].set(p["bkv"])
    vec = vec.at[ROW_BO, :W].set(p["bo"])
    vec = vec.at[ROW_BM1, :4 * W].set(p["b_m1"])
    vec = vec.at[ROW_BM2, :W].set(p["b_m2"])
    vec = vec.at[ROW_G1, :W].set(p["g1"])
    vec = vec.at[ROW_BE1, :W].set(p["be1"])
    vec = vec.at[ROW_G2, :W].set(p["g2"])
    vec = vec.at[ROW_BE2, :W].set(p["be2"])
    vec = vec.at[ROW_G3, :W].set(p["g3"])
    vec = vec.at[ROW_BE3, :W].set(p["be3"])
    vec = vec.at[ROW_GF, :W].set(p["gf"])
    vec = vec.at[ROW_BEF, :W].set(p["bef"])
    vec = vec.at[ROW_WH, :W].set(p["wh"][:, 0])
    vec = vec.at[ROW_BH, 0].set(p["bh"][0])
    # Weight slabs in bf16 (halves weight DMA); vec slab stays f32.
    return wa.astype(jnp.bfloat16), wb.astype(jnp.bfloat16), vec


# ------------------------------ wrapper -------------------------------------
def one_d_occupancy_decoder(queries, latents, params):
    wa, wb, vec = pack_params(params)
    q2 = queries.reshape(BM, IN_DIM)
    # Tile xyz across the K=32 embedding axis (free XLA broadcast+reshape):
    # column k holds coordinate k % 3; cols >= 27 are zeroed by the freq/mask
    # rows and the zero weight rows.
    q_tiled = jnp.tile(q2, (1, KEMB // IN_DIM + 1))[:, :KEMB]        # (BM, 32)
    l2 = latents.reshape(BL, W)

    fn = pl.pallas_call(
        decoder_kernel,
        out_shape=jax.ShapeDtypeStruct((1, BM), jnp.float32),
        grid=(1,),                           # single step: 5 input DMAs total
        in_specs=[
            pl.BlockSpec((BM, KEMB), lambda i: (0, 0)),
            pl.BlockSpec((BL, W), lambda i: (0, 0)),
            pl.BlockSpec((W, COLS_A), lambda i: (0, 0)),
            pl.BlockSpec((ROWS_B, W), lambda i: (0, 0)),
            pl.BlockSpec((VEC_ROWS, VEC_COLS), lambda i: (0, 0)),
        ],
        out_specs=pl.BlockSpec((1, BM), lambda i: (0, 0)),
        compiler_params=pltpu.CompilerParams(
            dimension_semantics=("arbitrary",)),
    )
    out = fn(q_tiled, l2, wa, wb, vec)       # (1, BM), lane-dense
    return out.reshape(B, M, O)


# ------------------------- pure-JAX reference -------------------------------
def fourier_embed(x):
    parts = [x]
    for fr in FREQS:
        parts.append(jnp.sin(x * fr))
    for fr in FREQS:
        parts.append(jnp.cos(x * fr))
    return jnp.concatenate(parts, axis=-1)                # (B, M, E)


def reference(queries, latents, p):
    def ln(t, g, b):
        mu = jnp.mean(t, axis=-1, keepdims=True)
        var = jnp.mean((t - mu) ** 2, axis=-1, keepdims=True)
        return (t - mu) * jax.lax.rsqrt(var + EPS) * g + b

    x = fourier_embed(queries)
    h = x @ p["w_qi1"] + p["b_qi1"]
    h = h * jax.nn.sigmoid(h)
    q_tok = h @ p["w_qi2"] + p["b_qi2"]

    qn = ln(q_tok, p["g1"], p["be1"])
    dn = ln(latents, p["g2"], p["be2"])
    q = qn @ p["wq"] + p["bq"]
    kv = dn @ p["wkv"] + p["bkv"]
    k, v = kv[..., :W], kv[..., W:]

    qh = q.reshape(B, M, H, D).transpose(0, 2, 1, 3)
    kh = k.reshape(B, L, H, D).transpose(0, 2, 1, 3)
    vh = v.reshape(B, L, H, D).transpose(0, 2, 1, 3)
    s = jnp.einsum("bhmd,bhld->bhml", qh, kh) / math.sqrt(D)
    pmat = jax.nn.softmax(s, axis=-1)
    o = jnp.einsum("bhml,bhld->bhmd", pmat, vh).transpose(0, 2, 1, 3).reshape(B, M, W)
    x1 = q_tok + (o @ p["wo"] + p["bo"])

    x1n = ln(x1, p["g3"], p["be3"])
    mh = jax.nn.gelu(x1n @ p["w_m1"] + p["b_m1"])
    x2 = x1 + (mh @ p["w_m2"] + p["b_m2"])

    y = ln(x2, p["gf"], p["bef"])
    return y @ p["wh"] + p["bh"]


# --------------------------------- main --------------------------------------
def init_params(key):
    def lin(k, fan_in, fan_out):
        kw, kb = jax.random.split(k)
        bound = 1.0 / math.sqrt(fan_in)           # PyTorch nn.Linear default init
        w = jax.random.uniform(kw, (fan_in, fan_out), jnp.float32, -bound, bound)
        b = jax.random.uniform(kb, (fan_out,), jnp.float32, -bound, bound)
        return w, b

    ks = jax.random.split(key, 16)
    p = {}
    p["w_qi1"], p["b_qi1"] = lin(ks[0], E, W)
    p["w_qi2"], p["b_qi2"] = lin(ks[1], W, W)
    p["wq"], p["bq"] = lin(ks[2], W, W)
    p["wkv"], p["bkv"] = lin(ks[3], W, 2 * W)
    p["wo"], p["bo"] = lin(ks[4], W, W)
    p["w_m1"], p["b_m1"] = lin(ks[5], W, 4 * W)
    p["w_m2"], p["b_m2"] = lin(ks[6], 4 * W, W)
    p["wh"], p["bh"] = lin(ks[7], W, O)
    for name, kk in (("g1", ks[8]), ("g2", ks[9]), ("g3", ks[10]), ("gf", ks[11])):
        p[name] = (1.0 + 0.01 * jax.random.normal(kk, (W,))).astype(jnp.float32)
    for name, kk in (("be1", ks[12]), ("be2", ks[13]), ("be3", ks[14]), ("bef", ks[15])):
        p[name] = (0.01 * jax.random.normal(kk, (W,))).astype(jnp.float32)
    return p


if __name__ == "__main__":
    key = jax.random.PRNGKey(0)
    k_q, k_l, k_p = jax.random.split(key, 3)

    queries = jax.random.uniform(k_q, (B, M, IN_DIM), jnp.float32, -1.0, 1.0)
    latents = jax.random.normal(k_l, (B, L, W), jnp.float32)
    params = init_params(k_p)

    out = one_d_occupancy_decoder(queries, latents, params)
    out = jax.block_until_ready(out)

    # The kernel stores the matrix weights in bf16 (perf feedback: halves weight
    # DMA bytes); compare against the reference evaluated with the SAME
    # bf16-rounded weights so the assert validates kernel structure rather than
    # the intentional weight-storage precision.
    p_ref = dict(params)
    for name in ("w_qi1", "w_qi2", "wq", "wkv", "wo", "w_m1", "w_m2"):
        p_ref[name] = params[name].astype(jnp.bfloat16).astype(jnp.float32)
    ref = reference(queries, latents, p_ref)

    err = float(jnp.max(jnp.abs(out - ref)))
    assert out.shape == (B, M, O), out.shape
    # tolerance absorbs the EUP approximate reciprocal in the softmax and the
    # sin(x + pi/2) cosine; structural errors would be O(0.1) or larger.
    assert err < 5e-3, f"max abs error {err}"
    print("KERNEL_OK")
</pallas_src>

<mosaic_0001>
module attributes {stable_mosaic.version = 11 : i64} {
  func.func @decoder_kernel(%arg0: i32, %arg1: memref<32x32xf32, #tpu.memory_space<vmem>>, %arg2: memref<16x64xf32, #tpu.memory_space<vmem>>, %arg3: memref<64x384xbf16, #tpu.memory_space<vmem>>, %arg4: memref<480x64xbf16, #tpu.memory_space<vmem>>, %arg5: memref<20x256xf32, #tpu.memory_space<vmem>>, %arg6: memref<1x32xf32, #tpu.memory_space<vmem>>) attributes {dimension_semantics = [#tpu.dimension_semantics<arbitrary>], iteration_bounds = array<i64: 1>, scalar_prefetch = 0 : i64, scratch_operands = 0 : i64, tpu.core_type = #tpu.core_type<tc>, window_params = [{pipeline_mode = #tpu.pipeline_mode<synchronous>, transform_indices = @transform_0, window_bounds = array<i64: 32, 32>}, {pipeline_mode = #tpu.pipeline_mode<synchronous>, transform_indices = @transform_1, window_bounds = array<i64: 16, 64>}, {pipeline_mode = #tpu.pipeline_mode<synchronous>, transform_indices = @transform_2, window_bounds = array<i64: 64, 384>}, {pipeline_mode = #tpu.pipeline_mode<synchronous>, transform_indices = @transform_3, window_bounds = array<i64: 480, 64>}, {pipeline_mode = #tpu.pipeline_mode<synchronous>, transform_indices = @transform_4, window_bounds = array<i64: 20, 256>}, {pipeline_mode = #tpu.pipeline_mode<synchronous>, transform_indices = @transform_5, window_bounds = array<i64: 1, 32>}]} {
    %c0 = arith.constant 0 : index
    %c0_0 = arith.constant 0 : index
    %0 = vector.load %arg1[%c0, %c0_0] : memref<32x32xf32, #tpu.memory_space<vmem>>, vector<32x32xf32>
    %c0_1 = arith.constant 0 : index
    %c0_2 = arith.constant 0 : index
    %1 = vector.load %arg5[%c0_1, %c0_2] : memref<20x256xf32, #tpu.memory_space<vmem>>, vector<1x32xf32>
    %2 = vector.broadcast %1 : vector<1x32xf32> to vector<32x32xf32>
    %3 = arith.mulf %0, %2 : vector<32x32xf32>
    %c1 = arith.constant 1 : index
    %c0_3 = arith.constant 0 : index
    %4 = vector.load %arg5[%c1, %c0_3] : memref<20x256xf32, #tpu.memory_space<vmem>>, vector<1x32xf32>
    %5 = vector.broadcast %4 : vector<1x32xf32> to vector<32x32xf32>
    %6 = arith.addf %3, %5 : vector<32x32xf32>
    %7 = math.sin %6 : vector<32x32xf32>
    %c2 = arith.constant 2 : index
    %c0_4 = arith.constant 0 : index
    %8 = vector.load %arg5[%c2, %c0_4] : memref<20x256xf32, #tpu.memory_space<vmem>>, vector<1x32xf32>
    %9 = vector.broadcast %8 : vector<1x32xf32> to vector<32x32xf32>
    %10 = arith.mulf %9, %0 : vector<32x32xf32>
    %11 = arith.addf %7, %10 : vector<32x32xf32>
    %c0_5 = arith.constant 0 : index
    %c0_6 = arith.constant 0 : index
    %12 = vector.load %arg4[%c0_5, %c0_6] : memref<480x64xbf16, #tpu.memory_space<vmem>>, vector<32x64xbf16>
    %13 = arith.extf %12 : vector<32x64xbf16> to vector<32x64xf32>
    %cst = arith.constant dense<0.000000e+00> : vector<32x64xf32>
    %14 = tpu.matmul %11, %13, %cst {dimension_numbers = #tpu.dot_dimension_numbers<[1], [0], [0], [1], [0, 0, 1, 1], [], []>} : vector<32x32xf32>, vector<32x64xf32>, vector<32x64xf32> -> vector<32x64xf32>
    %c3 = arith.constant 3 : index
    %c0_7 = arith.constant 0 : index
    %15 = vector.load %arg5[%c3, %c0_7] : memref<20x256xf32, #tpu.memory_space<vmem>>, vector<1x64xf32>
    %16 = vector.broadcast %15 : vector<1x64xf32> to vector<32x64xf32>
    %17 = arith.addf %14, %16 : vector<32x64xf32>
    %18 = arith.negf %17 : vector<32x64xf32>
    %19 = math.exp %18 : vector<32x64xf32>
    %cst_8 = arith.constant 1.000000e+00 : f32
    %20 = vector.broadcast %cst_8 : f32 to vector<32x64xf32>
    %21 = arith.addf %20, %19 : vector<32x64xf32>
    %22 = arith.divf %20, %21 : vector<32x64xf32>
    %23 = arith.mulf %17, %22 : vector<32x64xf32>
    %c160 = arith.constant 160 : index
    %c0_9 = arith.constant 0 : index
    %24 = vector.load %arg4[%c160, %c0_9] : memref<480x64xbf16, #tpu.memory_space<vmem>>, vector<64x64xbf16>
    %25 = arith.extf %24 : vector<64x64xbf16> to vector<64x64xf32>
    %cst_10 = arith.constant dense<0.000000e+00> : vector<32x64xf32>
    %26 = tpu.matmul %23, %25, %cst_10 {dimension_numbers = #tpu.dot_dimension_numbers<[1], [0], [0], [1], [0, 0, 1, 1], [], []>} : vector<32x64xf32>, vector<64x64xf32>, vector<32x64xf32> -> vector<32x64xf32>
    %c4 = arith.constant 4 : index
    %c0_11 = arith.constant 0 : index
    %27 = vector.load %arg5[%c4, %c0_11] : memref<20x256xf32, #tpu.memory_space<vmem>>, vector<1x64xf32>
    %28 = vector.broadcast %27 : vector<1x64xf32> to vector<32x64xf32>
    %29 = arith.addf %26, %28 : vector<32x64xf32>
    %cst_12 = arith.constant dense<0.000000e+00> : vector<32xf32>
    %30 = vector.multi_reduction <add>, %29, %cst_12 [1] : vector<32x64xf32> to vector<32xf32>
    %31 = vector.shape_cast %30 : vector<32xf32> to vector<32x1xf32>
    %cst_13 = arith.constant 1.562500e-02 : f32
    %32 = vector.broadcast %cst_13 : f32 to vector<32x1xf32>
    %33 = arith.mulf %31, %32 : vector<32x1xf32>
    %34 = arith.mulf %29, %29 : vector<32x64xf32>
    %cst_14 = arith.constant dense<0.000000e+00> : vector<32xf32>
    %35 = vector.multi_reduction <add>, %34, %cst_14 [1] : vector<32x64xf32> to vector<32xf32>
    %36 = vector.shape_cast %35 : vector<32xf32> to vector<32x1xf32>
    %cst_15 = arith.constant 1.562500e-02 : f32
    %37 = vector.broadcast %cst_15 : f32 to vector<32x1xf32>
    %38 = arith.mulf %36, %37 : vector<32x1xf32>
    %39 = arith.mulf %33, %33 : vector<32x1xf32>
    %40 = arith.subf %38, %39 : vector<32x1xf32>
    %41 = vector.broadcast %33 : vector<32x1xf32> to vector<32x64xf32>
    %42 = arith.subf %29, %41 : vector<32x64xf32>
    %cst_16 = arith.constant 9.99999997E-7 : f32
    %43 = vector.broadcast %cst_16 : f32 to vector<32x1xf32>
    %44 = arith.addf %40, %43 : vector<32x1xf32>
    %45 = math.rsqrt %44 : vector<32x1xf32>
    %46 = vector.broadcast %45 : vector<32x1xf32> to vector<32x64xf32>
    %47 = arith.mulf %42, %46 : vector<32x64xf32>
    %c10 = arith.constant 10 : index
    %c0_17 = arith.constant 0 : index
    %48 = vector.load %arg5[%c10, %c0_17] : memref<20x256xf32, #tpu.memory_space<vmem>>, vector<1x64xf32>
    %49 = vector.broadcast %48 : vector<1x64xf32> to vector<32x64xf32>
    %50 = arith.mulf %47, %49 : vector<32x64xf32>
    %c11 = arith.constant 11 : index
    %c0_18 = arith.constant 0 : index
    %51 = vector.load %arg5[%c11, %c0_18] : memref<20x256xf32, #tpu.memory_space<vmem>>, vector<1x64xf32>
    %52 = vector.broadcast %51 : vector<1x64xf32> to vector<32x64xf32>
    %53 = arith.addf %50, %52 : vector<32x64xf32>
    %c32 = arith.constant 32 : index
    %c0_19 = arith.constant 0 : index
    %54 = vector.load %arg4[%c32, %c0_19] : memref<480x64xbf16, #tpu.memory_space<vmem>>, vector<64x64xbf16>
    %55 = arith.extf %54 : vector<64x64xbf16> to vector<64x64xf32>
    %cst_20 = arith.constant dense<0.000000e+00> : vector<32x64xf32>
    %56 = tpu.matmul %53, %55, %cst_20 {dimension_numbers = #tpu.dot_dimension_numbers<[1], [0], [0], [1], [0, 0, 1, 1], [], []>} : vector<32x64xf32>, vector<64x64xf32>, vector<32x64xf32> -> vector<32x64xf32>
    %c5 = arith.constant 5 : index
    %c0_21 = arith.constant 0 : index
    %57 = vector.load %arg5[%c5, %c0_21] : memref<20x256xf32, #tpu.memory_space<vmem>>, vector<1x64xf32>
    %58 = vector.broadcast %57 : vector<1x64xf32> to vector<32x64xf32>
    %59 = arith.addf %56, %58 : vector<32x64xf32>
    %c0_22 = arith.constant 0 : index
    %c0_23 = arith.constant 0 : index
    %60 = vector.load %arg2[%c0_22, %c0_23] : memref<16x64xf32, #tpu.memory_space<vmem>>, vector<16x64xf32>
    %cst_24 = arith.constant dense<0.000000e+00> : vector<16xf32>
    %61 = vector.multi_reduction <add>, %60, %cst_24 [1] : vector<16x64xf32> to vector<16xf32>
    %62 = vector.shape_cast %61 : vector<16xf32> to vector<16x1xf32>
    %cst_25 = arith.constant 1.562500e-02 : f32
    %63 = vector.broadcast %cst_25 : f32 to vector<16x1xf32>
    %64 = arith.mulf %62, %63 : vector<16x1xf32>
    %65 = arith.mulf %60, %60 : vector<16x64xf32>
    %cst_26 = arith.constant dense<0.000000e+00> : vector<16xf32>
    %66 = vector.multi_reduction <add>, %65, %cst_26 [1] : vector<16x64xf32> to vector<16xf32>
    %67 = vector.shape_cast %66 : vector<16xf32> to vector<16x1xf32>
    %cst_27 = arith.constant 1.562500e-02 : f32
    %68 = vector.broadcast %cst_27 : f32 to vector<16x1xf32>
    %69 = arith.mulf %67, %68 : vector<16x1xf32>
    %70 = arith.mulf %64, %64 : vector<16x1xf32>
    %71 = arith.subf %69, %70 : vector<16x1xf32>
    %72 = vector.broadcast %64 : vector<16x1xf32> to vector<16x64xf32>
    %73 = arith.subf %60, %72 : vector<16x64xf32>
    %cst_28 = arith.constant 9.99999997E-7 : f32
    %74 = vector.broadcast %cst_28 : f32 to vector<16x1xf32>
    %75 = arith.addf %71, %74 : vector<16x1xf32>
    %76 = math.rsqrt %75 : vector<16x1xf32>
    %77 = vector.broadcast %76 : vector<16x1xf32> to vector<16x64xf32>
    %78 = arith.mulf %73, %77 : vector<16x64xf32>
    %c12 = arith.constant 12 : index
    %c0_29 = arith.constant 0 : index
    %79 = vector.load %arg5[%c12, %c0_29] : memref<20x256xf32, #tpu.memory_space<vmem>>, vector<1x64xf32>
    %80 = vector.broadcast %79 : vector<1x64xf32> to vector<16x64xf32>
    %81 = arith.mulf %78, %80 : vector<16x64xf32>
    %c13 = arith.constant 13 : index
    %c0_30 = arith.constant 0 : index
    %82 = vector.load %arg5[%c13, %c0_30] : memref<20x256xf32, #tpu.memory_space<vmem>>, vector<1x64xf32>
    %83 = vector.broadcast %82 : vector<1x64xf32> to vector<16x64xf32>
    %84 = arith.addf %81, %83 : vector<16x64xf32>
    %c0_31 = arith.constant 0 : index
    %c0_32 = arith.constant 0 : index
    %85 = vector.load %arg3[%c0_31, %c0_32] : memref<64x384xbf16, #tpu.memory_space<vmem>>, vector<64x128xbf16>
    %86 = arith.extf %85 : vector<64x128xbf16> to vector<64x128xf32>
    %cst_33 = arith.constant dense<0.000000e+00> : vector<16x128xf32>
    %87 = tpu.matmul %84, %86, %cst_33 {dimension_numbers = #tpu.dot_dimension_numbers<[1], [0], [0], [1], [0, 0, 1, 1], [], []>} : vector<16x64xf32>, vector<64x128xf32>, vector<16x128xf32> -> vector<16x128xf32>
    %c6 = arith.constant 6 : index
    %c0_34 = arith.constant 0 : index
    %88 = vector.load %arg5[%c6, %c0_34] : memref<20x256xf32, #tpu.memory_space<vmem>>, vector<1x128xf32>
    %89 = vector.broadcast %88 : vector<1x128xf32> to vector<16x128xf32>
    %90 = arith.addf %87, %89 : vector<16x128xf32>
    %91 = tpu.iota {dimensions = array<i32: 0>} : vector<32x16xi32>
    %92 = tpu.iota {dimensions = array<i32: 1>} : vector<32x16xi32>
    %c0_i32 = arith.constant 0 : i32
    %93 = vector.broadcast %c0_i32 : i32 to vector<32x16xi32>
    %94 = arith.cmpi sge, %91, %93 : vector<32x16xi32>
    %c16_i32 = arith.constant 16 : i32
    %95 = vector.broadcast %c16_i32 : i32 to vector<32x16xi32>
    %96 = arith.cmpi slt, %91, %95 : vector<32x16xi32>
    %97 = arith.andi %94, %96 : vector<32x16xi1>
    %c0_i32_35 = arith.constant 0 : i32
    %98 = vector.broadcast %c0_i32_35 : i32 to vector<32x16xi32>
    %99 = arith.cmpi sge, %92, %98 : vector<32x16xi32>
    %100 = arith.andi %97, %99 : vector<32x16xi1>
    %c8_i32 = arith.constant 8 : i32
    %101 = vector.broadcast %c8_i32 : i32 to vector<32x16xi32>
    %102 = arith.cmpi slt, %92, %101 : vector<32x16xi32>
    %103 = arith.andi %100, %102 : vector<32x16xi1>
    %c16_i32_36 = arith.constant 16 : i32
    %104 = vector.broadcast %c16_i32_36 : i32 to vector<32x16xi32>
    %105 = arith.cmpi sge, %91, %104 : vector<32x16xi32>
    %c32_i32 = arith.constant 32 : i32
    %106 = vector.broadcast %c32_i32 : i32 to vector<32x16xi32>
    %107 = arith.cmpi slt, %91, %106 : vector<32x16xi32>
    %108 = arith.andi %105, %107 : vector<32x16xi1>
    %c8_i32_37 = arith.constant 8 : i32
    %109 = vector.broadcast %c8_i32_37 : i32 to vector<32x16xi32>
    %110 = arith.cmpi sge, %92, %109 : vector<32x16xi32>
    %111 = arith.andi %108, %110 : vector<32x16xi1>
    %c16_i32_38 = arith.constant 16 : i32
    %112 = vector.broadcast %c16_i32_38 : i32 to vector<32x16xi32>
    %113 = arith.cmpi slt, %92, %112 : vector<32x16xi32>
    %114 = arith.andi %111, %113 : vector<32x16xi1>
    %115 = arith.ori %103, %114 : vector<32x16xi1>
    %cst_39 = arith.constant 0.000000e+00 : f32
    %cst_40 = arith.constant -1.000000e+30 : f32
    %116 = vector.broadcast %cst_39 : f32 to vector<32x16xf32>
    %117 = vector.broadcast %cst_40 : f32 to vector<32x16xf32>
    %118 = arith.select %115, %116, %117 : vector<32x16xi1>, vector<32x16xf32>
    %119 = vector.extract_strided_slice %59 {offsets = [0, 0], sizes = [32, 16], strides = [1, 1]} : vector<32x64xf32> to vector<32x16xf32>
    %120 = vector.extract_strided_slice %90 {offsets = [0, 0], sizes = [16, 16], strides = [1, 1]} : vector<16x128xf32> to vector<16x16xf32>
    %cst_41 = arith.constant dense<0.000000e+00> : vector<32x16xf32>
    %121 = tpu.matmul %119, %120, %cst_41 {dimension_numbers = #tpu.dot_dimension_numbers<[1], [1], [0], [0], [0, 0, 1, 0], [], []>} : vector<32x16xf32>, vector<16x16xf32>, vector<32x16xf32> -> vector<32x16xf32>
    %cst_42 = arith.constant 2.500000e-01 : f32
    %122 = vector.broadcast %cst_42 : f32 to vector<32x16xf32>
    %123 = arith.mulf %121, %122 : vector<32x16xf32>
    %124 = arith.addf %123, %118 : vector<32x16xf32>
    %cst_43 = arith.constant dense<0xFF800000> : vector<32xf32>
    %125 = vector.multi_reduction <maximumf>, %124, %cst_43 [1] : vector<32x16xf32> to vector<32xf32>
    %126 = vector.shape_cast %125 : vector<32xf32> to vector<32x1xf32>
    %127 = vector.broadcast %126 : vector<32x1xf32> to vector<32x16xf32>
    %128 = arith.subf %124, %127 : vector<32x16xf32>
    %129 = math.exp %128 : vector<32x16xf32>
    %cst_44 = arith.constant dense<0.000000e+00> : vector<32xf32>
    %130 = vector.multi_reduction <add>, %129, %cst_44 [1] : vector<32x16xf32> to vector<32xf32>
    %131 = vector.shape_cast %130 : vector<32xf32> to vector<32x1xf32>
    %132 = tpu.reciprocal %131 {approx = true} : vector<32x1xf32> -> vector<32x1xf32>
    %133 = vector.broadcast %132 : vector<32x1xf32> to vector<32x16xf32>
    %134 = arith.mulf %129, %133 : vector<32x16xf32>
    %135 = vector.extract_strided_slice %90 {offsets = [0, 64], sizes = [16, 16], strides = [1, 1]} : vector<16x128xf32> to vector<16x16xf32>
    %cst_45 = arith.constant dense<0.000000e+00> : vector<32x16xf32>
    %136 = tpu.matmul %134, %135, %cst_45 {dimension_numbers = #tpu.dot_dimension_numbers<[1], [0], [0], [1], [0, 0, 1, 1], [], []>} : vector<32x16xf32>, vector<16x16xf32>, vector<32x16xf32> -> vector<32x16xf32>
    %137 = vector.extract_strided_slice %59 {offsets = [0, 16], sizes = [32, 16], strides = [1, 1]} : vector<32x64xf32> to vector<32x16xf32>
    %138 = vector.extract_strided_slice %90 {offsets = [0, 16], sizes = [16, 16], strides = [1, 1]} : vector<16x128xf32> to vector<16x16xf32>
    %cst_46 = arith.constant dense<0.000000e+00> : vector<32x16xf32>
    %139 = tpu.matmul %137, %138, %cst_46 {dimension_numbers = #tpu.dot_dimension_numbers<[1], [1], [0], [0], [0, 0, 1, 0], [], []>} : vector<32x16xf32>, vector<16x16xf32>, vector<32x16xf32> -> vector<32x16xf32>
    %cst_47 = arith.constant 2.500000e-01 : f32
    %140 = vector.broadcast %cst_47 : f32 to vector<32x16xf32>
    %141 = arith.mulf %139, %140 : vector<32x16xf32>
    %142 = arith.addf %141, %118 : vector<32x16xf32>
    %cst_48 = arith.constant dense<0xFF800000> : vector<32xf32>
    %143 = vector.multi_reduction <maximumf>, %142, %cst_48 [1] : vector<32x16xf32> to vector<32xf32>
    %144 = vector.shape_cast %143 : vector<32xf32> to vector<32x1xf32>
    %145 = vector.broadcast %144 : vector<32x1xf32> to vector<32x16xf32>
    %146 = arith.subf %142, %145 : vector<32x16xf32>
    %147 = math.exp %146 : vector<32x16xf32>
    %cst_49 = arith.constant dense<0.000000e+00> : vector<32xf32>
    %148 = vector.multi_reduction <add>, %147, %cst_49 [1] : vector<32x16xf32> to vector<32xf32>
    %149 = vector.shape_cast %148 : vector<32xf32> to vector<32x1xf32>
    %150 = tpu.reciprocal %149 {approx = true} : vector<32x1xf32> -> vector<32x1xf32>
    %151 = vector.broadcast %150 : vector<32x1xf32> to vector<32x16xf32>
    %152 = arith.mulf %147, %151 : vector<32x16xf32>
    %153 = vector.extract_strided_slice %90 {offsets = [0, 80], sizes = [16, 16], strides = [1, 1]} : vector<16x128xf32> to vector<16x16xf32>
    %cst_50 = arith.constant dense<0.000000e+00> : vector<32x16xf32>
    %154 = tpu.matmul %152, %153, %cst_50 {dimension_numbers = #tpu.dot_dimension_numbers<[1], [0], [0], [1], [0, 0, 1, 1], [], []>} : vector<32x16xf32>, vector<16x16xf32>, vector<32x16xf32> -> vector<32x16xf32>
    %155 = vector.extract_strided_slice %59 {offsets = [0, 32], sizes = [32, 16], strides = [1, 1]} : vector<32x64xf32> to vector<32x16xf32>
    %156 = vector.extract_strided_slice %90 {offsets = [0, 32], sizes = [16, 16], strides = [1, 1]} : vector<16x128xf32> to vector<16x16xf32>
    %cst_51 = arith.constant dense<0.000000e+00> : vector<32x16xf32>
    %157 = tpu.matmul %155, %156, %cst_51 {dimension_numbers = #tpu.dot_dimension_numbers<[1], [1], [0], [0], [0, 0, 1, 0], [], []>} : vector<32x16xf32>, vector<16x16xf32>, vector<32x16xf32> -> vector<32x16xf32>
    %cst_52 = arith.constant 2.500000e-01 : f32
    %158 = vector.broadcast %cst_52 : f32 to vector<32x16xf32>
    %159 = arith.mulf %157, %158 : vector<32x16xf32>
    %160 = arith.addf %159, %118 : vector<32x16xf32>
    %cst_53 = arith.constant dense<0xFF800000> : vector<32xf32>
    %161 = vector.multi_reduction <maximumf>, %160, %cst_53 [1] : vector<32x16xf32> to vector<32xf32>
    %162 = vector.shape_cast %161 : vector<32xf32> to vector<32x1xf32>
    %163 = vector.broadcast %162 : vector<32x1xf32> to vector<32x16xf32>
    %164 = arith.subf %160, %163 : vector<32x16xf32>
    %165 = math.exp %164 : vector<32x16xf32>
    %cst_54 = arith.constant dense<0.000000e+00> : vector<32xf32>
    %166 = vector.multi_reduction <add>, %165, %cst_54 [1] : vector<32x16xf32> to vector<32xf32>
    %167 = vector.shape_cast %166 : vector<32xf32> to vector<32x1xf32>
    %168 = tpu.reciprocal %167 {approx = true} : vector<32x1xf32> -> vector<32x1xf32>
    %169 = vector.broadcast %168 : vector<32x1xf32> to vector<32x16xf32>
    %170 = arith.mulf %165, %169 : vector<32x16xf32>
    %171 = vector.extract_strided_slice %90 {offsets = [0, 96], sizes = [16, 16], strides = [1, 1]} : vector<16x128xf32> to vector<16x16xf32>
    %cst_55 = arith.constant dense<0.000000e+00> : vector<32x16xf32>
    %172 = tpu.matmul %170, %171, %cst_55 {dimension_numbers = #tpu.dot_dimension_numbers<[1], [0], [0], [1], [0, 0, 1, 1], [], []>} : vector<32x16xf32>, vector<16x16xf32>, vector<32x16xf32> -> vector<32x16xf32>
    %173 = vector.extract_strided_slice %59 {offsets = [0, 48], sizes = [32, 16], strides = [1, 1]} : vector<32x64xf32> to vector<32x16xf32>
    %174 = vector.extract_strided_slice %90 {offsets = [0, 48], sizes = [16, 16], strides = [1, 1]} : vector<16x128xf32> to vector<16x16xf32>
    %cst_56 = arith.constant dense<0.000000e+00> : vector<32x16xf32>
    %175 = tpu.matmul %173, %174, %cst_56 {dimension_numbers = #tpu.dot_dimension_numbers<[1], [1], [0], [0], [0, 0, 1, 0], [], []>} : vector<32x16xf32>, vector<16x16xf32>, vector<32x16xf32> -> vector<32x16xf32>
    %cst_57 = arith.constant 2.500000e-01 : f32
    %176 = vector.broadcast %cst_57 : f32 to vector<32x16xf32>
    %177 = arith.mulf %175, %176 : vector<32x16xf32>
    %178 = arith.addf %177, %118 : vector<32x16xf32>
    %cst_58 = arith.constant dense<0xFF800000> : vector<32xf32>
    %179 = vector.multi_reduction <maximumf>, %178, %cst_58 [1] : vector<32x16xf32> to vector<32xf32>
    %180 = vector.shape_cast %179 : vector<32xf32> to vector<32x1xf32>
    %181 = vector.broadcast %180 : vector<32x1xf32> to vector<32x16xf32>
    %182 = arith.subf %178, %181 : vector<32x16xf32>
    %183 = math.exp %182 : vector<32x16xf32>
    %cst_59 = arith.constant dense<0.000000e+00> : vector<32xf32>
    %184 = vector.multi_reduction <add>, %183, %cst_59 [1] : vector<32x16xf32> to vector<32xf32>
    %185 = vector.shape_cast %184 : vector<32xf32> to vector<32x1xf32>
    %186 = tpu.reciprocal %185 {approx = true} : vector<32x1xf32> -> vector<32x1xf32>
    %187 = vector.broadcast %186 : vector<32x1xf32> to vector<32x16xf32>
    %188 = arith.mulf %183, %187 : vector<32x16xf32>
    %189 = vector.extract_strided_slice %90 {offsets = [0, 112], sizes = [16, 16], strides = [1, 1]} : vector<16x128xf32> to vector<16x16xf32>
    %cst_60 = arith.constant dense<0.000000e+00> : vector<32x16xf32>
    %190 = tpu.matmul %188, %189, %cst_60 {dimension_numbers = #tpu.dot_dimension_numbers<[1], [0], [0], [1], [0, 0, 1, 1], [], []>} : vector<32x16xf32>, vector<16x16xf32>, vector<32x16xf32> -> vector<32x16xf32>
    %191 = tpu.concatenate %136, %154, %172, %190 in 1 : vector<32x16xf32>, vector<32x16xf32>, vector<32x16xf32>, vector<32x16xf32> -> vector<32x64xf32>
    %c96 = arith.constant 96 : index
    %c0_61 = arith.constant 0 : index
    %192 = vector.load %arg4[%c96, %c0_61] : memref<480x64xbf16, #tpu.memory_space<vmem>>, vector<64x64xbf16>
    %193 = arith.extf %192 : vector<64x64xbf16> to vector<64x64xf32>
    %cst_62 = arith.constant dense<0.000000e+00> : vector<32x64xf32>
    %194 = tpu.matmul %191, %193, %cst_62 {dimension_numbers = #tpu.dot_dimension_numbers<[1], [0], [0], [1], [0, 0, 1, 1], [], []>} : vector<32x64xf32>, vector<64x64xf32>, vector<32x64xf32> -> vector<32x64xf32>
    %195 = arith.addf %29, %194 : vector<32x64xf32>
    %c7 = arith.constant 7 : index
    %c0_63 = arith.constant 0 : index
    %196 = vector.load %arg5[%c7, %c0_63] : memref<20x256xf32, #tpu.memory_space<vmem>>, vector<1x64xf32>
    %197 = vector.broadcast %196 : vector<1x64xf32> to vector<32x64xf32>
    %198 = arith.addf %195, %197 : vector<32x64xf32>
    %cst_64 = arith.constant dense<0.000000e+00> : vector<32xf32>
    %199 = vector.multi_reduction <add>, %198, %cst_64 [1] : vector<32x64xf32> to vector<32xf32>
    %200 = vector.shape_cast %199 : vector<32xf32> to vector<32x1xf32>
    %cst_65 = arith.constant 1.562500e-02 : f32
    %201 = vector.broadcast %cst_65 : f32 to vector<32x1xf32>
    %202 = arith.mulf %200, %201 : vector<32x1xf32>
    %203 = arith.mulf %198, %198 : vector<32x64xf32>
    %cst_66 = arith.constant dense<0.000000e+00> : vector<32xf32>
    %204 = vector.multi_reduction <add>, %203, %cst_66 [1] : vector<32x64xf32> to vector<32xf32>
    %205 = vector.shape_cast %204 : vector<32xf32> to vector<32x1xf32>
    %cst_67 = arith.constant 1.562500e-02 : f32
    %206 = vector.broadcast %cst_67 : f32 to vector<32x1xf32>
    %207 = arith.mulf %205, %206 : vector<32x1xf32>
    %208 = arith.mulf %202, %202 : vector<32x1xf32>
    %209 = arith.subf %207, %208 : vector<32x1xf32>
    %210 = vector.broadcast %202 : vector<32x1xf32> to vector<32x64xf32>
    %211 = arith.subf %198, %210 : vector<32x64xf32>
    %cst_68 = arith.constant 9.99999997E-7 : f32
    %212 = vector.broadcast %cst_68 : f32 to vector<32x1xf32>
    %213 = arith.addf %209, %212 : vector<32x1xf32>
    %214 = math.rsqrt %213 : vector<32x1xf32>
    %215 = vector.broadcast %214 : vector<32x1xf32> to vector<32x64xf32>
    %216 = arith.mulf %211, %215 : vector<32x64xf32>
    %c14 = arith.constant 14 : index
    %c0_69 = arith.constant 0 : index
    %217 = vector.load %arg5[%c14, %c0_69] : memref<20x256xf32, #tpu.memory_space<vmem>>, vector<1x64xf32>
    %218 = vector.broadcast %217 : vector<1x64xf32> to vector<32x64xf32>
    %219 = arith.mulf %216, %218 : vector<32x64xf32>
    %c15 = arith.constant 15 : index
    %c0_70 = arith.constant 0 : index
    %220 = vector.load %arg5[%c15, %c0_70] : memref<20x256xf32, #tpu.memory_space<vmem>>, vector<1x64xf32>
    %221 = vector.broadcast %220 : vector<1x64xf32> to vector<32x64xf32>
    %222 = arith.addf %219, %221 : vector<32x64xf32>
    %c0_71 = arith.constant 0 : index
    %c128 = arith.constant 128 : index
    %223 = vector.load %arg3[%c0_71, %c128] : memref<64x384xbf16, #tpu.memory_space<vmem>>, vector<64x256xbf16>
    %224 = arith.extf %223 : vector<64x256xbf16> to vector<64x256xf32>
    %cst_72 = arith.constant dense<0.000000e+00> : vector<32x256xf32>
    %225 = tpu.matmul %222, %224, %cst_72 {dimension_numbers = #tpu.dot_dimension_numbers<[1], [0], [0], [1], [0, 0, 1, 1], [], []>} : vector<32x64xf32>, vector<64x256xf32>, vector<32x256xf32> -> vector<32x256xf32>
    %c8 = arith.constant 8 : index
    %c0_73 = arith.constant 0 : index
    %226 = vector.load %arg5[%c8, %c0_73] : memref<20x256xf32, #tpu.memory_space<vmem>>, vector<1x256xf32>
    %227 = vector.broadcast %226 : vector<1x256xf32> to vector<32x256xf32>
    %228 = arith.addf %225, %227 : vector<32x256xf32>
    %229 = arith.mulf %228, %228 : vector<32x256xf32>
    %230 = arith.mulf %228, %229 : vector<32x256xf32>
    %cst_74 = arith.constant 4.471500e-02 : f32
    %231 = vector.broadcast %cst_74 : f32 to vector<32x256xf32>
    %232 = arith.mulf %231, %230 : vector<32x256xf32>
    %233 = arith.addf %228, %232 : vector<32x256xf32>
    %cst_75 = arith.constant 0.797884583 : f32
    %234 = vector.broadcast %cst_75 : f32 to vector<32x256xf32>
    %235 = arith.mulf %234, %233 : vector<32x256xf32>
    %236 = math.tanh %235 : vector<32x256xf32>
    %cst_76 = arith.constant 1.000000e+00 : f32
    %237 = vector.broadcast %cst_76 : f32 to vector<32x256xf32>
    %238 = arith.addf %237, %236 : vector<32x256xf32>
    %cst_77 = arith.constant 5.000000e-01 : f32
    %239 = vector.broadcast %cst_77 : f32 to vector<32x256xf32>
    %240 = arith.mulf %239, %238 : vector<32x256xf32>
    %241 = arith.mulf %228, %240 : vector<32x256xf32>
    %c224 = arith.constant 224 : index
    %c0_78 = arith.constant 0 : index
    %242 = vector.load %arg4[%c224, %c0_78] : memref<480x64xbf16, #tpu.memory_space<vmem>>, vector<256x64xbf16>
    %243 = arith.extf %242 : vector<256x64xbf16> to vector<256x64xf32>
    %cst_79 = arith.constant dense<0.000000e+00> : vector<32x64xf32>
    %244 = tpu.matmul %241, %243, %cst_79 {dimension_numbers = #tpu.dot_dimension_numbers<[1], [0], [0], [1], [0, 0, 1, 1], [], []>} : vector<32x256xf32>, vector<256x64xf32>, vector<32x64xf32> -> vector<32x64xf32>
    %245 = arith.addf %198, %244 : vector<32x64xf32>
    %c9 = arith.constant 9 : index
    %c0_80 = arith.constant 0 : index
    %246 = vector.load %arg5[%c9, %c0_80] : memref<20x256xf32, #tpu.memory_space<vmem>>, vector<1x64xf32>
    %247 = vector.broadcast %246 : vector<1x64xf32> to vector<32x64xf32>
    %248 = arith.addf %245, %247 : vector<32x64xf32>
    %cst_81 = arith.constant dense<0.000000e+00> : vector<32xf32>
    %249 = vector.multi_reduction <add>, %248, %cst_81 [1] : vector<32x64xf32> to vector<32xf32>
    %250 = vector.shape_cast %249 : vector<32xf32> to vector<32x1xf32>
    %cst_82 = arith.constant 1.562500e-02 : f32
    %251 = vector.broadcast %cst_82 : f32 to vector<32x1xf32>
    %252 = arith.mulf %250, %251 : vector<32x1xf32>
    %253 = arith.mulf %248, %248 : vector<32x64xf32>
    %cst_83 = arith.constant dense<0.000000e+00> : vector<32xf32>
    %254 = vector.multi_reduction <add>, %253, %cst_83 [1] : vector<32x64xf32> to vector<32xf32>
    %255 = vector.shape_cast %254 : vector<32xf32> to vector<32x1xf32>
    %cst_84 = arith.constant 1.562500e-02 : f32
    %256 = vector.broadcast %cst_84 : f32 to vector<32x1xf32>
    %257 = arith.mulf %255, %256 : vector<32x1xf32>
    %258 = arith.mulf %252, %252 : vector<32x1xf32>
    %259 = arith.subf %257, %258 : vector<32x1xf32>
    %260 = vector.broadcast %252 : vector<32x1xf32> to vector<32x64xf32>
    %261 = arith.subf %248, %260 : vector<32x64xf32>
    %cst_85 = arith.constant 9.99999997E-7 : f32
    %262 = vector.broadcast %cst_85 : f32 to vector<32x1xf32>
    %263 = arith.addf %259, %262 : vector<32x1xf32>
    %264 = math.rsqrt %263 : vector<32x1xf32>
    %265 = vector.broadcast %264 : vector<32x1xf32> to vector<32x64xf32>
    %266 = arith.mulf %261, %265 : vector<32x64xf32>
    %c16 = arith.constant 16 : index
    %c0_86 = arith.constant 0 : index
    %267 = vector.load %arg5[%c16, %c0_86] : memref<20x256xf32, #tpu.memory_space<vmem>>, vector<1x64xf32>
    %268 = vector.broadcast %267 : vector<1x64xf32> to vector<32x64xf32>
    %269 = arith.mulf %266, %268 : vector<32x64xf32>
    %c17 = arith.constant 17 : index
    %c0_87 = arith.constant 0 : index
    %270 = vector.load %arg5[%c17, %c0_87] : memref<20x256xf32, #tpu.memory_space<vmem>>, vector<1x64xf32>
    %271 = vector.broadcast %270 : vector<1x64xf32> to vector<32x64xf32>
    %272 = arith.addf %269, %271 : vector<32x64xf32>
    %c18 = arith.constant 18 : index
    %c0_88 = arith.constant 0 : index
    %273 = vector.load %arg5[%c18, %c0_88] : memref<20x256xf32, #tpu.memory_space<vmem>>, vector<1x64xf32>
    %cst_89 = arith.constant dense<0.000000e+00> : vector<1x32xf32>
    %274 = tpu.matmul %273, %272, %cst_89 {dimension_numbers = #tpu.dot_dimension_numbers<[1], [1], [0], [0], [0, 0, 1, 0], [], []>} : vector<1x64xf32>, vector<32x64xf32>, vector<1x32xf32> -> vector<1x32xf32>
    %c19 = arith.constant 19 : index
    %c0_90 = arith.constant 0 : index
    %275 = vector.load %arg5[%c19, %c0_90] : memref<20x256xf32, #tpu.memory_space<vmem>>, vector<1x1xf32>
    %276 = vector.broadcast %275 : vector<1x1xf32> to vector<1x32xf32>
    %277 = arith.addf %274, %276 : vector<1x32xf32>
    %c0_91 = arith.constant 0 : index
    %c0_92 = arith.constant 0 : index
    %278 = vector.load %arg6[%c0_91, %c0_92] : memref<1x32xf32, #tpu.memory_space<vmem>>, vector<1x32xf32>
    tpu.vector_store %arg6[%c0_91, %c0_92], %277 {strides = array<i32>} : memref<1x32xf32, #tpu.memory_space<vmem>>, vector<1x32xf32>,
    return
  }
  func.func @transform_0(%arg0: i32) -> (i32, i32) {
    %c0_i32 = arith.constant 0 : i32
    %c0_i32_0 = arith.constant 0 : i32
    %c0_i32_1 = arith.constant 0 : i32
    return %c0_i32, %c0_i32_0 : i32, i32
  }
  func.func @transform_1(%arg0: i32) -> (i32, i32) {
    %c0_i32 = arith.constant 0 : i32
    %c0_i32_0 = arith.constant 0 : i32
    %c0_i32_1 = arith.constant 0 : i32
    return %c0_i32, %c0_i32_0 : i32, i32
  }
  func.func @transform_2(%arg0: i32) -> (i32, i32) {
    %c0_i32 = arith.constant 0 : i32
    %c0_i32_0 = arith.constant 0 : i32
    %c0_i32_1 = arith.constant 0 : i32
    return %c0_i32, %c0_i32_0 : i32, i32
  }
  func.func @transform_3(%arg0: i32) -> (i32, i32) {
    %c0_i32 = arith.constant 0 : i32
    %c0_i32_0 = arith.constant 0 : i32
    %c0_i32_1 = arith.constant 0 : i32
    return %c0_i32, %c0_i32_0 : i32, i32
  }
  func.func @transform_4(%arg0: i32) -> (i32, i32) {
    %c0_i32 = arith.constant 0 : i32
    %c0_i32_0 = arith.constant 0 : i32
    %c0_i32_1 = arith.constant 0 : i32
    return %c0_i32, %c0_i32_0 : i32, i32
  }
  func.func @transform_5(%arg0: i32) -> (i32, i32) {
    %c0_i32 = arith.constant 0 : i32
    %c0_i32_0 = arith.constant 0 : i32
    %c0_i32_1 = arith.constant 0 : i32
    return %c0_i32, %c0_i32_0 : i32, i32
  }
}

</mosaic_0001>

<bundles_post_ra>
// kernel: tpu_custom_call.1
= control target key start
LH: loop header
LB: loop body
LE: loop exit
PB: predicated region body
PF: predicated region fallthrough
CT: control target
= control target key end

     0   :  { %v2919_v14 = vmov 0   ;;  %s4102_s0 = inlined_call_operand.vmem [shape: f32[32,32], index: 0, kind: input, shape index: {}]   ;;  %s4103_s1 = inlined_call_operand.vmem [shape: f32[16,64], index: 1, kind: input, shape index: {}]   ;;  %s4104_s2 = inlined_call_operand.vmem [shape: bf16[64,384], index: 2, kind: input, shape index: {}]   ;;  %s4105_s3 = inlined_call_operand.vmem [shape: bf16[480,64], index: 3, kind: input, shape index: {}]   ;;  %s4106_s4 = inlined_call_operand.vmem [shape: f32[20,256], index: 4, kind: input, shape index: {}]   ;;  %s4107_s5 = inlined_call_operand.hbm [shape: f32[1,32], index: 5, kind: output, shape index: {}]  }
   0x1   :  { %v2693_v0 = vld [vmem:[%s4105_s3 + $0x8] sm:$0xff]   ;;  %v2574_v1 = vld [vmem:[%s4105_s3] sm:$0xff]   ;;  %v23_v11 = vld [vmem:[%s4102_s0 + $0x10] sm:$0xff]  ;;  %2766 = vset.pattern.permute.xlu1 %v2919_v14  ;;  %2767 = vset.pattern.permute.xlu0 %v2919_v14 }
   0x2   :  { %v2974_v2 = vld [vmem:[%s4102_s0] sm:$0xff]  ;;  %v2580_v3 = vunpack.c.h.bf16 %v2693_v0  ;;  %v2579_v4 = vunpack.c.l.bf16 %v2693_v0  ;;  %v2989_v7 = vld [vmem:[%s4102_s0 + $0x8] sm:$0xff]  ;;  %v2576_v9 = vunpack.c.h.bf16 %v2574_v1 }
   0x3   :  { %v2979_v5 = vld [vmem:[%s4106_s4] ss:$0 sm:$0xff]  ;;  %v2984_v6 = vld [vmem:[%s4106_s4 + $0x1] ss:$0 sm:$0xff] }
   0x4   :  { %v26_v8 = vmul.f32 %v2979_v5, %v2974_v2  ;;  %698 = vmatpush.msra.mxu0 %v2580_v3  ;;  %v27_v10 = vmul.f32 %v2979_v5, %v2989_v7  ;;  %v28_v13 = vmul.f32 %v2979_v5, %v23_v11 }
   0x6   :  { %v2999_v12 = vadd.f32 %v2984_v6, %v26_v8 }
   0x7   :  { %10 = vsyncpa [#allocation3], 0  ;;  %699 = vmatpush.msra.mxu0 %v2579_v4  ;;  %v2575_v15 = vunpack.c.l.bf16 %v2574_v1  ;;  %v3005_v16 = vadd.f32 %v2984_v6, %v27_v10  ;;  %v3010_v19 = vadd.f32 %v2984_v6, %v28_v13  ;;  %v2920_v42 = vmov 683565275   ;;  %s2926_s9 = smov 112   ;;  %s2927_s10 = smov 96  }
   0x8   :  { %v35_v17 = vand.u32 2147483647, %v2999_v12  ;;  %v38_v18 = vand.u32 2139095040, %v2999_v12  ;;  %v2921_v44 = vmov 2475754826   ;;  %s2930_s13 = smov 64  }
   0x9   :  { %700 = vmatpush.msra.mxu0 %v2576_v9  ;;  %v190_v20 = vand.u32 2147483647, %v3005_v16  ;;  %v193_v21 = vand.u32 2139095040, %v3005_v16  ;;  %v348_v25 = vand.u32 2139095040, %v3010_v19  ;;  %v2922_v46 = vmov 2131351028  }
   0xa   :  { %v39_v22 = vshrl.u32 %v38_v18, 23  ;;  %v42_v23 = vand.u32 8388607, %v35_v17  ;;  %v2923_v48 = vmov 2102212464   ;;  %s2931_s14 = smov 48  }
   0xb   :  { %701 = vmatpush.msra.mxu0 %v2575_v15  ;;  %v194_v24 = vshrl.u32 %v193_v21, 23  ;;  %v197_v29 = vand.u32 8388607, %v190_v20  ;;  %v349_v32 = vshrl.u32 %v348_v25, 23  ;;  %v2924_v50 = vmov 920167782  }
   0xc   :  { %v2485_v26 = vadd.s32 4294967169, %v39_v22  ;;  %v43_v27 = vor.u32 8388608, %v42_v23  ;;  %v2925_v59 = vmov 1326507024   ;;  %s2932_s15 = smov 32   ;;  %s2933_s16 = smov 16  }
   0xd   :  { %v2488_v28 = vadd.s32 4294967169, %v194_v24  ;;  %v198_v35 = vor.u32 8388608, %v197_v29  ;;  %v3025_v40 = vadd.s32 4294967169, %v349_v32  ;;  %s2934_s8 = smov [#allocation2]   ;;  %s2476_s12 = sshll.u32 %s4107_s5, 4  ;;  %s2477_s12 = int_to_ptr.hbm [resolvable:$true] %s2476_s12 }
   0xe   :  { %v45_v30 = vadd.s32 1, %v2485_v26  ;;  %v3019_v34 = vshll.u32 %v43_v27, 8 }
   0xf   :  { %v200_v31 = vadd.s32 1, %v2488_v28  ;;  %v3033_v53 = vshll.u32 %v198_v35, 8 }
  0x10   :  { %vm46_vm0 = vcmp.gt.s32.totalorder %v45_v30, 0  ;;  %v84_v52 = vand.u32 65535, %v3019_v34  ;;  %v85_v57 = vshrl.u32 %v3019_v34, 16 }
  0x11   :  { %v47_v33 = vsel %vm46_vm0, %v45_v30, 0  ;;  %vm201_vm1 = vcmp.gt.s32.totalorder %v200_v31, 0 }
  0x12   :  { %v49_v36 = vand.u32 31, %v47_v33  ;;  %v202_v37 = vsel %vm201_vm1, %v200_v31, 0  ;;  %v3021_v38 = vshrl.u32 %v47_v33, 5 }
  0x13   :  { %v3023_v39 = vand.u32 31, %v202_v37  ;;  %v3053_v10 = vshrl.u32 %v202_v37, 5 }
  0x14   :  { %v50_v41 = vsub.s32 32, %v49_v36  ;;  %v52_v43 = vshll.u32 %v2920_v42, %v49_v36  ;;  %v55_v45 = vshll.u32 %v2921_v44, %v49_v36  ;;  %v58_v47 = vshll.u32 %v2922_v46, %v49_v36 }
  0x15   :  { %v61_v49 = vshll.u32 %v2923_v48, %v49_v36  ;;  %v64_v51 = vshll.u32 %v2924_v50, %v49_v36  ;;  %vm67_vm2 = vcmp.lt.s32.totalorder %v3021_v38, 1  ;;  %vm70_vm3 = vcmp.lt.s32.totalorder %v3021_v38, 4 }
  0x16   :  { %v53_v54 = vshrl.u32 %v2921_v44, %v50_v41  ;;  %v56_v55 = vshrl.u32 %v2922_v46, %v50_v41  ;;  %v59_v56 = vshrl.u32 %v2923_v48, %v50_v41  ;;  %v62_v58 = vshrl.u32 %v2924_v50, %v50_v41 }
  0x17   :  { %v65_v60 = vshrl.u32 %v2925_v59, %v50_v41  ;;  %v3044_v0 = vsub.s32 32, %v3023_v39  ;;  %v51_v1 = vshrl.u32 %v2920_v42, %v50_v41  ;;  %vm69_vm4 = vcmp.lt.s32.totalorder %v3021_v38, 3 }
  0x18   :  { %v54_v61 = vor.u32 %v53_v54, %v52_v43  ;;  %v57_v62 = vor.u32 %v56_v55, %v55_v45  ;;  %v60_v63 = vor.u32 %v59_v56, %v58_v47  ;;  %v63_v3 = vor.u32 %v62_v58, %v61_v49 }
  0x19   :  { %v66_v4 = vor.u32 %v65_v60, %v64_v51  ;;  %vm68_vm5 = vcmp.lt.s32.totalorder %v3021_v38, 2  ;;  %v207_v15 = vshll.u32 %v2920_v42, %v3023_v39  ;;  %v210_v18 = vshll.u32 %v2921_v44, %v3023_v39 }
  0x1a   :  { %v75_v8 = vsel %vm67_vm2, %v54_v61, %v57_v62  ;;  %v79_v9 = vsel %vm67_vm2, %v57_v62, %v60_v63  ;;  %v76_v11 = vsel %vm70_vm3, %v63_v3, 920167782  ;;  %v72_v21 = vsel %vm70_vm3, %v60_v63, 2102212464 }
  0x1b   :  { %v80_v13 = vsel %vm70_vm3, %v66_v4, 1326507024  ;;  %v77_v22 = vsel %vm69_vm4, %v60_v63, %v76_v11  ;;  %v208_v24 = vshrl.u32 %v2921_v44, %v3044_v0  ;;  %v71_v25 = vsel %vm67_vm2, %v51_v1, %v54_v61 }
  0x1c   :  { %v81_v23 = vsel %vm69_vm4, %v63_v3, %v80_v13  ;;  %v78_v26 = vsel %vm68_vm5, %v75_v8, %v77_v22  ;;  %v211_v28 = vshrl.u32 %v2922_v46, %v3044_v0  ;;  %v73_v33 = vsel %vm69_vm4, %v57_v62, %v72_v21 }
  0x1d   :  { %v82_v27 = vsel %vm68_vm5, %v79_v9, %v81_v23  ;;  %v108_v31 = vand.u32 65535, %v78_v26  ;;  %v109_v32 = vshrl.u32 %v78_v26, 16  ;;  %v3081_v35 = vor.u32 %v208_v24, %v207_v15 }
  0x1e   :  { %v86_v29 = vand.u32 65535, %v82_v27  ;;  %v87_v30 = vshrl.u32 %v82_v27, 16  ;;  %v3083_v36 = vor.u32 %v211_v28, %v210_v18  ;;  %v213_v37 = vshll.u32 %v2922_v46, %v3023_v39 }
  0x1f   :  { %v214_v47 = vshrl.u32 %v2923_v48, %v3044_v0  ;;  %v110_v51 = vmul.u32 %v108_v31, %v84_v52  ;;  %v111_v54 = vmul.u32 %v109_v32, %v84_v52  ;;  %v112_v55 = vmul.u32 %v108_v31, %v85_v57 }
  0x20   :  { %v88_v41 = vmul.u32 %v86_v29, %v84_v52  ;;  %v89_v43 = vmul.u32 %v87_v30, %v84_v52  ;;  %v90_v45 = vmul.u32 %v86_v29, %v85_v57  ;;  %v91_v49 = vmul.u32 %v87_v30, %v85_v57 }
  0x21   :  { %v113_v61 = vmul.u32 %v109_v32, %v85_v57  ;;  %v114_v63 = vshll.u32 %v111_v54, 16  ;;  %v115_v1 = vshrl.u32 %v111_v54, 16  ;;  %v116_v3 = vshll.u32 %v112_v55, 16 }
  0x22   :  { %v92_v56 = vshll.u32 %v89_v43, 16  ;;  %v93_v58 = vshrl.u32 %v89_v43, 16  ;;  %v94_v60 = vshll.u32 %v90_v45, 16  ;;  %v95_v62 = vshrl.u32 %v90_v45, 16 }
  0x23   :  { %v117_v8 = vshrl.u32 %v112_v55, 16  ;;  %v216_v9 = vshll.u32 %v2923_v48, %v3023_v39  ;;  %vm118_vm7 = vc.u32 %v110_v51, %v114_v63  ;;  %v120_v13 = vadd.s32 %v114_v63, %v110_v51 }
  0x24   :  { %vm96_vm6 = vc.u32 %v88_v41, %v92_v56  ;;  %v98_v4 = vadd.s32 %v92_v56, %v88_v41  ;;  %v217_v52 = vshrl.u32 %v2924_v50, %v3044_v0  ;;  %v119_v57 = vsel %vm118_vm7, 1, %v2919_v14 }
  0x25   :  { %v97_v11 = vsel %vm96_vm6, 1, %v2919_v14  ;;  %v219_v18 = vshll.u32 %v2924_v50, %v3023_v39  ;;  %v121_v22 = vadd.s32 %v119_v57, %v113_v61  ;;  %vm122_vm9 = vc.u32 %v120_v13, %v116_v3 }
  0x26   :  { %v99_v15 = vadd.s32 %v97_v11, %v91_v49  ;;  %vm100_vm8 = vc.u32 %v98_v4, %v94_v60  ;;  %v215_v23 = vor.u32 %v214_v47, %v213_v37  ;;  %v123_v26 = vsel %vm122_vm9, 1, %v2919_v14 }
  0x27   :  { %v101_v21 = vsel %vm100_vm8, 1, %v2919_v14  ;;  %v218_v27 = vor.u32 %v217_v52, %v216_v9  ;;  %v220_v28 = vshrl.u32 %v2925_v59, %v3044_v0  ;;  %v3101_v29 = vadd.s32 %v120_v13, %v116_v3 }
  0x28   :  { %v103_v24 = vadd.s32 %v101_v21, %v99_v15  ;;  %v125_v30 = vadd.s32 %v123_v26, %v121_v22  ;;  %vm222_vm10 = vcmp.lt.s32.totalorder %v3053_v10, 1  ;;  %vm224_vm11 = vcmp.lt.s32.totalorder %v3053_v10, 3 }
  0x29   :  { %v221_v31 = vor.u32 %v220_v28, %v219_v18  ;;  %vm223_vm12 = vcmp.lt.s32.totalorder %v3053_v10, 2  ;;  %vm225_vm13 = vcmp.lt.s32.totalorder %v3053_v10, 4  ;;  %v74_v32 = vsel %vm68_vm5, %v71_v25, %v73_v33 }
  0x2a   :  { %v104_v39 = vadd.s32 %v103_v24, %v93_v58  ;;  %v126_v37 = vadd.s32 %v125_v30, %v115_v1  ;;  %v230_v41 = vsel %vm222_vm10, %v3081_v35, %v3083_v36  ;;  %v231_v43 = vsel %vm225_vm13, %v218_v27, 920167782 }
  0x2b   :  { %v232_v47 = vsel %vm224_vm11, %v215_v23, %v231_v43  ;;  %v234_v49 = vsel %vm222_vm10, %v3083_v36, %v215_v23  ;;  %v240_v38 = vshrl.u32 %v3033_v53, 16  ;;  %v235_v51 = vsel %vm225_vm13, %v221_v31, 1326507024 }
  0x2c   :  { %v3115_v45 = vadd.s32 %v104_v39, %v95_v62  ;;  %v127_v25 = vadd.s32 %v126_v37, %v117_v8  ;;  %v233_v33 = vsel %vm223_vm12, %v230_v41, %v232_v47  ;;  %v239_v54 = vand.u32 65535, %v3033_v53 }
  0x2d   :  { %v128_v55 = vmul.u32 %v3019_v34, %v74_v32  ;;  %v236_v56 = vsel %vm224_vm11, %v218_v27, %v235_v51  ;;  %v263_v58 = vand.u32 65535, %v233_v33  ;;  %v264_v62 = vshrl.u32 %v233_v33, 16 }
  0x2e   :  { %vm130_vm14 = vc.u32 %v3115_v45, %v3101_v29  ;;  %v131_v60 = vadd.s32 1, %v127_v25  ;;  %v237_v61 = vsel %vm223_vm12, %v234_v49, %v236_v56  ;;  %v355_v4 = vadd.s32 1, %v3025_v40 }
  0x2f   :  { %v241_v63 = vand.u32 65535, %v237_v61  ;;  %v242_v1 = vshrl.u32 %v237_v61, 16  ;;  %v267_v3 = vmul.u32 %v263_v58, %v240_v38  ;;  %v206_v34 = vshrl.u32 %v2920_v42, %v3044_v0 }
  0x30   :  { %v132_v8 = vsel %vm130_vm14, %v131_v60, %v127_v25  ;;  %v265_v9 = vmul.u32 %v263_v58, %v239_v54  ;;  %v266_v11 = vmul.u32 %v264_v62, %v239_v54  ;;  %v268_v18 = vmul.u32 %v264_v62, %v240_v38 }
  0x31   :  { %v133_v13 = vadd.s32 %v132_v8, %v128_v55  ;;  %v243_v52 = vmul.u32 %v241_v63, %v239_v54  ;;  %v244_v15 = vmul.u32 %v242_v1, %v239_v54  ;;  %v245_v57 = vmul.u32 %v241_v63, %v240_v38 }
  0x32   :  { %v269_v21 = vshll.u32 %v266_v11, 16  ;;  %v271_v22 = vshll.u32 %v267_v3, 16  ;;  %v246_v26 = vmul.u32 %v242_v1, %v240_v38  ;;  %v226_v40 = vsel %vm222_vm10, %v206_v34, %v3081_v35 }
  0x33   :  { %v134_v24 = vadd.s32 536870912, %v133_v13  ;;  %v247_v27 = vshll.u32 %v244_v15, 16  ;;  %v249_v28 = vshll.u32 %v245_v57, 16  ;;  %vm356_vm0 = vcmp.gt.s32.totalorder %v355_v4, 0 }
  0x34   :  { %vm273_vm15 = vc.u32 %v265_v9, %v269_v21  ;;  %v275_v30 = vadd.s32 %v269_v21, %v265_v9  ;;  %v227_v32 = vsel %vm225_vm13, %v215_v23, 2102212464  ;;  %v248_v47 = vshrl.u32 %v244_v15, 16 }
  0x35   :  { %v135_v0 = vshrl.u32 %v134_v24, 30  ;;  %vm251_vm1 = vc.u32 %v243_v52, %v247_v27  ;;  %v253_v39 = vadd.s32 %v247_v27, %v243_v52  ;;  %v274_v31 = vsel %vm273_vm15, 1, %v2919_v14 }
  0x36   :  { %v252_v37 = vsel %vm251_vm1, 1, %v2919_v14  ;;  %v276_v41 = vadd.s32 %v274_v31, %v268_v18  ;;  %vm277_vm2 = vc.u32 %v275_v30, %v271_v22  ;;  %v270_v38 = vshrl.u32 %v266_v11, 16 }
  0x37   :  { %v136_v43 = vshll.u32 %v135_v0, 30  ;;  %v254_v49 = vadd.s32 %v252_v37, %v246_v26  ;;  %vm255_vm3 = vc.u32 %v253_v39, %v249_v28  ;;  %v278_v25 = vsel %vm277_vm2, 1, %v2919_v14 }
  0x38   :  { %v256_v35 = vsel %vm255_vm3, 1, %v2919_v14  ;;  %v357_v33 = vsel %vm356_vm0, %v355_v4, 0  ;;  %v228_v23 = vsel %vm224_vm11, %v3083_v36, %v227_v32  ;;  %v250_v54 = vshrl.u32 %v245_v57, 16 }
  0x39   :  { %v137_v51 = vsub.s32 %v133_v13, %v136_v43  ;;  %v258_v55 = vadd.s32 %v256_v35, %v254_v49  ;;  %v272_v56 = vshrl.u32 %v267_v3, 16  ;;  %v3151_v58 = vadd.s32 %v275_v30, %v271_v22 }
  0x3a   :  { %v280_v60 = vadd.s32 %v278_v25, %v276_v41  ;;  %v359_v63 = vand.u32 31, %v357_v33  ;;  %v229_v1 = vsel %vm223_vm12, %v226_v40, %v228_v23  ;;  %v345_v9 = vand.u32 2147483647, %v3010_v19 }
  0x3b   :  { %vm138_vm4 = vcmp.lt.s32.totalorder %v137_v51, 0  ;;  %v139_v61 = vsub.s32 0, %v137_v51  ;;  %v259_v62 = vadd.s32 %v258_v55, %v248_v47  ;;  %v283_v3 = vmul.u32 %v3033_v53, %v229_v1 }
  0x3c   :  { %v281_v8 = vadd.s32 %v280_v60, %v270_v38  ;;  %v360_v13 = vsub.s32 32, %v359_v63  ;;  %vm37_vm6 = vcmp.lt.s32.totalorder %v2999_v12, 0  ;;  %vm3164_vm7 = vcmp.le.f32.partialorder %v35_v17, 0.7853982 }
  0x3d   :  { %v140_v4 = vsel %vm138_vm4, %v139_v61, %v137_v51  ;;  %v3155_v34 = vadd.s32 %v259_v62, %v250_v54  ;;  %v129_v57 = vadd.s32 %v3101_v29, %v3115_v45  ;;  %v159_v18 = vsub.s32 4, %v135_v0 }
  0x3e   :  { %v141_v36 = vclz %v140_v4  ;;  %v282_v11 = vadd.s32 %v281_v8, %v272_v56  ;;  %v352_v53 = vand.u32 8388607, %v345_v9  ;;  %v365_v21 = vshll.u32 %v2921_v44, %v359_v63 }
  0x3f   :  { %vm285_vm5 = vc.u32 %v3155_v34, %v3151_v58  ;;  %v366_v24 = vshrl.u32 %v2922_v46, %v360_v13  ;;  %v368_v26 = vshll.u32 %v2922_v46, %v359_v63  ;;  %v369_v28 = vshrl.u32 %v2923_v48, %v360_v13 }
  0x40   :  { %v2486_v52 = vadd.s32 4294967294, %v141_v36  ;;  %v286_v15 = vadd.s32 1, %v282_v11  ;;  %v371_v40 = vshll.u32 %v2923_v48, %v359_v63  ;;  %v372_v39 = vshrl.u32 %v2924_v50, %v360_v13 }
  0x41   :  { %v160_v31 = vsel %vm37_vm6, %v159_v18, %v135_v0  ;;  %v358_v37 = vshrl.u32 %v357_v33, 5  ;;  %v362_v41 = vshll.u32 %v2920_v42, %v359_v63  ;;  %v374_v49 = vshll.u32 %v2924_v50, %v359_v63 }
  0x42   :  { %vm2487_vm8 = vcmp.lt.s32.totalorder %v2486_v52, 0  ;;  %v287_v22 = vsel %vm285_vm5, %v286_v15, %v282_v11  ;;  %v375_v35 = vshrl.u32 %v2925_v59, %v360_v13  ;;  %v363_v25 = vshrl.u32 %v2921_v44, %v360_v13 }
  0x43   :  { %v144_v27 = vsel %vm2487_vm8, 0, %v2486_v52  ;;  %v288_v17 = vadd.s32 %v287_v22, %v283_v3  ;;  %v370_v23 = vor.u32 %v369_v28, %v368_v26  ;;  %v373_v56 = vor.u32 %v372_v39, %v371_v40 }
  0x44   :  { %v145_v30 = vsub.s32 32, %v144_v27  ;;  %v146_v29 = vshll.u32 %v137_v51, %v144_v27  ;;  %v149_v45 = vsub.s32 4294967266, %v144_v27  ;;  %v367_v51 = vor.u32 %v366_v24, %v365_v21 }
  0x45   :  { %v289_v32 = vadd.s32 536870912, %v288_v17  ;;  %v376_v0 = vor.u32 %v375_v35, %v374_v49  ;;  %v353_v60 = vor.u32 8388608, %v352_v53  ;;  %vm377_vm9 = vcmp.lt.s32.totalorder %v358_v37, 1 }
  0x46   :  { %v147_v43 = vshrl.u32 %v129_v57, %v145_v30  ;;  %v150_v47 = vadd.s32 127, %v149_v45  ;;  %vm380_vm10 = vcmp.lt.s32.totalorder %v358_v37, 4  ;;  %v162_v63 = vsel %vm3164_vm7, 0, %v160_v31 }
  0x47   :  { %v3183_v38 = vshrl.u32 %v289_v32, 30  ;;  %v361_v1 = vshrl.u32 %v2920_v42, %v360_v13  ;;  %v364_v4 = vor.u32 %v363_v25, %v362_v41  ;;  %vm378_vm11 = vcmp.lt.s32.totalorder %v358_v37, 2 }
  0x48   :  { %v148_v54 = vor.u32 %v147_v43, %v146_v29  ;;  %v151_v55 = vshll.u32 %v150_v47, 23  ;;  %vm379_vm12 = vcmp.lt.s32.totalorder %v358_v37, 3  ;;  %v386_v11 = vsel %vm380_vm10, %v373_v56, 920167782 }
  0x49   :  { %v291_v33 = vshll.u32 %v3183_v38, 30  ;;  %v389_v3 = vsel %vm377_vm9, %v367_v51, %v370_v23  ;;  %v390_v52 = vsel %vm380_vm10, %v376_v0, 1326507024  ;;  %v179_v15 = vadd.s32 3, %v162_v63 }
  0x4a   :  { %v152_v61 = vor.u32 4788187, %v151_v55  ;;  %v155_v62 = vcvt.s32.f32 %v148_v54  ;;  %v382_v18 = vsel %vm380_vm10, %v370_v23, 2102212464  ;;  %vm192_vm14 = vcmp.lt.s32.totalorder %v3005_v16, 0  ;;  %v3231_v55 = vld [vmem:[%s4102_s0 + $0x18] sm:$0xff] }
  0x4b   :  { %v3190_v8 = vsub.s32 %v288_v17, %v291_v33  ;;  %v381_v53 = vsel %vm377_vm9, %v361_v1, %v364_v4  ;;  %v391_v21 = vsel %vm379_vm12, %v373_v56, %v390_v52  ;;  %v3201_v22 = vshll.u32 %v353_v60, 8 }
  0x4c   :  { %v153_v36 = vand.u32 2147483647, %v152_v61  ;;  %v385_v26 = vsel %vm377_vm9, %v364_v4, %v367_v51  ;;  %v387_v27 = vsel %vm379_vm12, %v370_v23, %v386_v11  ;;  %v392_v17 = vsel %vm378_vm11, %v389_v3, %v391_v21 }
  0x4d   :  { %vm293_vm13 = vcmp.lt.s32.totalorder %v3190_v8, 0  ;;  %v294_v57 = vsub.s32 0, %v3190_v8  ;;  %v383_v30 = vsel %vm379_vm12, %v367_v51, %v382_v18  ;;  %v394_v29 = vand.u32 65535, %v3201_v22 }
  0x4e   :  { %v156_v13 = vmul.f32 %v155_v62, %v153_v36  ;;  %v284_v45 = vadd.s32 %v3151_v58, %v3155_v34  ;;  %v395_v39 = vshrl.u32 %v3201_v22, 16  ;;  %v396_v31 = vand.u32 65535, %v392_v17 }
  0x4f   :  { %v295_v24 = vsel %vm293_vm13, %v294_v57, %v3190_v8  ;;  %v397_v32 = vshrl.u32 %v392_v17, 16  ;;  %v3214_v43 = vand.u32 3, %v179_v15  ;;  %v388_v49 = vsel %vm378_vm11, %v385_v26, %v387_v27 }
  0x50   :  { %v157_v28 = vxor.u32 2147483648, %v156_v13  ;;  %v296_v40 = vclz %v295_v24  ;;  %v314_v25 = vsub.s32 4, %v3183_v38  ;;  %v3224_v58 = vsel %vm378_vm11, %v381_v53, %v383_v30 }
  0x51   :  { %v399_v34 = vmul.u32 %v397_v32, %v394_v29  ;;  %v398_v23 = vmul.u32 %v396_v31, %v394_v29  ;;  %v418_v54 = vand.u32 65535, %v388_v49  ;;  %v3233_v56 = vmul.u32 %v396_v31, %v395_v39 }
  0x52   :  { %v158_v41 = vsel %vm37_vm6, %v157_v28, %v156_v13  ;;  %v2489_v47 = vadd.s32 4294967294, %v296_v40  ;;  %v419_v33 = vshrl.u32 %v388_v49, 16  ;;  %v3239_v1 = vsel %vm192_vm14, %v314_v25, %v3183_v38 }
  0x53   :  { %v3220_v35 = vsel %vm3164_vm7, %v2999_v12, %v158_v41  ;;  %v402_v0 = vshll.u32 %v399_v34, 16  ;;  %v401_v4 = vmul.u32 %v397_v32, %v395_v39  ;;  %v29_v36 = vmul.f32 %v2979_v5, %v3231_v55 }
  0x54   :  { %v163_v51 = vmul.f32 %v3220_v35, %v3220_v35  ;;  %vm2490_vm15 = vcmp.lt.s32.totalorder %v2489_v47, 0  ;;  %vm185_vm1 = vcmp.eq.s32.totalorder %v3214_v43, 2  ;;  %v404_v57 = vshll.u32 %v3233_v56, 16 }
  0x55   :  { %v299_v10 = vsel %vm2490_vm15, 0, %v2489_v47  ;;  %vm406_vm0 = vc.u32 %v398_v23, %v402_v0  ;;  %v421_v18 = vmul.u32 %v419_v33, %v394_v29  ;;  %v403_v38 = vshrl.u32 %v399_v34, 16 }
  0x56   :  { %v164_v37 = vmul.f32 -0.001358992, %v163_v51  ;;  %v171_v60 = vmul.f32 -0.00019511016, %v163_v51  ;;  %v300_v61 = vsub.s32 32, %v299_v10  ;;  %v301_v62 = vshll.u32 %v3190_v8, %v299_v10 }
  0x57   :  { %v304_v63 = vsub.s32 4294967266, %v299_v10  ;;  %v420_v8 = vmul.u32 %v418_v54, %v394_v29  ;;  %vm182_vm2 = vcmp.eq.s32.totalorder %v3214_v43, 0  ;;  %vm3248_vm3 = vcmp.le.f32.partialorder %v190_v20, 0.7853982 }
  0x58   :  { %v165_v11 = vadd.f32 0.041655596, %v164_v37  ;;  %v172_v3 = vadd.f32 0.008332121, %v171_v60  ;;  %v302_v52 = vshrl.u32 %v284_v45, %v300_v61  ;;  %v407_v26 = vsel %vm406_vm0, 1, %v2919_v14 }
  0x59   :  { %v305_v15 = vadd.s32 127, %v304_v63  ;;  %v408_v27 = vadd.s32 %v402_v0, %v398_v23  ;;  %v422_v17 = vmul.u32 %v418_v54, %v395_v39  ;;  %vm181_vm4 = vcmp.lt.s32.totalorder %v3214_v43, 2 }
  0x5a   :  { %v166_v13 = vmul.f32 %v165_v11, %v163_v51  ;;  %v173_v53 = vmul.f32 %v172_v3, %v163_v51  ;;  %v303_v21 = vor.u32 %v302_v52, %v301_v62  ;;  %v405_v30 = vshrl.u32 %v3233_v56, 16 }
  0x5b   :  { %v306_v24 = vshll.u32 %v305_v15, 23  ;;  %v409_v29 = vadd.s32 %v407_v26, %v401_v4  ;;  %vm178_vm5 = vweird.f32 %v2999_v12  ;;  %vm410_vm6 = vc.u32 %v408_v27, %v404_v57 }
  0x5c   :  { %v167_v28 = vadd.f32 -0.4999988, %v166_v13  ;;  %v174_v40 = vadd.f32 -0.16666654, %v173_v53  ;;  %v310_v31 = vcvt.s32.f32 %v303_v21  ;;  %v424_v20 = vshll.u32 %v421_v18, 16 }
  0x5d   :  { %v307_v45 = vor.u32 4788187, %v306_v24  ;;  %v411_v47 = vsel %vm410_vm6, 1, %v2919_v14  ;;  %v423_v49 = vmul.u32 %v419_v33, %v395_v39  ;;  %v425_v23 = vshrl.u32 %v421_v18, 16  ;;  %v3265_v39 = vld [vmem:[%s4106_s4 + $0x2] ss:$0 sm:$0xff] }
  0x5e   :  { %v168_v32 = vmul.f32 %v167_v28, %v163_v51  ;;  %v175_v41 = vmul.f32 %v174_v40, %v163_v51  ;;  %v413_v34 = vadd.s32 %v411_v47, %v409_v29  ;;  %v426_v54 = vshll.u32 %v422_v17, 16 }
  0x5f   :  { %v308_v25 = vand.u32 2147483647, %v307_v45  ;;  %vm428_vm7 = vc.u32 %v420_v8, %v424_v20  ;;  %v430_v56 = vadd.s32 %v424_v20, %v420_v8  ;;  %v3259_v62 = vadd.f32 %v2984_v6, %v29_v36 }
  0x60   :  { %v169_v10 = vadd.f32 1.0, %v168_v32  ;;  %v176_v0 = vadd.f32 1.0, %v175_v41  ;;  %v414_v60 = vadd.s32 %v413_v34, %v403_v38  ;;  %v429_v61 = vsel %vm428_vm7, 1, %v2919_v14 }
  0x61   :  { %v311_v37 = vmul.f32 %v310_v31, %v308_v25  ;;  %v431_v33 = vadd.s32 %v429_v61, %v423_v49  ;;  %vm432_vm8 = vc.u32 %v430_v56, %v426_v54  ;;  %v427_v3 = vshrl.u32 %v422_v17, 16 }
  0x62   :  { %v177_v51 = vmul.f32 %v176_v0, %v3220_v35  ;;  %v186_v63 = vxor.u32 2147483648, %v169_v10  ;;  %v3267_v11 = vadd.s32 %v414_v60, %v405_v30  ;;  %v433_v52 = vsel %vm432_vm8, 1, %v2919_v14 }
  0x63   :  { %v312_v4 = vxor.u32 2147483648, %v311_v37  ;;  %v3272_v36 = vadd.s32 %v430_v56, %v426_v54  ;;  %v435_v35 = vadd.s32 %v433_v52, %v431_v33  ;;  %v656_v57 = vmul.f32 %v3265_v39, %v2974_v2 }
  0x64   :  { %v183_v15 = vxor.u32 2147483648, %v177_v51  ;;  %v187_v6 = vsel %vm185_vm1, %v186_v63, %v177_v51  ;;  %v317_v18 = vsel %vm3248_vm3, 0, %v3239_v1  ;;  %v503_v13 = vand.u32 2139095040, %v3259_v62 }
  0x65   :  { %v313_v8 = vsel %vm192_vm14, %v312_v4, %v311_v37  ;;  %vm673_vm9 = vcmask 261120   ;;  %v436_v38 = vadd.s32 %v435_v35, %v425_v23  ;;  %v438_v26 = vmul.u32 %v3201_v22, %v3224_v58 }
  0x66   :  { %v184_v53 = vsel %vm182_vm2, %v169_v10, %v183_v15  ;;  %v316_v21 = vsel %vm3248_vm3, %v3005_v16, %v313_v8  ;;  %v504_v27 = vshrl.u32 %v503_v13, 23  ;;  %v334_v17 = vadd.s32 3, %v317_v18 }
  0x67   :  { %v188_v2 = vsel %vm181_vm4, %v184_v53, %v187_v6  ;;  %v318_v24 = vmul.f32 %v316_v21, %v316_v21  ;;  %v437_v28 = vadd.s32 %v436_v38, %v427_v3  ;;  %vm440_vm10 = vc.u32 %v3267_v11, %v3272_v36 }
  0x68   :  { %v189_v1 = vsel %vm178_vm5, nan, %v188_v2  ;;  %v2494_v29 = vadd.s32 4294967169, %v504_v27  ;;  %v500_v43 = vand.u32 2147483647, %v3259_v62  ;;  %v335_v20 = vand.u32 3, %v334_v17 }
  0x69   :  { %v660_v40 = vadd.f32 %v656_v57, %v189_v1  ;;  %v319_v5 = vmul.f32 -0.001358992, %v318_v24  ;;  %v326_v30 = vmul.f32 -0.00019511016, %v318_v24  ;;  %v441_v45 = vadd.s32 1, %v437_v28 }
  0x6a   :  { %v510_v58 = vadd.s32 1, %v2494_v29  ;;  %v507_v49 = vand.u32 8388607, %v500_v43  ;;  %vm333_vm12 = vweird.f32 %v3005_v16  ;;  %vm336_vm13 = vcmp.lt.s32.totalorder %v335_v20, 2 }
  0x6b   :  { %2497 = vmatmul.msk.f32.vlgmr.msra.gmra.mxu0 %vm673_vm9, %v660_v40  ;;  %v320_v31 = vadd.f32 0.041655596, %v319_v5  ;;  %v327_v22 = vadd.f32 0.008332121, %v326_v30  ;;  %v442_v12 = vsel %vm440_vm10, %v441_v45, %v437_v28  ;;  %vm337_vm14 = vcmp.eq.s32.totalorder %v335_v20, 0 }
  0x6c   :  { %v443_v47 = vadd.s32 %v442_v12, %v438_v26  ;;  %vm511_vm11 = vcmp.gt.s32.totalorder %v510_v58, 0  ;;  %v508_v60 = vor.u32 8388608, %v507_v49  ;;  %vm340_vm15 = vcmp.eq.s32.totalorder %v335_v20, 2 }
  0x6d   :  { %v321_v32 = vmul.f32 %v320_v31, %v318_v24  ;;  %v328_v41 = vmul.f32 %v327_v22, %v318_v24  ;;  %v512_v25 = vsel %vm511_vm11, %v510_v58, 0  ;;  %v657_v53 = vmul.f32 %v3265_v39, %v2989_v7 }
  0x6e   :  { %v444_v54 = vadd.s32 536870912, %v443_v47  ;;  %v514_v10 = vand.u32 31, %v512_v25  ;;  %v3307_v52 = vshrl.u32 %v512_v25, 5  ;;  %v439_v58 = vadd.s32 %v3272_v36, %v3267_v11 }
  0x6f   :  { %v322_v34 = vadd.f32 -0.4999988, %v321_v32  ;;  %v329_v23 = vadd.f32 -0.16666654, %v328_v41  ;;  %vm347_vm6 = vcmp.lt.s32.totalorder %v3010_v19, 0 }
  0x70   :  { %v3300_v37 = vshrl.u32 %v444_v54, 30  ;;  %v3302_v61 = vsub.s32 32, %v514_v10  ;;  %v517_v51 = vshll.u32 %v2920_v42, %v514_v10  ;;  %v520_v63 = vshll.u32 %v2921_v44, %v514_v10 }
  0x71   :  { %v323_v0 = vmul.f32 %v322_v34, %v318_v24  ;;  %v330_v56 = vmul.f32 %v329_v23, %v318_v24  ;;  %v523_v35 = vshll.u32 %v2922_v46, %v514_v10  ;;  %v3322_v24 = vshll.u32 %v508_v60, 8 }
  0x72   :  { %v446_v3 = vshll.u32 %v3300_v37, 30  ;;  %v518_v15 = vshrl.u32 %v2921_v44, %v3302_v61  ;;  %v521_v6 = vshrl.u32 %v2922_v46, %v3302_v61  ;;  %v524_v13 = vshrl.u32 %v2923_v48, %v3302_v61 }
  0x73   :  { %v324_v33 = vadd.f32 1.0, %v323_v0  ;;  %v331_v4 = vadd.f32 1.0, %v330_v56  ;;  %v526_v46 = vshll.u32 %v2923_v48, %v514_v10  ;;  %v529_v1 = vshll.u32 %v2924_v50, %v514_v10 }
  0x74   :  { %v447_v18 = vsub.s32 %v443_v47, %v446_v3  ;;  %v3318_v38 = vor.u32 %v518_v15, %v517_v51  ;;  %v3320_v2 = vor.u32 %v521_v6, %v520_v63  ;;  %v530_v7 = vshrl.u32 %v2925_v59, %v3302_v61 }
  0x75   :  { %v332_v57 = vmul.f32 %v331_v4, %v316_v21  ;;  %v341_v8 = vxor.u32 2147483648, %v324_v33  ;;  %v527_v21 = vshrl.u32 %v2924_v50, %v3302_v61  ;;  %v3331_v40 = vor.u32 %v524_v13, %v523_v35 }
  0x76   :  { %vm448_vm0 = vcmp.lt.s32.totalorder %v447_v18, 0  ;;  %v449_v27 = vsub.s32 0, %v447_v18  ;;  %vm532_vm1 = vcmp.lt.s32.totalorder %v3307_v52, 1  ;;  %vm534_vm2 = vcmp.lt.s32.totalorder %v3307_v52, 3 }
  0x77   :  { %v338_v44 = vxor.u32 2147483648, %v332_v57  ;;  %v342_v26 = vsel %vm340_vm15, %v341_v8, %v332_v57  ;;  %v528_v29 = vor.u32 %v527_v21, %v526_v46  ;;  %v531_v50 = vor.u32 %v530_v7, %v529_v1 }
  0x78   :  { %v450_v28 = vsel %vm448_vm0, %v449_v27, %v447_v18  ;;  %vm533_vm3 = vcmp.lt.s32.totalorder %v3307_v52, 2  ;;  %vm535_vm4 = vcmp.lt.s32.totalorder %v3307_v52, 4  ;;  %v540_v31 = vsel %vm532_vm1, %v3318_v38, %v3320_v2 }
  0x79   :  { %v339_v17 = vsel %vm337_vm14, %v324_v33, %v338_v44  ;;  %v451_v30 = vclz %v450_v28  ;;  %v541_v22 = vsel %vm535_vm4, %v528_v29, 920167782  ;;  %v544_v20 = vsel %vm532_vm1, %v3320_v2, %v3331_v40 }
  0x7a   :  { %v343_v5 = vsel %vm336_vm13, %v339_v17, %v342_v26  ;;  %v542_v16 = vsel %vm534_vm2, %v3331_v40, %v541_v22  ;;  %v545_v41 = vsel %vm535_vm4, %v531_v50, 1326507024  ;;  %v549_v47 = vand.u32 65535, %v3322_v24 }
  0x7b   :  { %v344_v48 = vsel %vm333_vm12, nan, %v343_v5  ;;  %v2492_v45 = vadd.s32 4294967294, %v451_v30  ;;  %v543_v32 = vsel %vm533_vm3, %v540_v31, %v542_v16  ;;  %v546_v11 = vsel %vm534_vm2, %v528_v29, %v545_v41 }
  0x7c   :  { %v661_v59 = vadd.f32 %v657_v53, %v344_v48  ;;  %v547_v36 = vsel %vm533_vm3, %v544_v20, %v546_v11  ;;  %v550_v23 = vshrl.u32 %v3322_v24, 16  ;;  %v573_v54 = vand.u32 65535, %v543_v32 }
  0x7d   :  { %vm2493_vm5 = vcmp.lt.s32.totalorder %v2492_v45, 0  ;;  %v551_v56 = vand.u32 65535, %v547_v36  ;;  %v552_v60 = vshrl.u32 %v547_v36, 16  ;;  %v574_v51 = vshrl.u32 %v543_v32, 16 }
  0x7e   :  { %2498 = vmatmul.msk.f32.gmra.mxu0 %vm673_vm9, %v661_v59  ;;  %v454_v12 = vsel %vm2493_vm5, 0, %v2492_v45  ;;  %v575_v6 = vmul.u32 %v573_v54, %v549_v47  ;;  %v577_v57 = vmul.u32 %v573_v54, %v550_v23  ;;  %vm3369_vm7 = vcmp.le.f32.partialorder %v345_v9, 0.7853982 }
  0x7f   :  { %v455_v49 = vsub.s32 32, %v454_v12  ;;  %v456_v25 = vshll.u32 %v447_v18, %v454_v12  ;;  %v459_v34 = vsub.s32 4294967266, %v454_v12  ;;  %v553_v4 = vmul.u32 %v551_v56, %v549_v47 }
  0x80   :  { %v554_v3 = vmul.u32 %v552_v60, %v549_v47  ;;  %v555_v15 = vmul.u32 %v551_v56, %v550_v23  ;;  %v576_v35 = vmul.u32 %v574_v51, %v549_v47  ;;  %v556_v13 = vmul.u32 %v552_v60, %v550_v23 }
  0x81   :  { %v457_v10 = vshrl.u32 %v439_v58, %v455_v49  ;;  %v460_v0 = vadd.s32 127, %v459_v34  ;;  %v469_v26 = vsub.s32 4, %v3300_v37  ;;  %v578_v46 = vmul.u32 %v574_v51, %v550_v23 }
  0x82   :  { %v557_v53 = vshll.u32 %v554_v3, 16  ;;  %v559_v27 = vshll.u32 %v555_v15, 16  ;;  %v579_v7 = vshll.u32 %v576_v35, 16  ;;  %v516_v17 = vshrl.u32 %v2920_v42, %v3302_v61 }
  0x83   :  { %v458_v63 = vor.u32 %v457_v10, %v456_v25  ;;  %v461_v33 = vshll.u32 %v460_v0, 23  ;;  %v558_v28 = vshrl.u32 %v554_v3, 16  ;;  %v581_v30 = vshll.u32 %v577_v57, 16 }
  0x84   :  { %vm561_vm8 = vc.u32 %v553_v4, %v557_v53  ;;  %v563_v1 = vadd.s32 %v557_v53, %v553_v4  ;;  %vm583_vm11 = vc.u32 %v575_v6, %v579_v7  ;;  %v537_v48 = vsel %vm535_vm4, %v3331_v40, 2102212464 }
  0x85   :  { %v462_v8 = vor.u32 4788187, %v461_v33  ;;  %v465_v18 = vcvt.s32.f32 %v458_v63  ;;  %v562_v5 = vsel %vm561_vm8, 1, %v2919_v14  ;;  %v584_v59 = vsel %vm583_vm11, 1, %v2919_v14 }
  0x86   :  { %v564_v9 = vadd.s32 %v562_v5, %v556_v13  ;;  %vm565_vm10 = vc.u32 %v563_v1, %v559_v27  ;;  %v585_v45 = vadd.s32 %v579_v7, %v575_v6  ;;  %v560_v22 = vshrl.u32 %v555_v15, 16  ;;  %v2892_v1 = vld [vmem:[%s4102_s0 + $0x10] sm:$0xff]  ;;  %s2928_s0 = smov 80  }
  0x87   :  { %v463_v21 = vand.u32 2147483647, %v462_v8  ;;  %v566_v50 = vsel %vm565_vm10, 1, %v2919_v14  ;;  %v586_v61 = vadd.s32 %v584_v59, %v578_v46  ;;  %v536_v16 = vsel %vm532_vm1, %v516_v17, %v3318_v38 }
  0x88   :  { %v568_v42 = vadd.s32 %v566_v50, %v564_v9  ;;  %v580_v58 = vshrl.u32 %v576_v35, 16  ;;  %vm587_vm12 = vc.u32 %v585_v45, %v581_v30  ;;  %v538_v40 = vsel %vm534_vm2, %v3320_v2, %v537_v48 }
  0x89   :  { %v466_v29 = vmul.f32 %v465_v18, %v463_v21  ;;  %v588_v32 = vsel %vm587_vm12, 1, %v2919_v14  ;;  %v470_v41 = vsel %vm347_vm6, %v469_v26, %v3300_v37  ;;  %v582_v47 = vshrl.u32 %v577_v57, 16 }
  0x8a   :  { %v569_v12 = vadd.s32 %v568_v42, %v558_v28  ;;  %v590_v49 = vadd.s32 %v588_v32, %v586_v61  ;;  %v589_v11 = vadd.s32 %v585_v45, %v581_v30  ;;  %v539_v36 = vsel %vm533_vm3, %v536_v16, %v538_v40 }
  0x8b   :  { %v467_v31 = vxor.u32 2147483648, %v466_v29  ;;  %v472_v14 = vsel %vm3369_vm7, 0, %v470_v41  ;;  %v593_v56 = vmul.u32 %v3322_v24, %v539_v36  ;;  %vm488_vm1 = vweird.f32 %v3010_v19 }
  0x8c   :  { %v570_v34 = vadd.s32 %v569_v12, %v560_v22  ;;  %v591_v2 = vadd.s32 %v590_v49, %v580_v58  ;;  %v489_v60 = vadd.s32 3, %v472_v14  ;;  %v658_v7 = vmul.f32 %v2892_v1, %v3265_v39 }
  0x8d   :  { %v468_v20 = vsel %vm347_vm6, %v467_v31, %v466_v29  ;;  %vm502_vm4 = vcmp.lt.s32.totalorder %v3259_v62, 0  ;;  %vm501_vm5 = vcmp.le.f32.partialorder %v500_v43, 0.7853982  ;;  %vm643_vm10 = vweird.f32 %v3259_v62 }
  0x8e   :  { %v471_v38 = vsel %vm3369_vm7, %v3010_v19, %v468_v20  ;;  %v592_v10 = vadd.s32 %v591_v2, %v582_v47  ;;  %vm595_vm13 = vc.u32 %v570_v34, %v589_v11  ;;  %v490_v6 = vand.u32 3, %v489_v60 }
  0x8f   :  { %v473_v25 = vmul.f32 %v471_v38, %v471_v38  ;;  %v594_v59 = vadd.s32 %v589_v11, %v570_v34 }
  0x90   :  { %v596_v51 = vadd.s32 1, %v592_v10  ;;  %vm495_vm14 = vcmp.eq.s32.totalorder %v490_v6, 2  ;;  %vm492_vm15 = vcmp.eq.s32.totalorder %v490_v6, 0  ;;  %vm491_vm0 = vcmp.lt.s32.totalorder %v490_v6, 2 }
  0x91   :  { %v474_v23 = vmul.f32 -0.001358992, %v473_v25  ;;  %v481_v54 = vmul.f32 -0.00019511016, %v473_v25  ;;  %v659_v6 = vmul.f32 %v3265_v39, %v3231_v55 }
  0x92   :  { %v597_v4 = vsel %vm595_vm13, %v596_v51, %v592_v10 }
  0x93   :  { %v475_v37 = vadd.f32 0.041655596, %v474_v23  ;;  %v482_v0 = vadd.f32 0.008332121, %v481_v54  ;;  %v598_v15 = vadd.s32 %v597_v4, %v593_v56 }
  0x95   :  { %v476_v63 = vmul.f32 %v475_v37, %v473_v25  ;;  %v483_v33 = vmul.f32 %v482_v0, %v473_v25  ;;  %v599_v8 = vadd.s32 536870912, %v598_v15 }
  0x97   :  { %v477_v3 = vadd.f32 -0.4999988, %v476_v63  ;;  %v484_v52 = vadd.f32 -0.16666654, %v483_v33  ;;  %v600_v53 = vshrl.u32 %v599_v8, 30 }
  0x99   :  { %v478_v35 = vmul.f32 %v477_v3, %v473_v25  ;;  %v485_v57 = vmul.f32 %v484_v52, %v473_v25  ;;  %v601_v24 = vshll.u32 %v600_v53, 30  ;;  %v624_v41 = vsub.s32 4, %v600_v53 }
  0x9b   :  { %v479_v18 = vadd.f32 1.0, %v478_v35  ;;  %v486_v13 = vadd.f32 1.0, %v485_v57  ;;  %v602_v21 = vsub.s32 %v598_v15, %v601_v24  ;;  %v625_v49 = vsel %vm502_vm4, %v624_v41, %v600_v53  ;;  %v3419_v53 = vld [vmem:[%s4106_s4 + $0x3] ss:$0 sm:$0xff] }
  0x9c   :  { %v627_v11 = vsel %vm501_vm5, 0, %v625_v49 }
  0x9d   :  { %v487_v44 = vmul.f32 %v486_v13, %v471_v38  ;;  %v496_v26 = vxor.u32 2147483648, %v479_v18  ;;  %vm603_vm2 = vcmp.lt.s32.totalorder %v602_v21, 0  ;;  %v604_v28 = vsub.s32 0, %v602_v21 }
  0x9e   :  { %v644_v54 = vadd.s32 3, %v627_v11  ;;  %v2694_v11 = vld [vmem:[%s4105_s3 + $0x50] sm:$0xff]  }
  0x9f   :  { %v493_v27 = vxor.u32 2147483648, %v487_v44  ;;  %v497_v46 = vsel %vm495_vm14, %v496_v26, %v487_v44  ;;  %v605_v29 = vsel %vm603_vm2, %v604_v28, %v602_v21  ;;  %vm812_vm2 = vcmask 523264  }
  0xa0   :  { %v606_v48 = vclz %v605_v29  ;;  %v645_v60 = vand.u32 3, %v644_v54  ;;  %v2583_v54 = vunpack.c.l.bf16 %v2694_v11 }
  0xa1   :  { %v494_v17 = vsel %vm492_vm15, %v479_v18, %v493_v27 }
  0xa2   :  { %v498_v5 = vsel %vm491_vm0, %v494_v17, %v497_v46  ;;  %v2495_v50 = vadd.s32 4294967294, %v606_v48  ;;  %vm650_vm6 = vcmp.eq.s32.totalorder %v645_v60, 2  ;;  %vm647_vm7 = vcmp.eq.s32.totalorder %v645_v60, 0 }
  0xa3   :  { %v499_v30 = vsel %vm488_vm1, nan, %v498_v5  ;;  %vm646_vm8 = vcmp.lt.s32.totalorder %v645_v60, 2  ;;  %v2697_v5 = vld [vmem:[%s4105_s3 + $0x68] sm:$0xff]  }
  0xa4   :  { %v662_v9 = vadd.f32 %v658_v7, %v499_v30  ;;  %vm2496_vm3 = vcmp.lt.s32.totalorder %v2495_v50, 0  ;;  %v2696_v30 = vld [vmem:[%s4105_s3 + $0x60] sm:$0xff]   ;;  %v2595_v48 = vunpack.c.l.bf16 %v2697_v5 }
  0xa5   :  { %v609_v19 = vsel %vm2496_vm3, 0, %v2495_v50 }
  0xa6   :  { %2499 = vmatmul.msk.f32.gmra.mxu0 %vm673_vm9, %v662_v9  ;;  %v610_v45 = vsub.s32 32, %v609_v19  ;;  %v611_v31 = vshll.u32 %v602_v21, %v609_v19  ;;  %v614_v22 = vsub.s32 4294967266, %v609_v19  ;;  %v2596_v9 = vunpack.c.h.bf16 %v2697_v5 }
  0xa8   :  { %v612_v42 = vshrl.u32 %v594_v59, %v610_v45  ;;  %v615_v61 = vadd.s32 127, %v614_v22  ;;  %833 = vmatpush.msra.mxu1 %v2596_v9  ;;  %v2592_v45 = vunpack.c.h.bf16 %v2696_v30 }
  0xaa   :  { %v613_v16 = vor.u32 %v612_v42, %v611_v31  ;;  %v616_v58 = vshll.u32 %v615_v61, 23  ;;  %834 = vmatpush.msra.mxu1 %v2595_v48 }
  0xac   :  { %v617_v20 = vor.u32 4788187, %v616_v58  ;;  %v620_v40 = vcvt.s32.f32 %v613_v16  ;;  %835 = vmatpush.msra.mxu1 %v2592_v45  ;;  %v2591_v58 = vunpack.c.l.bf16 %v2696_v30 }
  0xae   :  { %v618_v12 = vand.u32 2147483647, %v617_v20  ;;  %836 = vmatpush.msra.mxu1 %v2591_v58 }
  0xb0   :  { %v621_v32 = vmul.f32 %v620_v40, %v618_v12  ;;  %v2695_v12 = vld [vmem:[%s4105_s3 + $0x58] sm:$0xff]  }
  0xb2   :  { %v622_v38 = vxor.u32 2147483648, %v621_v32 }
  0xb4   :  { %v623_v47 = vsel %vm502_vm4, %v622_v38, %v621_v32  ;;  %v2588_v38 = vunpack.c.h.bf16 %v2695_v12 }
  0xb5   :  { %v626_v25 = vsel %vm501_vm5, %v3259_v62, %v623_v47 }
  0xb6   :  { %v628_v34 = vmul.f32 %v626_v25, %v626_v25  ;;  %837 = vmatpush.msra.mxu1 %v2588_v38 }
  0xb8   :  { %v629_v36 = vmul.f32 -0.001358992, %v628_v34  ;;  %v636_v2 = vmul.f32 -0.00019511016, %v628_v34 }
  0xba   :  { %v630_v14 = vadd.f32 0.041655596, %v629_v36  ;;  %v637_v23 = vadd.f32 0.008332121, %v636_v2  ;;  %v2584_v2 = vunpack.c.h.bf16 %v2694_v11 }
  0xbc   :  { %v631_v10 = vmul.f32 %v630_v14, %v628_v34  ;;  %v638_v37 = vmul.f32 %v637_v23, %v628_v34 }
  0xbe   :  { %v632_v0 = vadd.f32 -0.4999988, %v631_v10  ;;  %v639_v56 = vadd.f32 -0.16666654, %v638_v37 }
  0xc0   :  { %v633_v51 = vmul.f32 %v632_v0, %v628_v34  ;;  %v640_v63 = vmul.f32 %v639_v56, %v628_v34 }
  0xc2   :  { %v634_v43 = vadd.f32 1.0, %v633_v51  ;;  %v641_v33 = vadd.f32 1.0, %v640_v63 }
  0xc4   :  { %v642_v4 = vmul.f32 %v641_v33, %v626_v25  ;;  %v651_v3 = vxor.u32 2147483648, %v634_v43  ;;  %v2587_v25 = vunpack.c.l.bf16 %v2695_v12 }
  0xc6   :  { %v648_v52 = vxor.u32 2147483648, %v642_v4  ;;  %v652_v15 = vsel %vm650_vm6, %v651_v3, %v642_v4  ;;  %838 = vmatpush.msra.mxu1 %v2587_v25  ;;  %v1080_v25 = vld [vmem:[%s4104_s2 + $0x48] sm:$0xf] }
  0xc7   :  { %v1088_v11 = vunpack.c.l.bf16 %v1080_v25  ;;  %v2701_v25 = vld [vmem:[%s4105_s3 + $0x28] sm:$0xff]  }
  0xc8   :  { %v649_v35 = vsel %vm647_vm7, %v634_v43, %v648_v52  ;;  %839 = vmatpush.msra.mxu1 %v2584_v2 }
  0xc9   :  { %v653_v57 = vsel %vm646_vm8, %v649_v35, %v652_v15 }
  0xca   :  { %v654_v8 = vsel %vm643_vm10, nan, %v653_v57  ;;  %840 = vmatpush.msra.mxu1 %v2583_v54 }
  0xcb   :  { %v663_v18 = vadd.f32 %v659_v6, %v654_v8 }
  0xcd   :  { %2500 = vmatmul.msk.f32.gmra.mxu0 %vm673_vm9, %v663_v18  ;;  %v3451_v18 = vld [vmem:[%s4103_s1 + $0x8] sm:$0xff] }
  0xe8   :  { %v703_v13 = vpop.f32.mrf.mxu0 }
  0xe9   :  { %v704_v44 = vadd.f32 %v703_v13, %v3419_v53  ;;  %v3456_v13 = vld [vmem:[%s4103_s1] sm:$0xff] }
  0xeb   :  { %v2501_v26 = vmul.f32 -1.442695, %v704_v44 }
  0xed   :  { %2768 = vpow2.f32 %v2501_v26  ;;  %v1020_v26 = vsel %vm812_vm2, %v3456_v13, 0.0 }
  0xee   :  { %1021 = vadd.xlane.f32.xlu2 %v1020_v26 }
  0xf3   :  { %v2769_v39 = vpop.eup %2768 }
  0xf4   :  { %v727_v27 = vadd.f32 1.0, %v2769_v39 }
  0xf6   :  { %v742_v61 = vand.u32 2147483648, %v727_v27  ;;  %vm736_vm12 = vweird.f32 %v727_v27  ;;  %v740_v16 = vand.u32 2147483647, %v727_v27 }
  0xf8   :  { %v743_v41 = vor.u32 1.1754944e-38, %v742_v61  ;;  %vm741_vm14 = vcmp.eq.f32.partialorder %v740_v16, 8.507059e+37 }
  0xfb   :  { %v706_v24 = vpop.f32.mrf.mxu0 }
  0xfc   :  { %v3423_v62 = vadd.f32 %v706_v24, %v3419_v53 }
  0xfe   :  { %v2502_v55 = vmul.f32 -1.442695, %v3423_v62 }
 0x100   :  { %2770 = vpow2.f32 %v2502_v55 }
 0x101   :  { %2772 = vrcp.f32 %v727_v27 }
 0x106   :  { %v2771_v46 = vpop.eup %2770 }
 0x107   :  { %v728_v21 = vadd.f32 1.0, %v2771_v46  ;;  %v2773_v1 = vpop.eup %2772 }
 0x108   :  { %v732_v7 = vmul.f32 %v2773_v1, %v727_v27  ;;  %vm737_vm11 = vweird.f32 %v2773_v1 }
 0x109   :  { %2774 = vrcp.f32 %v728_v21  ;;  %vm738_vm13 = vmor %vm736_vm12, %vm737_vm11  ;;  %vm751_vm15 = vweird.f32 %v728_v21  ;;  %v757_v36 = vand.u32 2147483648, %v728_v21  ;;  %v755_v23 = vand.u32 2147483647, %v728_v21 }
 0x10a   :  { %v733_v17 = vsub.f32 1.0, %v732_v7 }
 0x10b   :  { %v758_v37 = vor.u32 1.1754944e-38, %v757_v36  ;;  %vm756_vm3 = vcmp.eq.f32.partialorder %v755_v23, 8.507059e+37  ;;  %v1079_v36 = vld [vmem:[%s4104_s2 + $0x3c] sm:$0xf] }
 0x10c   :  { %v734_v59 = vmul.f32 %v2773_v1, %v733_v17  ;;  %v1087_v23 = vunpack.c.l.bf16 %v1079_v36  ;;  %v2612_v36 = vunpack.c.h.bf16 %v2701_v25 }
 0x10e   :  { %v735_v22 = vadd.f32 %v2773_v1, %v734_v59  ;;  %v811_v59 = vld [vmem:[%s4106_s4 + $0x4] ss:$0 sm:$0xff]  ;;  %997 = vmatpush.msra.mxu2 %v2612_v36 }
 0x10f   :  { %v2775_v28 = vpop.eup %2774 }
 0x110   :  { %v747_v19 = vmul.f32 %v2775_v28, %v728_v21  ;;  %v739_v20 = vsel %vm738_vm13, %v2773_v1, %v735_v22  ;;  %vm752_vm0 = vweird.f32 %v2775_v28 }
 0x111   :  { %v744_v49 = vsel %vm741_vm14, %v743_v41, %v739_v20  ;;  %vm753_vm1 = vmor %vm751_vm15, %vm752_vm0 }
 0x112   :  { %v748_v42 = vsub.f32 1.0, %v747_v19  ;;  %v791_v14 = vmul.f32 %v744_v49, %v704_v44  ;;  %v1023_v44 = vsel %vm812_vm2, %v3451_v18, 0.0  ;;  %v1081_v49 = vld [vmem:[%s4104_s2 + $0x54] sm:$0xf] }
 0x113   :  { %1024 = vadd.xlane.f32.xlu0 %v1023_v44 }
 0x114   :  { %v749_v40 = vmul.f32 %v2775_v28, %v748_v42  ;;  %2505 = vmatmul.msk.f32.vlgmr.msra.gmra.mxu1 %vm812_vm2, %v791_v14  ;;  %v1078_v14 = vld [vmem:[%s4104_s2 + $0x30] sm:$0xf] }
 0x116   :  { %v750_v34 = vadd.f32 %v2775_v28, %v749_v40 }
 0x118   :  { %v754_v10 = vsel %vm753_vm1, %v2775_v28, %v750_v34  ;;  %v1089_v34 = vunpack.c.l.bf16 %v1081_v49 }
 0x119   :  { %v759_v56 = vsel %vm756_vm3, %v758_v37, %v754_v10  ;;  %v1086_v10 = vunpack.c.l.bf16 %v1078_v14 }
 0x11a   :  { %v792_v63 = vmul.f32 %v759_v56, %v3423_v62  ;;  %v1028_v62 = vmul.f32 %v3456_v13, %v3456_v13  ;;  %2722 = vmatpush.msra.mxu3 %v1089_v34  ;;  %1105 = vmatpush.msrb.mxu0 %v1089_v34 }
 0x11c   :  { %2506 = vmatmul.msk.f32.gmra.mxu1 %vm812_vm2, %v792_v63  ;;  %v1030_v39 = vsel %vm812_vm2, %v1028_v62, 0.0  ;;  %2723 = vmatpush.msra.mxu3 %v1088_v11 }
 0x11d   :  { %1031 = vadd.xlane.f32.xlu2 %v1030_v39  ;;  %1106 = vmatpush.msrb.mxu0 %v1088_v11 }
 0x11e   :  { %2724 = vmatpush.msra.mxu3 %v1087_v23 }
 0x11f   :  { %1107 = vmatpush.msrb.mxu0 %v1087_v23 }
 0x120   :  { %2725 = vmatpush.msra.mxu3 %v1086_v10 }
 0x121   :  { %1108 = vmatpush.msrb.mxu0 %v1086_v10 }
 0x123   :  { %v709_v29 = vpop.f32.mrf.mxu0 }
 0x124   :  { %v3433_v50 = vadd.f32 %v709_v29, %v3419_v53 }
 0x126   :  { %v2503_v31 = vmul.f32 -1.442695, %v3433_v50 }
 0x128   :  { %2776 = vpow2.f32 %v2503_v31 }
 0x12e   :  { %v2777_v32 = vpop.eup %2776 }
 0x12f   :  { %v729_v47 = vadd.f32 1.0, %v2777_v32 }
 0x131   :  { %2778 = vrcp.f32 %v729_v47  ;;  %v772_v43 = vand.u32 2147483648, %v729_v47  ;;  %vm766_vm4 = vweird.f32 %v729_v47  ;;  %v770_v4 = vand.u32 2147483647, %v729_v47 }
 0x133   :  { %v773_v52 = vor.u32 1.1754944e-38, %v772_v43  ;;  %vm771_vm7 = vcmp.eq.f32.partialorder %v770_v4, 8.507059e+37 }
 0x137   :  { %v2779_v0 = vpop.eup %2778 }
 0x138   :  { %v762_v60 = vmul.f32 %v2779_v0, %v729_v47  ;;  %vm767_vm5 = vweird.f32 %v2779_v0 }
 0x139   :  { %vm768_vm6 = vmor %vm766_vm4, %vm767_vm5 }
 0x13a   :  { %v763_v51 = vsub.f32 1.0, %v762_v60 }
 0x13c   :  { %v764_v33 = vmul.f32 %v2779_v0, %v763_v51 }
 0x13e   :  { %v765_v3 = vadd.f32 %v2779_v0, %v764_v33 }
 0x140   :  { %v769_v15 = vsel %vm768_vm6, %v2779_v0, %v765_v3 }
 0x141   :  { %v774_v6 = vsel %vm771_vm7, %v773_v52, %v769_v15 }
 0x142   :  { %v793_v35 = vmul.f32 %v774_v6, %v3433_v50 }
 0x144   :  { %2507 = vmatmul.msk.f32.gmra.mxu1 %vm812_vm2, %v793_v35 }
 0x14a   :  { %v712_v57 = vpop.f32.mrf.mxu0 }
 0x14b   :  { %v713_v8 = vadd.f32 %v712_v57, %v3419_v53  ;;  %v1029_v53 = vmul.f32 %v3451_v18, %v3451_v18 }
 0x14d   :  { %v2504_v24 = vmul.f32 -1.442695, %v713_v8  ;;  %v1033_v55 = vsel %vm812_vm2, %v1029_v53, 0.0 }
 0x14e   :  { %1034 = vadd.xlane.f32.xlu0 %v1033_v55 }
 0x14f   :  { %2780 = vpow2.f32 %v2504_v24 }
 0x155   :  { %v2781_v27 = vpop.eup %2780 }
 0x156   :  { %v730_v46 = vadd.f32 1.0, %v2781_v27 }
 0x158   :  { %2782 = vrcp.f32 %v730_v46  ;;  %v787_v17 = vand.u32 2147483648, %v730_v46  ;;  %vm781_vm8 = vweird.f32 %v730_v46  ;;  %v785_v5 = vand.u32 2147483647, %v730_v46 }
 0x15a   :  { %v788_v29 = vor.u32 1.1754944e-38, %v787_v17  ;;  %vm786_vm12 = vcmp.eq.f32.partialorder %v785_v5, 8.507059e+37 }
 0x15e   :  { %v2783_v21 = vpop.eup %2782 }
 0x15f   :  { %v777_v1 = vmul.f32 %v2783_v21, %v730_v46  ;;  %vm782_vm10 = vweird.f32 %v2783_v21 }
 0x160   :  { %vm783_vm11 = vmor %vm781_vm8, %vm782_vm10 }
 0x161   :  { %v778_v7 = vsub.f32 1.0, %v777_v1  ;;  %v1022_v2 = vpop.xlane.xlu2 %1021 }
 0x162   :  { %v1026_v37 = vmul.f32 0.015625, %v1022_v2 }
 0x163   :  { %v779_v28 = vmul.f32 %v2783_v21, %v778_v7 }
 0x164   :  { %v1038_v60 = vmul.f32 %v1026_v37, %v1026_v37  ;;  %v1042_v17 = vsub.f32 %v3456_v13, %v1026_v37 }
 0x165   :  { %v780_v30 = vadd.f32 %v2783_v21, %v779_v28 }
 0x167   :  { %v784_v9 = vsel %vm783_vm11, %v2783_v21, %v780_v30 }
 0x168   :  { %v789_v48 = vsel %vm786_vm12, %v788_v29, %v784_v9  ;;  %v1077_v29 = vld [vmem:[%s4104_s2 + $0x24] sm:$0xf]  ;;  %v1076_v9 = vld [vmem:[%s4104_s2 + $0x18] sm:$0xf] }
 0x169   :  { %v794_v50 = vmul.f32 %v789_v48, %v713_v8  ;;  %v1075_v48 = vld [vmem:[%s4104_s2 + $0xc] sm:$0xf]  ;;  %v1085_v13 = vunpack.c.l.bf16 %v1077_v29 }
 0x16b   :  { %2508 = vmatmul.msk.f32.gmra.mxu1 %vm812_vm2, %v794_v50  ;;  %2726 = vmatpush.msra.mxu3 %v1085_v13 }
 0x16c   :  { %1109 = vmatpush.msrb.mxu0 %v1085_v13  ;;  %v950_v13 = vld [vmem:[%s4106_s4 + $0x12] ss:$0 sm:$0xff] }
 0x186   :  { %v1025_v54 = vpop.xlane.xlu0 %1024 }
 0x187   :  { %v1027_v56 = vmul.f32 0.015625, %v1025_v54 }
 0x189   :  { %v1039_v43 = vmul.f32 %v1027_v56, %v1027_v56  ;;  %v1043_v5 = vsub.f32 %v3451_v18, %v1027_v56  ;;  %v1068_v18 = vld [vmem:[%s4106_s4 + $0x14] ss:$0 sm:$0xff] }
 0x190   :  { %v1032_v0 = vpop.xlane.xlu2 %1031 }
 0x191   :  { %v842_v19 = vpop.f32.mrf.mxu1  ;;  %v1036_v63 = vmul.f32 0.015625, %v1032_v0 }
 0x192   :  { %v3472_v45 = vadd.f32 %v842_v19, %v811_v59  ;;  %v1084_v19 = vunpack.c.l.bf16 %v1076_v9 }
 0x193   :  { %v1040_v4 = vsub.f32 %v1036_v63, %v1038_v60 }
 0x194   :  { %v854_v31 = vsel %vm812_vm2, %v3472_v45, 0.0  ;;  %v870_v22 = vmul.f32 %v3472_v45, %v3472_v45  ;;  %2727 = vmatpush.msra.mxu3 %v1084_v19  ;;  %1110 = vmatpush.msrb.mxu0 %v1084_v19 }
 0x195   :  { %855 = vadd.xlane.f32.xlu1 %v854_v31  ;;  %v1044_v52 = vadd.f32 1e-06, %v1040_v4 }
 0x196   :  { %v874_v58 = vsel %vm812_vm2, %v870_v22, 0.0  ;;  %v1074_v22 = vld [vmem:[%s4104_s2] sm:$0xf] }
 0x197   :  { %2784 = vrsqrt.f32 %v1044_v52  ;;  %vm1052_vm13 = vweird.f32 %v1044_v52 }
 0x199   :  { %v845_v42 = vpop.f32.mrf.mxu1 }
 0x19a   :  { %v3478_v61 = vadd.f32 %v845_v42, %v811_v59 }
 0x19c   :  { %v857_v16 = vsel %vm812_vm2, %v3478_v61, 0.0  ;;  %v871_v20 = vmul.f32 %v3478_v61, %v3478_v61 }
 0x19d   :  { %858 = vadd.xlane.f32.xlu0 %v857_v16  ;;  %875 = vadd.xlane.f32.xlu1 %v874_v58  ;;  %v2785_v26 = vpop.eup %2784  ;;  %v1083_v16 = vunpack.c.l.bf16 %v1075_v48 }
 0x19e   :  { %v877_v41 = vsel %vm812_vm2, %v871_v20, 0.0  ;;  %v1047_v53 = vmul.f32 %v2785_v26, %v1044_v52  ;;  %vm1053_vm14 = vweird.f32 %v2785_v26  ;;  %v1071_v20 = vld [vmem:[%s4106_s4 + $0x15] ss:$0 sm:$0xff] }
 0x19f   :  { %vm1054_vm1 = vmor %vm1052_vm13, %vm1053_vm14  ;;  %2728 = vmatpush.msra.mxu3 %v1083_v16  ;;  %1111 = vmatpush.msrb.mxu0 %v1083_v16 }
 0x1a0   :  { %v1048_v55 = vmul.f32 %v2785_v26, %v1047_v53 }
 0x1a2   :  { %v1049_v27 = vmul.f32 0.5, %v1048_v55 }
 0x1a4   :  { %v1050_v21 = vsub.f32 1.5, %v1049_v27 }
 0x1a5   :  { %878 = vadd.xlane.f32.xlu1 %v877_v41 }
 0x1a6   :  { %v1051_v7 = vmul.f32 %v2785_v26, %v1050_v21 }
 0x1a8   :  { %v1055_v30 = vsel %vm1054_vm1, %v2785_v26, %v1051_v7  ;;  %vm1179_vm1 = vcmask 130048  }
 0x1c1   :  { %v848_v40 = vpop.f32.mrf.mxu1  ;;  %v1035_v51 = vpop.xlane.xlu0 %1034 }
 0x1c2   :  { %v3485_v12 = vadd.f32 %v848_v40, %v811_v59  ;;  %v1037_v33 = vmul.f32 0.015625, %v1035_v51  ;;  %v1082_v40 = vunpack.c.l.bf16 %v1074_v22 }
 0x1c4   :  { %v860_v32 = vsel %vm812_vm2, %v3485_v12, 0.0  ;;  %v872_v38 = vmul.f32 %v3485_v12, %v3485_v12  ;;  %v1041_v3 = vsub.f32 %v1037_v33, %v1039_v43  ;;  %2729 = vmatpush.msra.mxu3 %v1082_v40  ;;  %1112 = vmatpush.msrb.mxu0 %v1082_v40 }
 0x1c5   :  { %861 = vadd.xlane.f32.xlu2 %v860_v32 }
 0x1c6   :  { %v880_v47 = vsel %vm812_vm2, %v872_v38, 0.0  ;;  %v1045_v35 = vadd.f32 1e-06, %v1041_v3 }
 0x1c7   :  { %881 = vadd.xlane.f32.xlu0 %v880_v47 }
 0x1c8   :  { %2786 = vrsqrt.f32 %v1045_v35  ;;  %vm1062_vm15 = vweird.f32 %v1045_v35 }
 0x1ce   :  { %v2787_v24 = vpop.eup %2786 }
 0x1cf   :  { %v1057_v62 = vmul.f32 %v2787_v24, %v1045_v35  ;;  %vm1063_vm0 = vweird.f32 %v2787_v24 }
 0x1d0   :  { %vm1064_vm3 = vmor %vm1062_vm15, %vm1063_vm0 }
 0x1d1   :  { %v1058_v39 = vmul.f32 %v2787_v24, %v1057_v62 }
 0x1d3   :  { %v1059_v46 = vmul.f32 0.5, %v1058_v39  ;;  %v2699_v39 = vld [vmem:[%s4105_s3 + $0x18] sm:$0xff]  }
 0x1d4   :  { %v2604_v21 = vunpack.c.h.bf16 %v2699_v39 }
 0x1d5   :  { %v1060_v1 = vsub.f32 1.5, %v1059_v46 }
 0x1d7   :  { %v1061_v28 = vmul.f32 %v2787_v24, %v1060_v1 }
 0x1d9   :  { %v1065_v50 = vsel %vm1064_vm3, %v2787_v24, %v1061_v28 }
 0x1da   :  { %v1067_v31 = vmul.f32 %v1065_v50, %v1043_v5  ;;  %v2603_v5 = vunpack.c.l.bf16 %v2699_v39 }
 0x1dc   :  { %v1070_v58 = vmul.f32 %v1068_v18, %v1067_v31 }
 0x1de   :  { %v1073_v41 = vadd.f32 %v1071_v20, %v1070_v58 }
 0x1e0   :  { %2514 = vmatmul.msk.f32.vlgmr.msra.gmra.mxu3 %vm812_vm2, %v1073_v41 }
 0x1e8   :  { %v851_v15 = vpop.f32.mrf.mxu1 }
 0x1e9   :  { %v3505_v6 = vadd.f32 %v851_v15, %v811_v59  ;;  %v1066_v59 = vmul.f32 %v1055_v30, %v1042_v17  ;;  %v2698_v30 = vld [vmem:[%s4105_s3 + $0x10] sm:$0xff]  }
 0x1ea   :  { %v2600_v50 = vunpack.c.h.bf16 %v2698_v30 }
 0x1eb   :  { %v863_v57 = vsel %vm812_vm2, %v3505_v6, 0.0  ;;  %v873_v8 = vmul.f32 %v3505_v6, %v3505_v6  ;;  %v1069_v42 = vmul.f32 %v1068_v18, %v1066_v59  ;;  %v2599_v18 = vunpack.c.l.bf16 %v2698_v30 }
 0x1ec   :  { %864 = vadd.xlane.f32.xlu1 %v863_v57 }
 0x1ed   :  { %v883_v44 = vsel %vm812_vm2, %v873_v8, 0.0  ;;  %v1072_v32 = vadd.f32 %v1071_v20, %v1069_v42  ;;  %v2611_v8 = vunpack.c.l.bf16 %v2701_v25  ;;  %v955_v42 = vld [vmem:[%s4106_s4 + $0x13] ss:$0 sm:$0xff] }
 0x1ee   :  { %884 = vadd.xlane.f32.xlu2 %v883_v44  ;;  %v2700_v44 = vld [vmem:[%s4105_s3 + $0x20] sm:$0xff]  }
 0x1ef   :  { %2513 = vmatmul.msk.f32.vlgmr.msrb.gmra.mxu0 %vm812_vm2, %v1072_v32  ;;  %998 = vmatpush.msra.mxu2 %v2611_v8  ;;  %v2608_v24 = vunpack.c.h.bf16 %v2700_v44  ;;  %v2607_v62 = vunpack.c.l.bf16 %v2700_v44  ;;  %v1090_v8 = vld [vmem:[%s4106_s4 + $0x6] ss:$0 sm:$0xff] }
 0x1f1   :  { %999 = vmatpush.msra.mxu2 %v2608_v24 }
 0x1f3   :  { %1000 = vmatpush.msra.mxu2 %v2607_v62  ;;  %v976_v62 = vld [vmem:[%s4106_s4 + $0x5] ss:$0 sm:$0xff] }
 0x1f5   :  { %1001 = vmatpush.msra.mxu2 %v2604_v21 }
 0x1f7   :  { %1002 = vmatpush.msra.mxu2 %v2603_v5 }
 0x1f9   :  { %1003 = vmatpush.msra.mxu2 %v2600_v50 }
 0x1fb   :  { %1004 = vmatpush.msra.mxu2 %v2599_v18 }
 0x208   :  { %v856_v38 = vpop.xlane.xlu1 %855 }
 0x209   :  { %v866_v47 = vmul.f32 0.015625, %v856_v38 }
 0x20b   :  { %v890_v34 = vmul.f32 %v866_v47, %v866_v47  ;;  %v898_v7 = vsub.f32 %v3472_v45, %v866_v47 }
 0x210   :  { %v876_v49 = vpop.xlane.xlu1 %875  ;;  %v859_v2 = vpop.xlane.xlu0 %858 }
 0x211   :  { %v886_v11 = vmul.f32 0.015625, %v876_v49  ;;  %v3537_v23 = vmul.f32 0.015625, %v859_v2 }
 0x213   :  { %v894_v14 = vsub.f32 %v886_v11, %v890_v34  ;;  %v891_v0 = vmul.f32 %v3537_v23, %v3537_v23  ;;  %v899_v40 = vsub.f32 %v3478_v61, %v3537_v23 }
 0x215   :  { %v902_v54 = vadd.f32 1e-06, %v894_v14 }
 0x217   :  { %2788 = vrsqrt.f32 %v902_v54  ;;  %vm912_vm5 = vweird.f32 %v902_v54 }
 0x218   :  { %v879_v37 = vpop.xlane.xlu1 %878 }
 0x219   :  { %v887_v60 = vmul.f32 0.015625, %v879_v37 }
 0x21b   :  { %v895_v43 = vsub.f32 %v887_v60, %v891_v0 }
 0x21d   :  { %v2789_v4 = vpop.eup %2788  ;;  %v903_v3 = vadd.f32 1e-06, %v895_v43 }
 0x21e   :  { %v907_v15 = vmul.f32 %v2789_v4, %v902_v54  ;;  %vm913_vm4 = vweird.f32 %v2789_v4 }
 0x21f   :  { %2790 = vrsqrt.f32 %v903_v3  ;;  %vm914_vm6 = vmor %vm912_vm5, %vm913_vm4  ;;  %vm922_vm8 = vweird.f32 %v903_v3 }
 0x220   :  { %v908_v57 = vmul.f32 %v2789_v4, %v907_v15 }
 0x222   :  { %v909_v26 = vmul.f32 0.5, %v908_v57 }
 0x224   :  { %v910_v53 = vsub.f32 1.5, %v909_v26 }
 0x225   :  { %v2791_v55 = vpop.eup %2790 }
 0x226   :  { %v911_v27 = vmul.f32 %v2789_v4, %v910_v53  ;;  %v917_v46 = vmul.f32 %v2791_v55, %v903_v3  ;;  %vm923_vm7 = vweird.f32 %v2791_v55 }
 0x227   :  { %vm924_vm10 = vmor %vm922_vm8, %vm923_vm7  ;;  %vm1838_vm7 = vcmask 392192  }
 0x228   :  { %v918_v17 = vmul.f32 %v2791_v55, %v917_v46  ;;  %v915_v29 = vsel %vm914_vm6, %v2789_v4, %v911_v27 }
 0x229   :  { %v946_v59 = vmul.f32 %v915_v29, %v898_v7 }
 0x22a   :  { %v919_v9 = vmul.f32 0.5, %v918_v17 }
 0x22b   :  { %v951_v22 = vmul.f32 %v950_v13, %v946_v59 }
 0x22c   :  { %v920_v19 = vsub.f32 1.5, %v919_v9 }
 0x22d   :  { %v956_v20 = vadd.f32 %v955_v42, %v951_v22 }
 0x22e   :  { %v921_v16 = vmul.f32 %v2791_v55, %v920_v19 }
 0x22f   :  { %2509 = vmatmul.msk.f32.vlgmr.msra.gmra.mxu2 %vm812_vm2, %v956_v20 }
 0x230   :  { %v925_v41 = vsel %vm924_vm10, %v2791_v55, %v921_v16 }
 0x231   :  { %v947_v38 = vmul.f32 %v925_v41, %v899_v40 }
 0x233   :  { %v952_v47 = vmul.f32 %v950_v13, %v947_v38 }
 0x235   :  { %v957_v34 = vadd.f32 %v955_v42, %v952_v47 }
 0x237   :  { %2510 = vmatmul.msk.f32.gmra.mxu2 %vm812_vm2, %v957_v34 }
 0x238   :  { %v862_v10 = vpop.xlane.xlu2 %861 }
 0x239   :  { %v3541_v56 = vmul.f32 0.015625, %v862_v10 }
 0x23a   :  { %v882_v51 = vpop.xlane.xlu0 %881 }
 0x23b   :  { %v892_v63 = vmul.f32 %v3541_v56, %v3541_v56  ;;  %v888_v33 = vmul.f32 0.015625, %v882_v51  ;;  %v900_v25 = vsub.f32 %v3485_v12, %v3541_v56 }
 0x23d   :  { %v896_v52 = vsub.f32 %v888_v33, %v892_v63 }
 0x23f   :  { %v904_v35 = vadd.f32 1e-06, %v896_v52 }
 0x241   :  { %2792 = vrsqrt.f32 %v904_v35  ;;  %vm932_vm12 = vweird.f32 %v904_v35 }
 0x247   :  { %v2793_v1 = vpop.eup %2792 }
 0x248   :  { %v927_v28 = vmul.f32 %v2793_v1, %v904_v35  ;;  %vm933_vm11 = vweird.f32 %v2793_v1 }
 0x249   :  { %vm934_vm13 = vmor %vm932_vm12, %vm933_vm11 }
 0x24a   :  { %v928_v48 = vmul.f32 %v2793_v1, %v927_v28 }
 0x24c   :  { %v929_v31 = vmul.f32 0.5, %v928_v48  ;;  %v1125_v48 = vlaneseq }
 0x24e   :  { %v930_v58 = vsub.f32 1.5, %v929_v31  ;;  %v1126_v59 = vand.u32 127, %v1125_v48  ;;  %v2929_v31 = vmov -1e+30  }
 0x250   :  { %v931_v32 = vmul.f32 %v2793_v1, %v930_v58  ;;  %vm1144_vm3 = vcmp.lt.s32.totalorder %v1126_v59, 8  ;;  %vm1161_vm4 = vcmp.ge.s32.totalorder %v1126_v59, 8  ;;  %vm1166_vm5 = vcmp.lt.s32.totalorder %v1126_v59, 16 }
 0x251   :  { %v3613_v18 = vsel %vm1144_vm3, 0.0, %v2929_v31  ;;  %vm1169_vm6 = vmand %vm1161_vm4, %vm1166_vm5 }
 0x252   :  { %v935_v49 = vsel %vm934_vm13, %v2793_v1, %v931_v32  ;;  %v3626_v34 = vsel %vm1169_vm6, 0.0, %v2929_v31 }
 0x253   :  { %v948_v11 = vmul.f32 %v935_v49, %v900_v25 }
 0x255   :  { %v953_v36 = vmul.f32 %v950_v13, %v948_v11 }
 0x257   :  { %v958_v2 = vadd.f32 %v955_v42, %v953_v36 }
 0x259   :  { %2511 = vmatmul.msk.f32.gmra.mxu2 %vm812_vm2, %v958_v2 }
 0x25f   :  { %v865_v14 = vpop.xlane.xlu1 %864 }
 0x260   :  { %v869_v23 = vmul.f32 0.015625, %v865_v14 }
 0x261   :  { %v885_v54 = vpop.xlane.xlu2 %884 }
 0x262   :  { %v893_v10 = vmul.f32 %v869_v23, %v869_v23  ;;  %v889_v37 = vmul.f32 0.015625, %v885_v54  ;;  %v901_v3 = vsub.f32 %v3505_v6, %v869_v23 }
 0x263   :  { %v1117_v24 = vpop.f32.mrf.mxu3 }
 0x264   :  { %v897_v0 = vsub.f32 %v889_v37, %v893_v10  ;;  %v3577_v53 = vadd.f32 %v1117_v24, %v1090_v8 }
 0x266   :  { %v905_v60 = vadd.f32 1e-06, %v897_v0  ;;  %1336 = vrot.lane.b32.xlu0 %v3577_v53, %s2926_s9  ;;  %2515 = vmatpush.xpose.msk.msrb.mxu3 %vm1179_vm1, %v3577_v53 }
 0x268   :  { %2794 = vrsqrt.f32 %v905_v60  ;;  %vm942_vm15 = vweird.f32 %v905_v60 }
 0x26c   :  { %v1114_v44 = vpop.f32.mrf.mxu0 }
 0x26d   :  { %v3573_v26 = vadd.f32 %v1114_v44, %v1090_v8 }
 0x26e   :  { %v2795_v51 = vpop.eup %2794 }
 0x26f   :  { %v937_v63 = vmul.f32 %v2795_v51, %v905_v60  ;;  %vm943_vm14 = vweird.f32 %v2795_v51  ;;  %1334 = vrot.lane.b32.xlu1 %v3573_v26, %s2926_s9  ;;  %2516 = vmatpush.xpose.msk.msrb.mxu3 %vm1179_vm1, %v3573_v26 }
 0x270   :  { %vm944_vm0 = vmor %vm942_vm15, %vm943_vm14 }
 0x271   :  { %v938_v43 = vmul.f32 %v2795_v51, %v937_v63 }
 0x273   :  { %v939_v56 = vmul.f32 0.5, %v938_v43 }
 0x275   :  { %v940_v33 = vsub.f32 1.5, %v939_v56 }
 0x277   :  { %v941_v4 = vmul.f32 %v2795_v51, %v940_v33  ;;  %1486 = vrot.lane.b32.xlu1 %v3573_v26, %s2927_s10 }
 0x279   :  { %v945_v52 = vsel %vm944_vm0, %v2795_v51, %v941_v4 }
 0x27a   :  { %v949_v15 = vmul.f32 %v945_v52, %v901_v3 }
 0x27c   :  { %v954_v35 = vmul.f32 %v950_v13, %v949_v15 }
 0x27e   :  { %v959_v57 = vadd.f32 %v955_v42, %v954_v35 }
 0x280   :  { %2512 = vmatmul.msk.f32.gmra.mxu2 %vm812_vm2, %v959_v57 }
 0x2b2   :  { %v1006_v55 = vpop.f32.mrf.mxu2 }
 0x2b3   :  { %v1007_v39 = vadd.f32 %v1006_v55, %v976_v62 }
 0x2b5   :  { %1326 = vrot.lane.b32.xlu2 %v1007_v39, %s2926_s9  ;;  %2517 = vmatmul.msk.f32.vlgmr.msrb.gmra.mxu3 %vm1179_vm1, %v1007_v39 }
 0x2ba   :  { %v1009_v27 = vpop.f32.mrf.mxu2 }
 0x2bb   :  { %v1010_v46 = vadd.f32 %v1009_v27, %v976_v62 }
 0x2bd   :  { %1328 = vrot.lane.b32.xlu0 %v1010_v46, %s2926_s9  ;;  %2518 = vmatmul.msk.f32.gmra.mxu3 %vm1179_vm1, %v1010_v46 }
 0x2c5   :  { %1488 = vrot.lane.b32.xlu0 %v3577_v53, %s2927_s10 }
 0x2cd   :  { %1638 = vrot.lane.b32.xlu0 %v3573_v26, %s2928_s0 }
 0x2d5   :  { %1480 = vrot.lane.b32.xlu0 %v1010_v46, %s2927_s10 }
 0x2d8   :  { %v1337_v28 = vpop.permute.xlu0 %1336 }
 0x2d9   :  { %2525 = vmatpush.xpose.msk.msrb.mxu1 %vm1179_vm1, %v1337_v28 }
 0x2dc   :  { %v1012_v21 = vpop.f32.mrf.mxu2 }
 0x2dd   :  { %v1013_v1 = vadd.f32 %v1012_v21, %v976_v62 }
 0x2df   :  { %1330 = vrot.lane.b32.xlu2 %v1013_v1, %s2926_s9  ;;  %2519 = vmatmul.msk.f32.gmra.mxu3 %vm1179_vm1, %v1013_v1 }
 0x2e0   :  { %1634 = vrot.lane.b32.xlu0 %v1013_v1, %s2928_s0 }
 0x2e1   :  { %v1335_v5 = vpop.permute.xlu1 %1334 }
 0x2e2   :  { %2526 = vmatpush.xpose.msk.msrb.mxu1 %vm1179_vm1, %v1335_v5 }
 0x2e7   :  { %1640 = vrot.lane.b32.xlu2 %v3577_v53, %s2928_s0 }
 0x2e9   :  { %v1487_v42 = vpop.permute.xlu1 %1486 }
 0x2ef   :  { %1478 = vrot.lane.b32.xlu2 %v1007_v39, %s2927_s10 }
 0x2f7   :  { %1632 = vrot.lane.b32.xlu2 %v1010_v46, %s2928_s0 }
 0x303   :  { %v1015_v7 = vpop.f32.mrf.mxu2 }
 0x304   :  { %v1016_v17 = vadd.f32 %v1015_v7, %v976_v62 }
 0x306   :  { %1332 = vrot.lane.b32.xlu1 %v1016_v17, %s2926_s9  ;;  %2520 = vmatmul.msk.f32.gmra.mxu3 %vm1179_vm1, %v1016_v17  ;;  %s2474_s9 = sshll.u32 %s2934_s8, 4  ;;  %s2475_s9 = int_to_ptr.vmem [resolvable:$true] %s2474_s9 }
 0x307   :  { %1484 = vrot.lane.b32.xlu2 %v1016_v17, %s2927_s10 }
 0x30e   :  { %1630 = vrot.lane.b32.xlu1 %v1007_v39, %s2928_s0 }
 0x30f   :  { %v1327_v30 = vpop.permute.xlu2 %1326 }
 0x310   :  { %2527 = vmatmul.msk.f32.vlgmr.msrb.gmra.mxu1 %vm1179_vm1, %v1327_v30 }
 0x316   :  { %1482 = vrot.lane.b32.xlu1 %v1013_v1, %s2927_s10 }
 0x31e   :  { %1636 = vrot.lane.b32.xlu1 %v1016_v17, %s2928_s0 }
 0x32f   :  { %v1329_v50 = vpop.permute.xlu0 %1328 }
 0x330   :  { %2528 = vmatmul.msk.f32.gmra.mxu1 %vm1179_vm1, %v1329_v50 }
 0x337   :  { %v1489_v13 = vpop.permute.xlu0 %1488 }
 0x338   :  { %v1215_v19 = vpop.f32.mrf.mxu3  ;;  %2535 = vmatpush.xpose.msk.msra.mxu3 %vm1179_vm1, %v1489_v13 }
 0x339   :  { %v1331_v29 = vpop.permute.xlu2 %1330  ;;  %v1227_v22 = vmul.f32 0.25, %v1215_v19 }
 0x33a   :  { %2529 = vmatmul.msk.f32.gmra.mxu1 %vm1179_vm1, %v1331_v29 }
 0x33b   :  { %v1231_v16 = vadd.f32 %v1227_v22, %v3613_v18 }
 0x33c   :  { %2536 = vmatpush.xpose.msk.msra.mxu3 %vm1179_vm1, %v1487_v42 }
 0x33d   :  { %v1235_v58 = vsel %vm1179_vm1, %v1231_v16, -inf }
 0x33e   :  { %1236 = vmax.xlane.f32.xlu2 %v1235_v58  ;;  %v3681_v58 = vpack.i.bf16 %v3573_v26, %v3577_v53 }
 0x33f   :  { %v1639_v40 = vpop.permute.xlu0 %1638 }
 0x340   :  { %v1218_v32 = vpop.f32.mrf.mxu3 }
 0x341   :  { %v1641_v9 = vpop.permute.xlu2 %1640  ;;  %v1228_v41 = vmul.f32 0.25, %v1218_v32 }
 0x342   :  { %2545 = vmatpush.xpose.msk.msra.mxu1 %vm1179_vm1, %v1641_v9 }
 0x343   :  { %v3621_v38 = vadd.f32 %v1228_v41, %v3613_v18 }
 0x345   :  { %v1238_v47 = vsel %vm1179_vm1, %v3621_v38, -inf }
 0x346   :  { %2546 = vmatpush.xpose.msk.msra.mxu1 %vm1179_vm1, %v1639_v40  ;;  %1239 = vmax.xlane.f32.xlu0 %v1238_v47 }
 0x347   :  { %v1481_v49 = vpop.permute.xlu0 %1480 }
 0x349   :  { %v1479_v20 = vpop.permute.xlu2 %1478 }
 0x34a   :  { %2537 = vmatmul.msk.f32.vlgmr.msra.gmra.mxu3 %vm1179_vm1, %v1479_v20 }
 0x351   :  { %v1633_v54 = vpop.permute.xlu2 %1632 }
 0x352   :  { %2538 = vmatmul.msk.f32.gmra.mxu3 %vm1179_vm1, %v1481_v49  ;;  %v1635_v43 = vpop.permute.xlu0 %1634 }
 0x361   :  { %v1485_v63 = vpop.permute.xlu2 %1484 }
 0x362   :  { %v1221_v25 = vpop.f32.mrf.mxu3 }
 0x363   :  { %v1229_v11 = vmul.f32 0.25, %v1221_v25 }
 0x365   :  { %v3629_v36 = vadd.f32 %v1229_v11, %v3626_v34 }
 0x367   :  { %v1241_v2 = vsel %vm1179_vm1, %v3629_v36, -inf }
 0x368   :  { %1242 = vmax.xlane.f32.xlu1 %v1241_v2 }
 0x378   :  { %v1333_v14 = vpop.permute.xlu1 %1332 }
 0x379   :  { %2530 = vmatmul.msk.f32.gmra.mxu1 %vm1179_vm1, %v1333_v14 }
 0x380   :  { %v1631_v23 = vpop.permute.xlu1 %1630 }
 0x381   :  { %2547 = vmatmul.msk.f32.vlgmr.msra.gmra.mxu1 %vm1179_vm1, %v1631_v23 }
 0x388   :  { %v1483_v10 = vpop.permute.xlu1 %1482 }
 0x389   :  { %v1224_v37 = vpop.f32.mrf.mxu3  ;;  %2539 = vmatmul.msk.f32.gmra.mxu3 %vm1179_vm1, %v1483_v10  ;;  %2548 = vmatmul.msk.f32.gmra.mxu1 %vm1179_vm1, %v1633_v54 }
 0x38a   :  { %v1230_v0 = vmul.f32 0.25, %v1224_v37 }
 0x38c   :  { %v3638_v60 = vadd.f32 %v1230_v0, %v3626_v34 }
 0x38d   :  { %v1367_v33 = vpop.f32.mrf.mxu1 }
 0x38e   :  { %v1244_v51 = vsel %vm1179_vm1, %v3638_v60, -inf  ;;  %v1379_v4 = vmul.f32 0.25, %v1367_v33 }
 0x38f   :  { %1245 = vmax.xlane.f32.xlu2 %v1244_v51 }
 0x390   :  { %v1637_v56 = vpop.permute.xlu1 %1636  ;;  %v3646_v3 = vadd.f32 %v1379_v4, %v3613_v18 }
 0x391   :  { %2540 = vmatmul.msk.f32.gmra.mxu3 %vm1179_vm1, %v1485_v63  ;;  %2549 = vmatmul.msk.f32.gmra.mxu1 %vm1179_vm1, %v1635_v43 }
 0x392   :  { %v1387_v52 = vsel %vm1179_vm1, %v3646_v3, -inf }
 0x393   :  { %1388 = vmax.xlane.f32.xlu0 %v1387_v52 }
 0x399   :  { %2550 = vmatmul.msk.f32.gmra.mxu1 %vm1179_vm1, %v1637_v56 }
 0x3ad   :  { %v1370_v15 = vpop.f32.mrf.mxu1 }
 0x3ae   :  { %v1380_v35 = vmul.f32 0.25, %v1370_v15 }
 0x3b0   :  { %v3651_v57 = vadd.f32 %v1380_v35, %v3613_v18 }
 0x3b1   :  { %v1237_v8 = vpop.xlane.xlu2 %1236 }
 0x3b2   :  { %v1247_v44 = vsub.f32 %v1231_v16, %v1237_v8  ;;  %v1390_v24 = vsel %vm1179_vm1, %v3651_v57, -inf }
 0x3b3   :  { %1391 = vmax.xlane.f32.xlu1 %v1390_v24 }
 0x3b4   :  { %v1251_v62 = vmul.f32 1.442695, %v1247_v44 }
 0x3b6   :  { %2796 = vpow2.f32 %v1251_v62 }
 0x3b7   :  { %v1373_v55 = vpop.f32.mrf.mxu1 }
 0x3b8   :  { %v1381_v39 = vmul.f32 0.25, %v1373_v55 }
 0x3b9   :  { %v1240_v22 = vpop.xlane.xlu0 %1239 }
 0x3ba   :  { %v3656_v27 = vadd.f32 %v1381_v39, %v3626_v34  ;;  %v1248_v40 = vsub.f32 %v3621_v38, %v1240_v22 }
 0x3bc   :  { %v1393_v46 = vsel %vm1179_vm1, %v3656_v27, -inf  ;;  %v3660_v21 = vpop.eup %2796  ;;  %v1253_v47 = vmul.f32 1.442695, %v1248_v40 }
 0x3bd   :  { %1394 = vmax.xlane.f32.xlu2 %v1393_v46  ;;  %v1259_v7 = vsel %vm1179_vm1, %v3660_v21, 0.0 }
 0x3be   :  { %2798 = vpow2.f32 %v1253_v47 }
 0x3c4   :  { %v3700_v2 = vpop.eup %2798 }
 0x3c5   :  { %1260 = vadd.xlane.f32.xlu2 %v1259_v7  ;;  %v1262_v54 = vsel %vm1179_vm1, %v3700_v2, 0.0 }
 0x3cd   :  { %v1519_v1 = vpop.f32.mrf.mxu3 }
 0x3ce   :  { %v1531_v17 = vmul.f32 0.25, %v1519_v1 }
 0x3d0   :  { %v3665_v28 = vadd.f32 %v1531_v17, %v3613_v18 }
 0x3d2   :  { %v1539_v5 = vsel %vm1179_vm1, %v3665_v28, -inf }
 0x3d3   :  { %1540 = vmax.xlane.f32.xlu0 %v1539_v5 }
 0x3d5   :  { %v1522_v30 = vpop.f32.mrf.mxu3 }
 0x3d6   :  { %v1532_v29 = vmul.f32 0.25, %v1522_v30 }
 0x3d8   :  { %v3670_v9 = vadd.f32 %v1532_v29, %v3613_v18 }
 0x3da   :  { %v1542_v48 = vsel %vm1179_vm1, %v3670_v9, -inf }
 0x3db   :  { %1543 = vmax.xlane.f32.xlu1 %v1542_v48  ;;  %v1243_v8 = vpop.xlane.xlu1 %1242 }
 0x3dc   :  { %v1249_v17 = vsub.f32 %v3629_v36, %v1243_v8 }
 0x3de   :  { %v1255_v5 = vmul.f32 1.442695, %v1249_v17 }
 0x3f6   :  { %v1376_v50 = vpop.f32.mrf.mxu1 }
 0x3f7   :  { %v1382_v59 = vmul.f32 0.25, %v1376_v50 }
 0x3f9   :  { %v3675_v13 = vadd.f32 %v1382_v59, %v3626_v34 }
 0x3fb   :  { %v1396_v19 = vsel %vm1179_vm1, %v3675_v13, -inf }
 0x3fc   :  { %1397 = vmax.xlane.f32.xlu0 %v1396_v19 }
 0x3fe   :  { %v1671_v16 = vpop.f32.mrf.mxu1 }
 0x3ff   :  { %v1683_v32 = vmul.f32 0.25, %v1671_v16 }
 0x401   :  { %v3691_v11 = vadd.f32 %v1683_v32, %v3613_v18 }
 0x402   :  { %v1246_v10 = vpop.xlane.xlu2 %1245 }
 0x403   :  { %v1691_v53 = vsel %vm1179_vm1, %v3691_v11, -inf  ;;  %v1250_v63 = vsub.f32 %v3638_v60, %v1246_v10 }
 0x405   :  { %v1257_v33 = vmul.f32 1.442695, %v1250_v63 }
 0x406   :  { %v1674_v14 = vpop.f32.mrf.mxu1  ;;  %v1389_v0 = vpop.xlane.xlu0 %1388 }
 0x407   :  { %v1684_v23 = vmul.f32 0.25, %v1674_v14  ;;  %v1399_v51 = vsub.f32 %v3646_v3, %v1389_v0 }
 0x409   :  { %v3705_v37 = vadd.f32 %v1684_v23, %v3613_v18  ;;  %v1403_v56 = vmul.f32 1.442695, %v1399_v51 }
 0x40b   :  { %v1694_v43 = vsel %vm1179_vm1, %v3705_v37, -inf  ;;  %2800 = vpow2.f32 %v1403_v56 }
 0x40c   :  { %v1525_v31 = vpop.f32.mrf.mxu3  ;;  %2802 = vpow2.f32 %v1257_v33 }
 0x40d   :  { %v1533_v42 = vmul.f32 0.25, %v1525_v31 }
 0x40e   :  { %v1677_v18 = vpop.f32.mrf.mxu1 }
 0x40f   :  { %v3684_v20 = vadd.f32 %v1533_v42, %v3626_v34  ;;  %v1685_v3 = vmul.f32 0.25, %v1677_v18 }
 0x410   :  { %2752 = vrot.lane.b32.xlu0 %v3681_v58, %s2930_s13 }
 0x411   :  { %v1545_v41 = vsel %vm1179_vm1, %v3684_v20, -inf  ;;  %v3711_v4 = vpop.eup %2800  ;;  %v3722_v35 = vadd.f32 %v1685_v3, %v3626_v34 }
 0x412   :  { %1546 = vmax.xlane.f32.xlu1 %v1545_v41  ;;  %v1411_v52 = vsel %vm1179_vm1, %v3711_v4, 0.0  ;;  %v3717_v60 = vpop.eup %2802 }
 0x413   :  { %v1268_v15 = vsel %vm1179_vm1, %v3717_v60, 0.0  ;;  %v1697_v62 = vsel %vm1179_vm1, %v3722_v35, -inf }
 0x414   :  { %v1528_v49 = vpop.f32.mrf.mxu3 }
 0x415   :  { %v1534_v25 = vmul.f32 0.25, %v1528_v49 }
 0x416   :  { %v1680_v44 = vpop.f32.mrf.mxu1 }
 0x417   :  { %v3694_v26 = vadd.f32 %v1534_v25, %v3626_v34  ;;  %v1686_v24 = vmul.f32 0.25, %v1680_v44 }
 0x419   :  { %v1548_v38 = vsel %vm1179_vm1, %v3694_v26, -inf  ;;  %v3727_v55 = vadd.f32 %v1686_v24, %v3626_v34 }
 0x41a   :  { %1692 = vmax.xlane.f32.xlu1 %v1691_v53  ;;  %1549 = vmax.xlane.f32.xlu2 %v1548_v38 }
 0x41b   :  { %v1700_v1 = vsel %vm1179_vm1, %v3727_v55, -inf }
 0x422   :  { %1263 = vadd.xlane.f32.xlu2 %v1262_v54 }
 0x426   :  { %v1392_v39 = vpop.xlane.xlu1 %1391 }
 0x427   :  { %v1400_v46 = vsub.f32 %v3651_v57, %v1392_v39 }
 0x429   :  { %v1405_v7 = vmul.f32 1.442695, %v1400_v46 }
 0x42a   :  { %1695 = vmax.xlane.f32.xlu2 %v1694_v43 }
 0x42b   :  { %2804 = vpow2.f32 %v1405_v7 }
 0x42c   :  { %2806 = vpow2.f32 %v1255_v5 }
 0x430   :  { %v1395_v48 = vpop.xlane.xlu2 %1394 }
 0x431   :  { %v3733_v30 = vpop.eup %2804  ;;  %v1401_v36 = vsub.f32 %v3656_v27, %v1395_v48 }
 0x432   :  { %1412 = vadd.xlane.f32.xlu2 %v1411_v52  ;;  %v1414_v29 = vsel %vm1179_vm1, %v3733_v30, 0.0  ;;  %v3737_v34 = vpop.eup %2806 }
 0x433   :  { %2747 = vrot.lane.b32.xlu1 %v3681_v58, %s2931_s14  ;;  %v1265_v50 = vsel %vm1179_vm1, %v3737_v34, 0.0  ;;  %v1407_v31 = vmul.f32 1.442695, %v1401_v36 }
 0x438   :  { %v1261_v38 = vpop.xlane.xlu2 %1260 }
 0x43a   :  { %1269 = vadd.xlane.f32.xlu0 %v1268_v15 }
 0x442   :  { %1698 = vmax.xlane.f32.xlu0 %v1697_v62 }
 0x446   :  { %v1541_v57 = vpop.xlane.xlu0 %1540 }
 0x447   :  { %v1551_v59 = vsub.f32 %v3665_v28, %v1541_v57 }
 0x449   :  { %v1555_v19 = vmul.f32 1.442695, %v1551_v59 }
 0x44a   :  { %1701 = vmax.xlane.f32.xlu0 %v1700_v1 }
 0x44b   :  { %2808 = vpow2.f32 %v1555_v19 }
 0x44c   :  { %2810 = vpow2.f32 %v1407_v31 }
 0x44e   :  { %v1544_v22 = vpop.xlane.xlu1 %1543 }
 0x44f   :  { %v1552_v42 = vsub.f32 %v3670_v9, %v1544_v22 }
 0x451   :  { %v3744_v16 = vpop.eup %2808  ;;  %v1557_v40 = vmul.f32 1.442695, %v1552_v42 }
 0x452   :  { %1415 = vadd.xlane.f32.xlu0 %v1414_v29  ;;  %v1563_v28 = vsel %vm1179_vm1, %v3744_v16, 0.0  ;;  %v3750_v27 = vpop.eup %2810 }
 0x453   :  { %1564 = vadd.xlane.f32.xlu2 %v1563_v28  ;;  %2812 = vpow2.f32 %v1557_v40  ;;  %v1417_v9 = vsel %vm1179_vm1, %v3750_v27, 0.0 }
 0x459   :  { %v3752_v32 = vpop.eup %2812 }
 0x45a   :  { %v1566_v49 = vsel %vm1179_vm1, %v3752_v32, 0.0 }
 0x45b   :  { %1418 = vadd.xlane.f32.xlu2 %v1417_v9 }
 0x45d   :  { %1266 = vadd.xlane.f32.xlu1 %v1265_v50 }
 0x465   :  { %1567 = vadd.xlane.f32.xlu1 %v1566_v49 }
 0x466   :  { %2762 = vrot.lane.b32.xlu0 %v3681_v58, %s2932_s15 }
 0x46f   :  { %v1398_v41 = vpop.xlane.xlu0 %1397 }
 0x470   :  { %v1402_v47 = vsub.f32 %v3675_v13, %v1398_v41 }
 0x472   :  { %v1409_v25 = vmul.f32 1.442695, %v1402_v47 }
 0x474   :  { %2814 = vpow2.f32 %v1409_v25 }
 0x475   :  { %2816 = vrcp.f32 %v1261_v38 }
 0x47a   :  { %v3759_v53 = vpop.eup %2814 }
 0x47b   :  { %v1420_v14 = vsel %vm1179_vm1, %v3759_v53, 0.0  ;;  %v2817_v54 = vpop.eup %2816 }
 0x47c   :  { %1421 = vadd.xlane.f32.xlu2 %v1420_v14  ;;  %v1275_v51 = vmul.f32 %v2817_v54, %v3660_v21 }
 0x482   :  { %v2753_v23 = vpop.permute.xlu0 %2752 }
 0x483   :  { %v2754_v10 = vunpack.i.l.bf16 %v2753_v23  ;;  %v2755_v13 = vunpack.i.h.bf16 %v2753_v23 }
 0x485   :  { %v1547_v0 = vpop.xlane.xlu1 %1546  ;;  %1311 = vmatpush.msra.mxu0 %v2754_v10 }
 0x486   :  { %v1553_v39 = vsub.f32 %v3684_v20, %v1547_v0 }
 0x487   :  { %1312 = vmatpush.msra.mxu0 %v2755_v13 }
 0x488   :  { %2521 = vmatmul.msk.f32.vlgmr.msra.gmra.mxu0 %vm1179_vm1, %v1275_v51  ;;  %v1559_v1 = vmul.f32 1.442695, %v1553_v39 }
 0x48d   :  { %v1550_v63 = vpop.xlane.xlu2 %1549  ;;  %v1693_v43 = vpop.xlane.xlu1 %1692 }
 0x48e   :  { %v1554_v56 = vsub.f32 %v3694_v26, %v1550_v63  ;;  %v1703_v33 = vsub.f32 %v3691_v11, %v1693_v43 }
 0x490   :  { %v1561_v52 = vmul.f32 1.442695, %v1554_v56  ;;  %v1707_v18 = vmul.f32 1.442695, %v1703_v33 }
 0x492   :  { %2818 = vpow2.f32 %v1561_v52 }
 0x493   :  { %2820 = vpow2.f32 %v1707_v18 }
 0x495   :  { %v1264_v3 = vpop.xlane.xlu2 %1263 }
 0x496   :  { %2822 = vrcp.f32 %v1264_v3 }
 0x498   :  { %v3767_v15 = vpop.eup %2818 }
 0x499   :  { %v3769_v8 = vpop.eup %2820  ;;  %v1572_v21 = vsel %vm1179_vm1, %v3767_v15, 0.0 }
 0x49a   :  { %v1715_v44 = vsel %vm1179_vm1, %v3769_v8, 0.0  ;;  %1573 = vadd.xlane.f32.xlu0 %v1572_v21 }
 0x49b   :  { %1716 = vadd.xlane.f32.xlu2 %v1715_v44 }
 0x49c   :  { %v2823_v26 = vpop.eup %2822 }
 0x49d   :  { %v1696_v11 = vpop.xlane.xlu2 %1695  ;;  %v1276_v24 = vmul.f32 %v2823_v26, %v3700_v2 }
 0x49e   :  { %v1704_v62 = vsub.f32 %v3705_v37, %v1696_v11 }
 0x49f   :  { %2522 = vmatmul.msk.f32.gmra.mxu0 %vm1179_vm1, %v1276_v24 }
 0x4a0   :  { %v1709_v46 = vmul.f32 1.442695, %v1704_v62 }
 0x4a2   :  { %2824 = vpow2.f32 %v1709_v46 }
 0x4a5   :  { %v2748_v7 = vpop.permute.xlu1 %2747  ;;  %v1413_v5 = vpop.xlane.xlu2 %1412 }
 0x4a6   :  { %v2749_v17 = vunpack.i.l.bf16 %v2748_v7  ;;  %2826 = vrcp.f32 %v1413_v5  ;;  %v2750_v48 = vunpack.i.h.bf16 %v2748_v7 }
 0x4a7   :  { %2828 = vpow2.f32 %v1559_v1 }
 0x4a8   :  { %v3779_v29 = vpop.eup %2824  ;;  %1463 = vmatpush.msrb.mxu2 %v2749_v17 }
 0x4a9   :  { %v1718_v2 = vsel %vm1179_vm1, %v3779_v29, 0.0 }
 0x4aa   :  { %1719 = vadd.xlane.f32.xlu1 %v1718_v2  ;;  %1464 = vmatpush.msrb.mxu2 %v2750_v48 }
 0x4ac   :  { %v2827_v37 = vpop.eup %2826 }
 0x4ad   :  { %v1270_v57 = vpop.xlane.xlu0 %1269  ;;  %v3783_v20 = vpop.eup %2828  ;;  %v1427_v50 = vmul.f32 %v2827_v37, %v3711_v4 }
 0x4ae   :  { %v1569_v59 = vsel %vm1179_vm1, %v3783_v20, 0.0 }
 0x4af   :  { %2531 = vmatmul.msk.f32.vlgmr.msrb.gmra.mxu2 %vm1179_vm1, %v1427_v50 }
 0x4b2   :  { %1570 = vadd.xlane.f32.xlu1 %v1569_v59 }
 0x4b3   :  { %2757 = vrot.lane.b32.xlu2 %v3681_v58, %s2933_s16 }
 0x4b5   :  { %v1699_v36 = vpop.xlane.xlu0 %1698 }
 0x4b6   :  { %v1705_v28 = vsub.f32 %v3722_v35, %v1699_v36 }
 0x4b8   :  { %v1711_v9 = vmul.f32 1.442695, %v1705_v28 }
 0x4bd   :  { %v1702_v19 = vpop.xlane.xlu0 %1701 }
 0x4be   :  { %v1706_v31 = vsub.f32 %v3727_v55, %v1702_v19 }
 0x4c0   :  { %v1713_v22 = vmul.f32 1.442695, %v1706_v31 }
 0x4c2   :  { %2830 = vpow2.f32 %v1713_v22 }
 0x4c5   :  { %v1416_v42 = vpop.xlane.xlu0 %1415 }
 0x4c6   :  { %2832 = vrcp.f32 %v1416_v42  ;;  %v1565_v23 = vpop.xlane.xlu2 %1564 }
 0x4c8   :  { %v3792_v40 = vpop.eup %2830 }
 0x4c9   :  { %v1724_v4 = vsel %vm1179_vm1, %v3792_v40, 0.0 }
 0x4ca   :  { %1725 = vadd.xlane.f32.xlu1 %v1724_v4 }
 0x4cc   :  { %v2833_v41 = vpop.eup %2832 }
 0x4cd   :  { %v1428_v58 = vmul.f32 %v2833_v41, %v3733_v30  ;;  %v2705_v41 = vld [vmem:[%s4105_s3 + $0x48] sm:$0xff]  }
 0x4cf   :  { %2532 = vmatmul.msk.f32.gmra.mxu2 %vm1179_vm1, %v1428_v58  ;;  %v2627_v58 = vunpack.c.l.bf16 %v2705_v41 }
 0x4d0   :  { %v1267_v47 = vpop.xlane.xlu1 %1266 }
 0x4d1   :  { %2834 = vrcp.f32 %v1267_v47  ;;  %v2704_v47 = vld [vmem:[%s4105_s3 + $0x40] sm:$0xff]  }
 0x4d2   :  { %2836 = vpow2.f32 %v1711_v9  ;;  %v2628_v9 = vunpack.c.h.bf16 %v2705_v41  ;;  %v2022_v41 = vld [vmem:[%s4104_s2 + $0x58] sm:$0xff] }
 0x4d3   :  { %2838 = vrcp.f32 %v1270_v57 }
 0x4d4   :  { %2840 = vrcp.f32 %v1565_v23  ;;  %1879 = vmatpush.msrb.mxu3 %v2628_v9  ;;  %v2037_v9 = vunpack.c.l.bf16 %v2022_v41 }
 0x4d6   :  { %1880 = vmatpush.msrb.mxu3 %v2627_v58  ;;  %v2038_v58 = vunpack.c.h.bf16 %v2022_v41 }
 0x4d7   :  { %v2835_v55 = vpop.eup %2834 }
 0x4d8   :  { %v3799_v49 = vpop.eup %2836  ;;  %v1277_v25 = vmul.f32 %v2835_v55, %v3737_v34  ;;  %v2763_v38 = vpop.permute.xlu0 %2762  ;;  %v2624_v55 = vunpack.c.h.bf16 %v2704_v47  ;;  %2095 = vmatpush.msrb.mxu1 %v2038_v58 }
 0x4d9   :  { %v2764_v35 = vunpack.i.l.bf16 %v2763_v38  ;;  %v1721_v14 = vsel %vm1179_vm1, %v3799_v49, 0.0  ;;  %v2765_v30 = vunpack.i.h.bf16 %v2763_v38  ;;  %v2839_v54 = vpop.eup %2838  ;;  %v1419_v34 = vpop.xlane.xlu2 %1418 }
 0x4da   :  { %2523 = vmatmul.msk.f32.gmra.mxu0 %vm1179_vm1, %v1277_v25  ;;  %v1278_v10 = vmul.f32 %v2839_v54, %v3717_v60  ;;  %v2841_v0 = vpop.eup %2840  ;;  %2842 = vrcp.f32 %v1419_v34  ;;  %v1568_v13 = vpop.xlane.xlu1 %1567  ;;  %v2623_v25 = vunpack.c.l.bf16 %v2704_v47  ;;  %1881 = vmatpush.msrb.mxu3 %v2624_v55 }
 0x4db   :  { %1615 = vmatpush.msrb.mxu0 %v2764_v35  ;;  %2844 = vrcp.f32 %v1568_v13  ;;  %v1579_v51 = vmul.f32 %v2841_v0, %v3744_v16  ;;  %v2702_v35 = vld [vmem:[%s4105_s3 + $0x30] sm:$0xff]  }
 0x4dc   :  { %1722 = vadd.xlane.f32.xlu2 %v1721_v14  ;;  %1882 = vmatpush.msrb.mxu3 %v2623_v25  ;;  %v2616_v23 = vunpack.c.h.bf16 %v2702_v35 }
 0x4dd   :  { %1616 = vmatpush.msrb.mxu0 %v2765_v30 }
 0x4df   :  { %2066 = vmatpush.msra.mxu0 %v2037_v9 }
 0x4e0   :  { %v2843_v63 = vpop.eup %2842 }
 0x4e1   :  { %v2845_v43 = vpop.eup %2844  ;;  %v1429_v56 = vmul.f32 %v2843_v63, %v3750_v27 }
 0x4e2   :  { %2524 = vmatmul.msk.f32.gmra.mxu0 %vm1179_vm1, %v1278_v10  ;;  %v1580_v33 = vmul.f32 %v2845_v43, %v3752_v32  ;;  %v2615_v10 = vunpack.c.l.bf16 %v2702_v35  ;;  %v2019_v35 = vld [vmem:[%s4104_s2 + $0x34] sm:$0xff] }
 0x4e3   :  { %2533 = vmatmul.msk.f32.gmra.mxu2 %vm1179_vm1, %v1429_v56 }
 0x4ea   :  { %2541 = vmatmul.msk.f32.vlgmr.msrb.gmra.mxu0 %vm1179_vm1, %v1579_v51 }
 0x4ef   :  { %v1422_v60 = vpop.xlane.xlu2 %1421 }
 0x4f0   :  { %2846 = vrcp.f32 %v1422_v60 }
 0x4f2   :  { %2542 = vmatmul.msk.f32.gmra.mxu0 %vm1179_vm1, %v1580_v33 }
 0x4f6   :  { %v2847_v52 = vpop.eup %2846 }
 0x4f7   :  { %v1430_v18 = vmul.f32 %v2847_v52, %v3759_v53 }
 0x4f9   :  { %2534 = vmatmul.msk.f32.gmra.mxu2 %vm1179_vm1, %v1430_v18 }
 0x505   :  { %v1314_v17 = vpop.f32.mrf.mxu0 }
 0x50d   :  { %v1574_v62 = vpop.xlane.xlu0 %1573 }
 0x50e   :  { %v1717_v16 = vpop.xlane.xlu2 %1716 }
 0x50f   :  { %2848 = vrcp.f32 %v1717_v16 }
 0x515   :  { %v2849_v21 = vpop.eup %2848 }
 0x516   :  { %v2758_v3 = vpop.permute.xlu2 %2757  ;;  %v1731_v27 = vmul.f32 %v2849_v21, %v3769_v8 }
 0x517   :  { %v2759_v44 = vunpack.i.l.bf16 %v2758_v3  ;;  %v2760_v26 = vunpack.i.h.bf16 %v2758_v3 }
 0x519   :  { %1767 = vmatpush.msra.mxu2 %v2759_v44 }
 0x51b   :  { %1768 = vmatpush.msra.mxu2 %v2760_v26 }
 0x51c   :  { %2551 = vmatmul.msk.f32.vlgmr.msra.gmra.mxu2 %vm1179_vm1, %v1731_v27  ;;  %v3824_v5 = vpop.f32.mrf.mxu0 }
 0x51d   :  { %v1720_v32 = vpop.xlane.xlu1 %1719 }
 0x51e   :  { %2850 = vrcp.f32 %v1720_v32 }
 0x524   :  { %v2851_v11 = vpop.eup %2850 }
 0x525   :  { %v1571_v24 = vpop.xlane.xlu1 %1570  ;;  %v1732_v53 = vmul.f32 %v2851_v11, %v3779_v29 }
 0x526   :  { %2852 = vrcp.f32 %v1571_v24 }
 0x527   :  { %2552 = vmatmul.msk.f32.gmra.mxu2 %vm1179_vm1, %v1732_v53  ;;  %2854 = vrcp.f32 %v1574_v62 }
 0x52c   :  { %v2853_v39 = vpop.eup %2852 }
 0x52d   :  { %v1581_v46 = vmul.f32 %v2853_v39, %v3783_v20  ;;  %v2855_v8 = vpop.eup %2854 }
 0x52e   :  { %v1582_v7 = vmul.f32 %v2855_v8, %v3767_v15 }
 0x52f   :  { %2543 = vmatmul.msk.f32.gmra.mxu0 %vm1179_vm1, %v1581_v46 }
 0x532   :  { %v1466_v1 = vpop.f32.mrf.mxu2 }
 0x533   :  { %1786 = vrot.lane.b32.xlu1 %v1466_v1, %s2933_s16  ;;  %v1904_v1 = vld [vmem:[%s4106_s4 + $0x7] ss:$0 sm:$0xff] }
 0x537   :  { %2544 = vmatmul.msk.f32.gmra.mxu0 %vm1179_vm1, %v1582_v7 }
 0x53d   :  { %v1726_v48 = vpop.xlane.xlu1 %1725 }
 0x54f   :  { %v1723_v29 = vpop.xlane.xlu2 %1722 }
 0x550   :  { %2856 = vrcp.f32 %v1723_v29 }
 0x551   :  { %2858 = vrcp.f32 %v1726_v48 }
 0x552   :  { %v1469_v2 = vpop.f32.mrf.mxu2 }
 0x553   :  { %1788 = vrot.lane.b32.xlu1 %v1469_v2, %s2933_s16 }
 0x556   :  { %v2857_v37 = vpop.eup %2856 }
 0x557   :  { %v3827_v57 = vpop.f32.mrf.mxu0  ;;  %v1733_v20 = vmul.f32 %v2857_v37, %v3799_v49  ;;  %v2859_v15 = vpop.eup %2858  ;;  %v2703_v49 = vld [vmem:[%s4105_s3 + $0x38] sm:$0xff]  }
 0x558   :  { %v1734_v59 = vmul.f32 %v2859_v15, %v3792_v40  ;;  %v2620_v38 = vunpack.c.h.bf16 %v2703_v49  ;;  %v2619_v14 = vunpack.c.l.bf16 %v2703_v49  ;;  %v2020_v49 = vld [vmem:[%s4104_s2 + $0x40] sm:$0xff] }
 0x559   :  { %2553 = vmatmul.msk.f32.gmra.mxu2 %vm1179_vm1, %v1733_v20  ;;  %v2033_v25 = vunpack.c.l.bf16 %v2020_v49 }
 0x55a   :  { %1883 = vmatpush.msrb.mxu3 %v2620_v38  ;;  %v2034_v38 = vunpack.c.h.bf16 %v2020_v49 }
 0x55c   :  { %1884 = vmatpush.msrb.mxu3 %v2619_v14  ;;  %v2031_v14 = vunpack.c.l.bf16 %v2019_v35 }
 0x55e   :  { %1885 = vmatpush.msrb.mxu3 %v2616_v23  ;;  %v2032_v23 = vunpack.c.h.bf16 %v2019_v35 }
 0x55f   :  { %v3831_v50 = vpop.f32.mrf.mxu0 }
 0x560   :  { %1886 = vmatpush.msrb.mxu3 %v2615_v10 }
 0x561   :  { %2554 = vmatmul.msk.f32.gmra.mxu2 %vm1179_vm1, %v1734_v59 }
 0x566   :  { %v1472_v31 = vpop.f32.mrf.mxu2 }
 0x567   :  { %v1618_v36 = vpop.f32.mrf.mxu0 }
 0x568   :  { %1802 = vrot.lane.b32.xlu2 %v1618_v36, %s2932_s15 }
 0x56f   :  { %v1621_v19 = vpop.f32.mrf.mxu0 }
 0x570   :  { %1804 = vrot.lane.b32.xlu0 %v1621_v19, %s2932_s15  ;;  %1790 = vrot.lane.b32.xlu2 %v1472_v31, %s2933_s16 }
 0x57c   :  { %v1475_v22 = vpop.f32.mrf.mxu2 }
 0x57d   :  { %1792 = vrot.lane.b32.xlu0 %v1475_v22, %s2933_s16 }
 0x59f   :  { %v1770_v42 = vpop.f32.mrf.mxu2 }
 0x5a0   :  { %1818 = vrot.lane.b32.xlu1 %v1770_v42, %s2931_s14 }
 0x5a5   :  { %v1787_v0 = vpop.permute.xlu1 %1786 }
 0x5a6   :  { %v1830_v51 = vsel %vm1179_vm1, %v1314_v17, %v1787_v0  ;;  %v2017_v0 = vld [vmem:[%s4104_s2 + $0x1c] sm:$0xff] }
 0x5aa   :  { %v1773_v4 = vpop.f32.mrf.mxu2 }
 0x5ab   :  { %1820 = vrot.lane.b32.xlu1 %v1773_v4, %s2931_s14 }
 0x5ac   :  { %v1624_v40 = vpop.f32.mrf.mxu0 }
 0x5b3   :  { %1806 = vrot.lane.b32.xlu1 %v1624_v40, %s2932_s15 }
 0x5b4   :  { %v1627_v28 = vpop.f32.mrf.mxu0 }
 0x5bb   :  { %1808 = vrot.lane.b32.xlu1 %v1627_v28, %s2932_s15 }
 0x5c2   :  { %v1803_v13 = vpop.permute.xlu2 %1802 }
 0x5c3   :  { %v1834_v63 = vsel %vm673_vm9, %v1830_v51, %v1803_v13  ;;  %v2028_v13 = vunpack.c.h.bf16 %v2017_v0 }
 0x5c5   :  { %v1789_v34 = vpop.permute.xlu1 %1788 }
 0x5c6   :  { %v1831_v60 = vsel %vm1179_vm1, %v3824_v5, %v1789_v34  ;;  %v2027_v34 = vunpack.c.l.bf16 %v2017_v0 }
 0x5ca   :  { %v1791_v3 = vpop.permute.xlu2 %1790 }
 0x5cb   :  { %v1832_v44 = vsel %vm1179_vm1, %v3827_v57, %v1791_v3 }
 0x5dc   :  { %v1776_v30 = vpop.f32.mrf.mxu2 }
 0x5dd   :  { %1822 = vrot.lane.b32.xlu2 %v1776_v30, %s2931_s14  ;;  %v2018_v30 = vld [vmem:[%s4104_s2 + $0x28] sm:$0xff] }
 0x5de   :  { %v2030_v10 = vunpack.c.h.bf16 %v2018_v30 }
 0x5e2   :  { %v1805_v33 = vpop.permute.xlu0 %1804 }
 0x5e3   :  { %v1835_v52 = vsel %vm673_vm9, %v1831_v60, %v1805_v33 }
 0x5e4   :  { %v1779_v54 = vpop.f32.mrf.mxu2 }
 0x5e5   :  { %1824 = vrot.lane.b32.xlu2 %v1779_v54, %s2931_s14  ;;  %v2029_v54 = vunpack.c.l.bf16 %v2018_v30  ;;  %v2721_v30 = vld [vmem:[%s4105_s3 + $0xe8] sm:$0xff]  }
 0x5ef   :  { %v1793_v11 = vpop.permute.xlu0 %1792 }
 0x5f0   :  { %v1833_v53 = vsel %vm1179_vm1, %v3831_v50, %v1793_v11 }
 0x612   :  { %v1819_v43 = vpop.permute.xlu1 %1818 }
 0x613   :  { %v1839_v56 = vsel %vm1838_vm7, %v1834_v63, %v1819_v43  ;;  %v2016_v63 = vld [vmem:[%s4104_s2 + $0x10] sm:$0xff] }
 0x614   :  { %2555 = vmatmul.msk.f32.vlgmr.msrb.gmra.mxu3 %vm812_vm2, %v1839_v56  ;;  %v2025_v56 = vunpack.c.l.bf16 %v2016_v63  ;;  %v2026_v33 = vunpack.c.h.bf16 %v2016_v63  ;;  %v2720_v63 = vld [vmem:[%s4105_s3 + $0xe0] sm:$0xff]  }
 0x61d   :  { %v1821_v18 = vpop.permute.xlu1 %1820 }
 0x61e   :  { %v1840_v16 = vsel %vm1838_vm7, %v1835_v52, %v1821_v18  ;;  %v2015_v52 = vld [vmem:[%s4104_s2 + $0x4] sm:$0xff] }
 0x61f   :  { %2556 = vmatmul.msk.f32.gmra.mxu3 %vm812_vm2, %v1840_v16  ;;  %v2023_v3 = vunpack.c.l.bf16 %v2015_v52 }
 0x625   :  { %v1807_v21 = vpop.permute.xlu1 %1806 }
 0x626   :  { %v1836_v26 = vsel %vm673_vm9, %v1832_v44, %v1807_v21  ;;  %v2024_v21 = vunpack.c.h.bf16 %v2015_v52 }
 0x62d   :  { %v1809_v24 = vpop.permute.xlu1 %1808 }
 0x62e   :  { %v1837_v62 = vsel %vm673_vm9, %v1833_v53, %v1809_v24 }
 0x637   :  { %v1823_v27 = vpop.permute.xlu2 %1822 }
 0x638   :  { %v1841_v32 = vsel %vm1838_vm7, %v1836_v26, %v1823_v27 }
 0x639   :  { %2557 = vmatmul.msk.f32.gmra.mxu3 %vm812_vm2, %v1841_v32 }
 0x63f   :  { %v1825_v39 = vpop.permute.xlu2 %1824 }
 0x640   :  { %v1842_v46 = vsel %vm1838_vm7, %v1837_v62, %v1825_v39 }
 0x641   :  { %2558 = vmatmul.msk.f32.gmra.mxu3 %vm812_vm2, %v1842_v46 }
 0x697   :  { %v1888_v8 = vpop.f32.mrf.mxu3 }
 0x698   :  { %v1900_v7 = vadd.f32 %v1888_v8, %v3472_v45 }
 0x69a   :  { %v3880_v17 = vadd.f32 %v1904_v1, %v1900_v7 }
 0x69c   :  { %v1909_v5 = vsel %vm812_vm2, %v3880_v17, 0.0  ;;  %v1925_v29 = vmul.f32 %v3880_v17, %v3880_v17 }
 0x69d   :  { %1910 = vadd.xlane.f32.xlu0 %v1909_v5 }
 0x69e   :  { %v1929_v48 = vsel %vm812_vm2, %v1925_v29, 0.0 }
 0x69f   :  { %1930 = vadd.xlane.f32.xlu1 %v1929_v48 }
 0x6a2   :  { %v1891_v2 = vpop.f32.mrf.mxu3 }
 0x6a3   :  { %v1901_v37 = vadd.f32 %v1891_v2, %v3478_v61 }
 0x6a5   :  { %v3888_v57 = vadd.f32 %v1904_v1, %v1901_v37  ;;  %v3939_v37 = vld [vmem:[%s4106_s4 + $0x16] ss:$0 sm:$0xff] }
 0x6a7   :  { %v1912_v45 = vsel %vm812_vm2, %v3888_v57, 0.0  ;;  %v1926_v20 = vmul.f32 %v3888_v57, %v3888_v57 }
 0x6a8   :  { %1913 = vadd.xlane.f32.xlu2 %v1912_v45 }
 0x6a9   :  { %v1932_v15 = vsel %vm812_vm2, %v1926_v20, 0.0 }
 0x6aa   :  { %1933 = vadd.xlane.f32.xlu0 %v1932_v15 }
 0x6bc   :  { %v1894_v50 = vpop.f32.mrf.mxu3 }
 0x6bd   :  { %v1902_v59 = vadd.f32 %v1894_v50, %v3485_v12  ;;  %v3944_v50 = vld [vmem:[%s4106_s4 + $0x17] ss:$0 sm:$0xff] }
 0x6bf   :  { %v3896_v36 = vadd.f32 %v1904_v1, %v1902_v59 }
 0x6c1   :  { %v1915_v61 = vsel %vm812_vm2, %v3896_v36, 0.0  ;;  %v1927_v19 = vmul.f32 %v3896_v36, %v3896_v36 }
 0x6c2   :  { %1916 = vadd.xlane.f32.xlu1 %v1915_v61 }
 0x6c3   :  { %v1935_v31 = vsel %vm812_vm2, %v1927_v19, 0.0 }
 0x6c4   :  { %1936 = vadd.xlane.f32.xlu2 %v1935_v31  ;;  %v1897_v22 = vpop.f32.mrf.mxu3 }
 0x6c5   :  { %v1903_v42 = vadd.f32 %v1897_v22, %v3505_v6  ;;  %v2021_v6 = vld [vmem:[%s4104_s2 + $0x4c] sm:$0xff] }
 0x6c6   :  { %v2035_v47 = vunpack.c.l.bf16 %v2021_v6  ;;  %v2036_v55 = vunpack.c.h.bf16 %v2021_v6 }
 0x6c7   :  { %v3904_v4 = vadd.f32 %v1904_v1, %v1903_v42 }
 0x6c8   :  { %2067 = vmatpush.msra.mxu0 %v2035_v47  ;;  %2096 = vmatpush.msrb.mxu1 %v2036_v55 }
 0x6c9   :  { %v1918_v12 = vsel %vm812_vm2, %v3904_v4, 0.0  ;;  %v1928_v40 = vmul.f32 %v3904_v4, %v3904_v4 }
 0x6ca   :  { %1919 = vadd.xlane.f32.xlu0 %v1918_v12  ;;  %2068 = vmatpush.msra.mxu0 %v2033_v25 }
 0x6cb   :  { %v1938_v28 = vsel %vm812_vm2, %v1928_v40, 0.0  ;;  %2097 = vmatpush.msrb.mxu1 %v2034_v38 }
 0x6cc   :  { %1939 = vadd.xlane.f32.xlu1 %v1938_v28  ;;  %2069 = vmatpush.msra.mxu0 %v2031_v14 }
 0x6cd   :  { %2098 = vmatpush.msrb.mxu1 %v2032_v23  ;;  %v2713_v23 = vld [vmem:[%s4105_s3 + $0xa8] sm:$0xff]  }
 0x6ce   :  { %2070 = vmatpush.msra.mxu0 %v2029_v54  ;;  %v2712_v54 = vld [vmem:[%s4105_s3 + $0xa0] sm:$0xff]   ;;  %v2660_v0 = vunpack.c.h.bf16 %v2713_v23 }
 0x6cf   :  { %2099 = vmatpush.msrb.mxu1 %v2030_v10 }
 0x6d0   :  { %2071 = vmatpush.msra.mxu0 %v2027_v34  ;;  %v2692_v34 = vunpack.c.h.bf16 %v2721_v30  ;;  %2252 = vmatpush.msrb.mxu2 %v2660_v0 }
 0x6d1   :  { %2100 = vmatpush.msrb.mxu1 %v2028_v13  ;;  %v2659_v13 = vunpack.c.l.bf16 %v2713_v23 }
 0x6d2   :  { %2072 = vmatpush.msra.mxu0 %v2025_v56  ;;  %2281 = vmatpush.msra.mxu3 %v2692_v34 }
 0x6d3   :  { %2101 = vmatpush.msrb.mxu1 %v2026_v33  ;;  %v2656_v33 = vunpack.c.h.bf16 %v2712_v54  ;;  %2253 = vmatpush.msrb.mxu2 %v2659_v13 }
 0x6d4   :  { %2073 = vmatpush.msra.mxu0 %v2023_v3 }
 0x6d5   :  { %2102 = vmatpush.msrb.mxu1 %v2024_v21  ;;  %2254 = vmatpush.msrb.mxu2 %v2656_v33 }
 0x710   :  { %v1911_v51 = vpop.xlane.xlu0 %1910 }
 0x711   :  { %v1921_v43 = vmul.f32 0.015625, %v1911_v51  ;;  %v2691_v51 = vunpack.c.l.bf16 %v2721_v30  ;;  %v2707_v30 = vld [vmem:[%s4105_s3 + $0x78] sm:$0xff]  }
 0x712   :  { %v1931_v60 = vpop.xlane.xlu1 %1930  ;;  %v2636_v34 = vunpack.c.h.bf16 %v2707_v30 }
 0x713   :  { %v1945_v18 = vmul.f32 %v1921_v43, %v1921_v43  ;;  %v1941_v16 = vmul.f32 0.015625, %v1931_v60  ;;  %v1953_v48 = vsub.f32 %v3880_v17, %v1921_v43  ;;  %v2688_v60 = vunpack.c.h.bf16 %v2720_v63  ;;  %2282 = vmatpush.msra.mxu3 %v2691_v51  ;;  %v2706_v51 = vld [vmem:[%s4105_s3 + $0x70] sm:$0xff]  }
 0x714   :  { %v2632_v33 = vunpack.c.h.bf16 %v2706_v51 }
 0x715   :  { %v1949_v44 = vsub.f32 %v1941_v16, %v1945_v18  ;;  %2283 = vmatpush.msra.mxu3 %v2688_v60 }
 0x717   :  { %v1957_v26 = vadd.f32 1e-06, %v1949_v44 }
 0x719   :  { %2860 = vrsqrt.f32 %v1957_v26  ;;  %vm1967_vm8 = vweird.f32 %v1957_v26 }
 0x71b   :  { %v1914_v27 = vpop.xlane.xlu2 %1913 }
 0x71c   :  { %v1922_v32 = vmul.f32 0.015625, %v1914_v27 }
 0x71d   :  { %v1934_v11 = vpop.xlane.xlu0 %1933 }
 0x71e   :  { %v1946_v24 = vmul.f32 %v1922_v32, %v1922_v32  ;;  %v1942_v53 = vmul.f32 0.015625, %v1934_v11  ;;  %v1954_v12 = vsub.f32 %v3888_v57, %v1922_v32 }
 0x71f   :  { %v2861_v62 = vpop.eup %2860 }
 0x720   :  { %v1962_v39 = vmul.f32 %v2861_v62, %v1957_v26  ;;  %v1950_v46 = vsub.f32 %v1942_v53, %v1946_v24  ;;  %vm1968_vm9 = vweird.f32 %v2861_v62 }
 0x721   :  { %vm1969_vm10 = vmor %vm1967_vm8, %vm1968_vm9 }
 0x722   :  { %v1963_v8 = vmul.f32 %v2861_v62, %v1962_v39  ;;  %v1958_v1 = vadd.f32 1e-06, %v1950_v46 }
 0x724   :  { %v1964_v7 = vmul.f32 0.5, %v1963_v8  ;;  %2862 = vrsqrt.f32 %v1958_v1  ;;  %vm1977_vm12 = vweird.f32 %v1958_v1 }
 0x726   :  { %v1965_v5 = vsub.f32 1.5, %v1964_v7 }
 0x728   :  { %v1966_v29 = vmul.f32 %v2861_v62, %v1965_v5 }
 0x72a   :  { %v2863_v2 = vpop.eup %2862  ;;  %v1970_v45 = vsel %vm1969_vm10, %v2861_v62, %v1966_v29 }
 0x72b   :  { %v2001_v20 = vmul.f32 %v1970_v45, %v1953_v48  ;;  %v1972_v15 = vmul.f32 %v2863_v2, %v1958_v1  ;;  %vm1978_vm11 = vweird.f32 %v2863_v2 }
 0x72c   :  { %vm1979_vm13 = vmor %vm1977_vm12, %vm1978_vm11 }
 0x72d   :  { %v2006_v59 = vmul.f32 %v3939_v37, %v2001_v20  ;;  %v1973_v61 = vmul.f32 %v2863_v2, %v1972_v15  ;;  %v2655_v15 = vunpack.c.l.bf16 %v2712_v54  ;;  %v2715_v54 = vld [vmem:[%s4105_s3 + $0xb8] sm:$0xff]  }
 0x72e   :  { %v2668_v13 = vunpack.c.h.bf16 %v2715_v54 }
 0x72f   :  { %v1974_v19 = vmul.f32 0.5, %v1973_v61  ;;  %v2011_v31 = vadd.f32 %v3944_v50, %v2006_v59  ;;  %v2687_v59 = vunpack.c.l.bf16 %v2720_v63  ;;  %v2711_v61 = vld [vmem:[%s4105_s3 + $0x98] sm:$0xff]   ;;  %2255 = vmatpush.msrb.mxu2 %v2655_v15  ;;  %v2714_v63 = vld [vmem:[%s4105_s3 + $0xb0] sm:$0xff]  }
 0x730   :  { %v2664_v60 = vunpack.c.h.bf16 %v2714_v63 }
 0x731   :  { %v1975_v22 = vsub.f32 1.5, %v1974_v19  ;;  %2560 = vmatmul.msk.f32.vlgmr.msra.gmra.mxu0 %vm812_vm2, %v2011_v31  ;;  %2564 = vmatmul.msk.f32.vlgmr.msrb.gmra.mxu1 %vm812_vm2, %v2011_v31  ;;  %v2719_v19 = vld [vmem:[%s4105_s3 + $0xd8] sm:$0xff]   ;;  %v2652_v31 = vunpack.c.h.bf16 %v2711_v61 }
 0x732   :  { %2284 = vmatpush.msra.mxu3 %v2687_v59 }
 0x733   :  { %v1976_v42 = vmul.f32 %v2863_v2, %v1975_v22  ;;  %2256 = vmatpush.msrb.mxu2 %v2652_v31  ;;  %v2683_v22 = vunpack.c.l.bf16 %v2719_v19 }
 0x735   :  { %v1917_v40 = vpop.xlane.xlu1 %1916  ;;  %v1980_v28 = vsel %vm1979_vm13, %v2863_v2, %v1976_v42  ;;  %v2710_v42 = vld [vmem:[%s4105_s3 + $0x90] sm:$0xff]  }
 0x736   :  { %v1923_v41 = vmul.f32 0.015625, %v1917_v40  ;;  %v2002_v9 = vmul.f32 %v1980_v28, %v1954_v12  ;;  %v2718_v12 = vld [vmem:[%s4105_s3 + $0xd0] sm:$0xff]   ;;  %v2648_v40 = vunpack.c.h.bf16 %v2710_v42 }
 0x737   :  { %v1937_v58 = vpop.xlane.xlu2 %1936  ;;  %v2680_v28 = vunpack.c.h.bf16 %v2718_v12 }
 0x738   :  { %v1947_v6 = vmul.f32 %v1923_v41, %v1923_v41  ;;  %v1943_v47 = vmul.f32 0.015625, %v1937_v58  ;;  %v2007_v55 = vmul.f32 %v3939_v37, %v2002_v9  ;;  %v1955_v24 = vsub.f32 %v3896_v36, %v1923_v41  ;;  %v2709_v58 = vld [vmem:[%s4105_s3 + $0x88] sm:$0xff]  }
 0x739   :  { %v2647_v41 = vunpack.c.l.bf16 %v2710_v42  ;;  %v2679_v9 = vunpack.c.l.bf16 %v2718_v12 }
 0x73a   :  { %v1951_v49 = vsub.f32 %v1943_v47, %v1947_v6  ;;  %v2012_v25 = vadd.f32 %v3944_v50, %v2007_v55  ;;  %v2717_v6 = vld [vmem:[%s4105_s3 + $0xc8] sm:$0xff]   ;;  %v2644_v47 = vunpack.c.h.bf16 %v2709_v58 }
 0x73b   :  { %v2676_v55 = vunpack.c.h.bf16 %v2717_v6 }
 0x73c   :  { %v1959_v38 = vadd.f32 1e-06, %v1951_v49  ;;  %2561 = vmatmul.msk.f32.gmra.mxu0 %vm812_vm2, %v2012_v25  ;;  %2565 = vmatmul.msk.f32.gmra.mxu1 %vm812_vm2, %v2012_v25  ;;  %v2643_v49 = vunpack.c.l.bf16 %v2709_v58  ;;  %v2675_v25 = vunpack.c.l.bf16 %v2717_v6 }
 0x73d   :  { %v1920_v35 = vpop.xlane.xlu0 %1919 }
 0x73e   :  { %2864 = vrsqrt.f32 %v1959_v38  ;;  %v1924_v14 = vmul.f32 0.015625, %v1920_v35  ;;  %vm1987_vm15 = vweird.f32 %v1959_v38  ;;  %v2716_v35 = vld [vmem:[%s4105_s3 + $0xc0] sm:$0xff]  }
 0x73f   :  { %v1940_v10 = vpop.xlane.xlu1 %1939  ;;  %v2672_v23 = vunpack.c.h.bf16 %v2716_v35  ;;  %v2671_v0 = vunpack.c.l.bf16 %v2716_v35 }
 0x740   :  { %v1948_v43 = vmul.f32 %v1924_v14, %v1924_v14  ;;  %v1944_v56 = vmul.f32 0.015625, %v1940_v10  ;;  %v1956_v29 = vsub.f32 %v3904_v4, %v1924_v14 }
 0x742   :  { %v1952_v52 = vsub.f32 %v1944_v56, %v1948_v43  ;;  %v2635_v43 = vunpack.c.l.bf16 %v2707_v30  ;;  %v2667_v56 = vunpack.c.l.bf16 %v2715_v54 }
 0x744   :  { %v2865_v18 = vpop.eup %2864  ;;  %v1960_v16 = vadd.f32 1e-06, %v1952_v52  ;;  %v2559_v52 = vld [vmem:[%s4106_s4 + $0x10] ss:$8 sm:$0x3] }
 0x745   :  { %v1982_v3 = vmul.f32 %v2865_v18, %v1959_v38  ;;  %vm1988_vm14 = vweird.f32 %v2865_v18  ;;  %v2708_v38 = vld [vmem:[%s4105_s3 + $0x80] sm:$0xff]  }
 0x746   :  { %2866 = vrsqrt.f32 %v1960_v16  ;;  %vm1989_vm0 = vmor %vm1987_vm15, %vm1988_vm14  ;;  %vm1997_vm3 = vweird.f32 %v1960_v16  ;;  %v2640_v14 = vunpack.c.h.bf16 %v2708_v38  ;;  %v2639_v10 = vunpack.c.l.bf16 %v2708_v38 }
 0x747   :  { %v1983_v21 = vmul.f32 %v2865_v18, %v1982_v3  ;;  %v4016_v3 = vperm.slane %v2559_v52, 0 }
 0x749   :  { %v1984_v44 = vmul.f32 0.5, %v1983_v21  ;;  %v4018_v21 = vperm.slane %v2559_v52, 1 }
 0x74b   :  { %v1985_v26 = vsub.f32 1.5, %v1984_v44 }
 0x74c   :  { %v2867_v27 = vpop.eup %2866 }
 0x74d   :  { %v1986_v32 = vmul.f32 %v2865_v18, %v1985_v26  ;;  %v1992_v11 = vmul.f32 %v2867_v27, %v1960_v16  ;;  %vm1998_vm1 = vweird.f32 %v2867_v27  ;;  %v2663_v16 = vunpack.c.l.bf16 %v2714_v63 }
 0x74e   :  { %vm1999_vm4 = vmor %vm1997_vm3, %vm1998_vm1  ;;  %vm2467_vm1 = vcmask 253952  }
 0x74f   :  { %v1993_v53 = vmul.f32 %v2867_v27, %v1992_v11  ;;  %v1990_v62 = vsel %vm1989_vm0, %v2865_v18, %v1986_v32  ;;  %v2631_v18 = vunpack.c.l.bf16 %v2706_v51 }
 0x750   :  { %v2003_v39 = vmul.f32 %v1990_v62, %v1955_v24 }
 0x751   :  { %v1994_v46 = vmul.f32 0.5, %v1993_v53 }
 0x752   :  { %v2008_v8 = vmul.f32 %v3939_v37, %v2003_v39 }
 0x753   :  { %v1995_v1 = vsub.f32 1.5, %v1994_v46 }
 0x754   :  { %v2013_v7 = vadd.f32 %v3944_v50, %v2008_v8 }
 0x755   :  { %v1996_v5 = vmul.f32 %v2867_v27, %v1995_v1 }
 0x756   :  { %2562 = vmatmul.msk.f32.gmra.mxu0 %vm812_vm2, %v2013_v7  ;;  %2566 = vmatmul.msk.f32.gmra.mxu1 %vm812_vm2, %v2013_v7 }
 0x757   :  { %v2000_v48 = vsel %vm1999_vm4, %v2867_v27, %v1996_v5 }
 0x758   :  { %v2004_v2 = vmul.f32 %v2000_v48, %v1956_v29 }
 0x75a   :  { %v2009_v45 = vmul.f32 %v3939_v37, %v2004_v2  ;;  %v2684_v37 = vunpack.c.h.bf16 %v2719_v19 }
 0x75c   :  { %v2014_v20 = vadd.f32 %v3944_v50, %v2009_v45  ;;  %2285 = vmatpush.msra.mxu3 %v2684_v37  ;;  %v2651_v50 = vunpack.c.l.bf16 %v2711_v61 }
 0x75e   :  { %2563 = vmatmul.msk.f32.gmra.mxu0 %vm812_vm2, %v2014_v20  ;;  %2567 = vmatmul.msk.f32.gmra.mxu1 %vm812_vm2, %v2014_v20 }
 0x75f   :  { %2257 = vmatpush.msrb.mxu2 %v2651_v50  ;;  %2286 = vmatpush.msra.mxu3 %v2683_v22 }
 0x761   :  { %2258 = vmatpush.msrb.mxu2 %v2648_v40  ;;  %2287 = vmatpush.msra.mxu3 %v2680_v28 }
 0x763   :  { %2259 = vmatpush.msrb.mxu2 %v2647_v41  ;;  %2288 = vmatpush.msra.mxu3 %v2679_v9 }
 0x765   :  { %2260 = vmatpush.msrb.mxu2 %v2644_v47  ;;  %2289 = vmatpush.msra.mxu3 %v2676_v55 }
 0x767   :  { %2261 = vmatpush.msrb.mxu2 %v2643_v49  ;;  %2290 = vmatpush.msra.mxu3 %v2675_v25 }
 0x769   :  { %2262 = vmatpush.msrb.mxu2 %v2640_v14  ;;  %2291 = vmatpush.msra.mxu3 %v2672_v23 }
 0x76b   :  { %2263 = vmatpush.msrb.mxu2 %v2639_v10  ;;  %2292 = vmatpush.msra.mxu3 %v2671_v0 }
 0x76d   :  { %2264 = vmatpush.msrb.mxu2 %v2636_v34  ;;  %2293 = vmatpush.msra.mxu3 %v2668_v13 }
 0x76f   :  { %2265 = vmatpush.msrb.mxu2 %v2635_v43  ;;  %2294 = vmatpush.msra.mxu3 %v2667_v56 }
 0x771   :  { %2266 = vmatpush.msrb.mxu2 %v2632_v33  ;;  %2295 = vmatpush.msra.mxu3 %v2664_v60 }
 0x773   :  { %2267 = vmatpush.msrb.mxu2 %v2631_v18  ;;  %2296 = vmatpush.msra.mxu3 %v2663_v16 }
 0x7ae   :  { %v2075_v44 = vpop.f32.mrf.mxu0  ;;  %v2104_v26 = vpop.f32.mrf.mxu1 }
 0x7af   :  { %v2076_v27 = vadd.f32 %v2075_v44, %v4016_v3  ;;  %v2105_v32 = vadd.f32 %v2104_v26, %v4018_v21 }
 0x7b1   :  { %v2116_v11 = vmul.f32 %v2076_v27, %v2076_v27  ;;  %v2117_v24 = vmul.f32 %v2105_v32, %v2105_v32 }
 0x7b3   :  { %v2124_v53 = vmul.f32 %v2116_v11, %v2076_v27  ;;  %v2125_v62 = vmul.f32 %v2117_v24, %v2105_v32 }
 0x7b5   :  { %v2132_v39 = vmul.f32 0.044715, %v2124_v53  ;;  %v2133_v46 = vmul.f32 0.044715, %v2125_v62 }
 0x7b7   :  { %v2140_v8 = vadd.f32 %v2132_v39, %v2076_v27  ;;  %v2141_v1 = vadd.f32 %v2133_v46, %v2105_v32 }
 0x7b9   :  { %v2148_v7 = vmul.f32 0.7978846, %v2140_v8  ;;  %v2149_v5 = vmul.f32 0.7978846, %v2141_v1  ;;  %v2078_v29 = vpop.f32.mrf.mxu0  ;;  %v2107_v48 = vpop.f32.mrf.mxu1 }
 0x7ba   :  { %v2079_v2 = vadd.f32 %v2078_v29, %v4016_v3  ;;  %v2108_v45 = vadd.f32 %v2107_v48, %v4018_v21 }
 0x7bb   :  { %2868 = vtanh.f32 %v2148_v7 }
 0x7bc   :  { %2870 = vtanh.f32 %v2149_v5  ;;  %v2118_v20 = vmul.f32 %v2079_v2, %v2079_v2  ;;  %v2119_v15 = vmul.f32 %v2108_v45, %v2108_v45 }
 0x7be   :  { %v2126_v59 = vmul.f32 %v2118_v20, %v2079_v2  ;;  %v2127_v61 = vmul.f32 %v2119_v15, %v2108_v45 }
 0x7c0   :  { %v2134_v19 = vmul.f32 0.044715, %v2126_v59  ;;  %v2135_v31 = vmul.f32 0.044715, %v2127_v61 }
 0x7c1   :  { %v2869_v37 = vpop.eup %2868 }
 0x7c2   :  { %v2871_v50 = vpop.eup %2870  ;;  %v2164_v22 = vadd.f32 1.0, %v2869_v37  ;;  %v2142_v42 = vadd.f32 %v2134_v19, %v2079_v2  ;;  %v2143_v12 = vadd.f32 %v2135_v31, %v2108_v45 }
 0x7c3   :  { %v2165_v40 = vadd.f32 1.0, %v2871_v50 }
 0x7c4   :  { %v2172_v28 = vmul.f32 0.5, %v2164_v22  ;;  %v2150_v41 = vmul.f32 0.7978846, %v2142_v42  ;;  %v2151_v9 = vmul.f32 0.7978846, %v2143_v12 }
 0x7c5   :  { %v2173_v58 = vmul.f32 0.5, %v2165_v40 }
 0x7c6   :  { %v2180_v6 = vmul.f32 %v2172_v28, %v2076_v27  ;;  %2872 = vtanh.f32 %v2150_v41 }
 0x7c7   :  { %v2181_v47 = vmul.f32 %v2173_v58, %v2105_v32  ;;  %2874 = vtanh.f32 %v2151_v9 }
 0x7c8   :  { %2268 = vmatmul.f32.vlgmr.msrb.gmra.mxu2 %v2180_v6 }
 0x7c9   :  { %2297 = vmatmul.f32.vlgmr.msra.gmra.mxu3 %v2181_v47 }
 0x7cc   :  { %v2873_v55 = vpop.eup %2872 }
 0x7cd   :  { %v2875_v49 = vpop.eup %2874  ;;  %v2166_v25 = vadd.f32 1.0, %v2873_v55 }
 0x7ce   :  { %v2167_v38 = vadd.f32 1.0, %v2875_v49 }
 0x7cf   :  { %v2174_v35 = vmul.f32 0.5, %v2166_v25  ;;  %v2314_v25 = vld [vmem:[%s4106_s4 + $0x11] ss:$0 sm:$0xff] }
 0x7d0   :  { %v2175_v14 = vmul.f32 0.5, %v2167_v38 }
 0x7d1   :  { %v2182_v23 = vmul.f32 %v2174_v35, %v2079_v2 }
 0x7d2   :  { %v2183_v30 = vmul.f32 %v2175_v14, %v2108_v45 }
 0x7d3   :  { %v2081_v54 = vpop.f32.mrf.mxu0  ;;  %v2110_v10 = vpop.f32.mrf.mxu1  ;;  %2271 = vmatmul.f32.gmra.mxu2 %v2182_v23 }
 0x7d4   :  { %v2082_v0 = vadd.f32 %v2081_v54, %v4016_v3  ;;  %v2111_v34 = vadd.f32 %v2110_v10, %v4018_v21  ;;  %2300 = vmatmul.f32.gmra.mxu3 %v2183_v30 }
 0x7d6   :  { %v2120_v13 = vmul.f32 %v2082_v0, %v2082_v0  ;;  %v2121_v51 = vmul.f32 %v2111_v34, %v2111_v34 }
 0x7d8   :  { %v2128_v63 = vmul.f32 %v2120_v13, %v2082_v0  ;;  %v2129_v43 = vmul.f32 %v2121_v51, %v2111_v34 }
 0x7da   :  { %v2136_v56 = vmul.f32 0.044715, %v2128_v63  ;;  %v2137_v33 = vmul.f32 0.044715, %v2129_v43 }
 0x7db   :  { %v2084_v60 = vpop.f32.mrf.mxu0  ;;  %v2113_v52 = vpop.f32.mrf.mxu1 }
 0x7dc   :  { %v2085_v18 = vadd.f32 %v2084_v60, %v4016_v3  ;;  %v2114_v16 = vadd.f32 %v2113_v52, %v4018_v21  ;;  %v2144_v44 = vadd.f32 %v2136_v56, %v2082_v0  ;;  %v2145_v26 = vadd.f32 %v2137_v33, %v2111_v34 }
 0x7de   :  { %v2122_v27 = vmul.f32 %v2085_v18, %v2085_v18  ;;  %v2123_v32 = vmul.f32 %v2114_v16, %v2114_v16  ;;  %v2152_v11 = vmul.f32 0.7978846, %v2144_v44  ;;  %v2153_v24 = vmul.f32 0.7978846, %v2145_v26 }
 0x7e0   :  { %v2130_v53 = vmul.f32 %v2122_v27, %v2085_v18  ;;  %v2131_v62 = vmul.f32 %v2123_v32, %v2114_v16  ;;  %2876 = vtanh.f32 %v2152_v11 }
 0x7e1   :  { %2878 = vtanh.f32 %v2153_v24 }
 0x7e2   :  { %v2138_v39 = vmul.f32 0.044715, %v2130_v53  ;;  %v2139_v46 = vmul.f32 0.044715, %v2131_v62 }
 0x7e4   :  { %v2146_v8 = vadd.f32 %v2138_v39, %v2085_v18  ;;  %v2147_v1 = vadd.f32 %v2139_v46, %v2114_v16 }
 0x7e6   :  { %v2877_v7 = vpop.eup %2876  ;;  %v2154_v5 = vmul.f32 0.7978846, %v2146_v8  ;;  %v2155_v29 = vmul.f32 0.7978846, %v2147_v1 }
 0x7e7   :  { %v2879_v3 = vpop.eup %2878  ;;  %v2168_v48 = vadd.f32 1.0, %v2877_v7 }
 0x7e8   :  { %v2169_v21 = vadd.f32 1.0, %v2879_v3  ;;  %2880 = vtanh.f32 %v2154_v5 }
 0x7e9   :  { %v2176_v2 = vmul.f32 0.5, %v2168_v48  ;;  %2882 = vtanh.f32 %v2155_v29 }
 0x7ea   :  { %v2177_v45 = vmul.f32 0.5, %v2169_v21 }
 0x7eb   :  { %v2184_v20 = vmul.f32 %v2176_v2, %v2082_v0 }
 0x7ec   :  { %v2185_v15 = vmul.f32 %v2177_v45, %v2111_v34 }
 0x7ed   :  { %2274 = vmatmul.f32.gmra.mxu2 %v2184_v20 }
 0x7ee   :  { %v2881_v59 = vpop.eup %2880  ;;  %2303 = vmatmul.f32.gmra.mxu3 %v2185_v15 }
 0x7ef   :  { %v2883_v61 = vpop.eup %2882  ;;  %v2170_v19 = vadd.f32 1.0, %v2881_v59 }
 0x7f0   :  { %v2171_v31 = vadd.f32 1.0, %v2883_v61 }
 0x7f1   :  { %v2178_v37 = vmul.f32 0.5, %v2170_v19 }
 0x7f2   :  { %v2179_v50 = vmul.f32 0.5, %v2171_v31 }
 0x7f3   :  { %v2186_v22 = vmul.f32 %v2178_v37, %v2085_v18 }
 0x7f4   :  { %v2187_v42 = vmul.f32 %v2179_v50, %v2114_v16 }
 0x7f5   :  { %2277 = vmatmul.f32.gmra.mxu2 %v2186_v22 }
 0x7f6   :  { %2306 = vmatmul.f32.gmra.mxu3 %v2187_v42 }
 0x84b   :  { %v2269_v12 = vpop.f32.mrf.mxu2 }
 0x84c   :  { %v2298_v40 = vpop.f32.mrf.mxu3 }
 0x84d   :  { %v2299_v51 = vadd.f32 %v2298_v40, %v2269_v12 }
 0x84f   :  { %v2310_v43 = vadd.f32 %v2299_v51, %v3880_v17 }
 0x851   :  { %v4054_v33 = vadd.f32 %v2314_v25, %v2310_v43 }
 0x853   :  { %v2335_v52 = vmul.f32 %v4054_v33, %v4054_v33  ;;  %v2319_v18 = vsel %vm812_vm2, %v4054_v33, 0.0 }
 0x855   :  { %v2339_v16 = vsel %vm812_vm2, %v2335_v52, 0.0 }
 0x856   :  { %v2272_v28 = vpop.f32.mrf.mxu2 }
 0x857   :  { %v2301_v41 = vpop.f32.mrf.mxu3 }
 0x858   :  { %v2302_v9 = vadd.f32 %v2301_v41, %v2272_v28  ;;  %v2426_v41 = vld [vmem:[%s4106_s4 + $0x23] ss:$0 sm:$0xff] }
 0x85a   :  { %v2311_v55 = vadd.f32 %v2302_v9, %v3888_v57 }
 0x85c   :  { %v4035_v35 = vadd.f32 %v2314_v25, %v2311_v55 }
 0x85e   :  { %v2336_v57 = vmul.f32 %v4035_v35, %v4035_v35  ;;  %v2322_v60 = vsel %vm812_vm2, %v4035_v35, 0.0 }
 0x860   :  { %v2342_v0 = vsel %vm812_vm2, %v2336_v57, 0.0  ;;  %v2420_v57 = vld [vmem:[%s4106_s4 + $0x21] ss:$0 sm:$0xff] }
 0x870   :  { %v2275_v58 = vpop.f32.mrf.mxu2 }
 0x871   :  { %v2304_v6 = vpop.f32.mrf.mxu3 }
 0x872   :  { %v2305_v47 = vadd.f32 %v2304_v6, %v2275_v58 }
 0x874   :  { %v2312_v49 = vadd.f32 %v2305_v47, %v3896_v36 }
 0x876   :  { %v4033_v38 = vadd.f32 %v2314_v25, %v2312_v49 }
 0x878   :  { %v2325_v14 = vsel %vm812_vm2, %v4033_v38, 0.0  ;;  %v2278_v23 = vpop.f32.mrf.mxu2 }
 0x879   :  { %v2307_v30 = vpop.f32.mrf.mxu3  ;;  %2326 = vadd.xlane.f32.xlu1 %v2325_v14  ;;  %v2415_v14 = vld [vmem:[%s4106_s4 + $0x20] ss:$0 sm:$0xff] }
 0x87a   :  { %v2308_v54 = vadd.f32 %v2307_v30, %v2278_v23 }
 0x87c   :  { %v2313_v10 = vadd.f32 %v2308_v54, %v3904_v4  ;;  %v2337_v4 = vmul.f32 %v4033_v38, %v4033_v38 }
 0x87e   :  { %v4042_v36 = vadd.f32 %v2314_v25, %v2313_v10  ;;  %v2345_v56 = vsel %vm812_vm2, %v2337_v4, 0.0 }
 0x880   :  { %v2328_v34 = vsel %vm812_vm2, %v4042_v36, 0.0  ;;  %v2338_v13 = vmul.f32 %v4042_v36, %v4042_v36 }
 0x881   :  { %2343 = vadd.xlane.f32.xlu1 %v2342_v0  ;;  %2329 = vadd.xlane.f32.xlu2 %v2328_v34 }
 0x882   :  { %v2348_v63 = vsel %vm812_vm2, %v2338_v13, 0.0 }
 0x883   :  { %2349 = vadd.xlane.f32.xlu0 %v2348_v63 }
 0x889   :  { %2346 = vadd.xlane.f32.xlu2 %v2345_v56 }
 0x88b   :  { %2323 = vadd.xlane.f32.xlu0 %v2322_v60 }
 0x891   :  { %2320 = vadd.xlane.f32.xlu2 %v2319_v18 }
 0x893   :  { %2340 = vadd.xlane.f32.xlu0 %v2339_v16 }
 0x89a   :  { %2429 = vperm.xlu1 %2766, %v2426_v41  }
 0x8ec   :  { %v2327_v17 = vpop.xlane.xlu1 %2326 }
 0x8ed   :  { %v4063_v24 = vmul.f32 0.015625, %v2327_v17 }
 0x8ef   :  { %v2357_v46 = vmul.f32 %v4063_v24, %v4063_v24  ;;  %v2365_v13 = vsub.f32 %v4033_v38, %v4063_v24 }
 0x8f4   :  { %v2330_v44 = vpop.xlane.xlu2 %2329  ;;  %v2344_v1 = vpop.xlane.xlu1 %2343 }
 0x8f5   :  { %v2334_v26 = vmul.f32 0.015625, %v2330_v44  ;;  %v2352_v3 = vmul.f32 0.015625, %v2344_v1  ;;  %v2425_v1 = vld [vmem:[%s4106_s4 + $0x22] ss:$0 sm:$0xff] }
 0x8f6   :  { %v2350_v27 = vpop.xlane.xlu0 %2349 }
 0x8f7   :  { %v2358_v32 = vmul.f32 %v2334_v26, %v2334_v26  ;;  %v2354_v11 = vmul.f32 0.015625, %v2350_v27  ;;  %v2366_v55 = vsub.f32 %v4042_v36, %v2334_v26 }
 0x8f9   :  { %v2362_v53 = vsub.f32 %v2354_v11, %v2358_v32 }
 0x8fb   :  { %v2370_v62 = vadd.f32 1e-06, %v2362_v53 }
 0x8fc   :  { %v2347_v39 = vpop.xlane.xlu2 %2346 }
 0x8fd   :  { %2884 = vrsqrt.f32 %v2370_v62  ;;  %v2353_v8 = vmul.f32 0.015625, %v2347_v39  ;;  %vm2407_vm6 = vweird.f32 %v2370_v62 }
 0x8fe   :  { %v2324_v7 = vpop.xlane.xlu0 %2323 }
 0x8ff   :  { %v2361_v5 = vsub.f32 %v2353_v8, %v2357_v46  ;;  %v4067_v29 = vmul.f32 0.015625, %v2324_v7 }
 0x901   :  { %v2369_v48 = vadd.f32 1e-06, %v2361_v5  ;;  %v2356_v21 = vmul.f32 %v4067_v29, %v4067_v29  ;;  %v2364_v18 = vsub.f32 %v4035_v35, %v4067_v29 }
 0x903   :  { %v2885_v2 = vpop.eup %2884  ;;  %2886 = vrsqrt.f32 %v2369_v48  ;;  %v2360_v45 = vsub.f32 %v2352_v3, %v2356_v21  ;;  %vm2397_vm8 = vweird.f32 %v2369_v48 }
 0x904   :  { %v2402_v20 = vmul.f32 %v2885_v2, %v2370_v62  ;;  %v2321_v15 = vpop.xlane.xlu2 %2320  ;;  %vm2408_vm5 = vweird.f32 %v2885_v2 }
 0x905   :  { %v2368_v59 = vadd.f32 1e-06, %v2360_v45  ;;  %v4071_v61 = vmul.f32 0.015625, %v2321_v15  ;;  %vm2409_vm7 = vmor %vm2407_vm6, %vm2408_vm5 }
 0x906   :  { %v2403_v19 = vmul.f32 %v2885_v2, %v2402_v20  ;;  %v2341_v31 = vpop.xlane.xlu0 %2340 }
 0x907   :  { %2888 = vrsqrt.f32 %v2368_v59  ;;  %v2355_v37 = vmul.f32 %v4071_v61, %v4071_v61  ;;  %v2351_v22 = vmul.f32 0.015625, %v2341_v31  ;;  %vm2387_vm12 = vweird.f32 %v2368_v59 }
 0x908   :  { %v2404_v50 = vmul.f32 0.5, %v2403_v19  ;;  %v2363_v62 = vsub.f32 %v4054_v33, %v4071_v61 }
 0x909   :  { %v2887_v42 = vpop.eup %2886  ;;  %v2359_v28 = vsub.f32 %v2351_v22, %v2355_v37 }
 0x90a   :  { %v2405_v12 = vsub.f32 1.5, %v2404_v50  ;;  %v2392_v40 = vmul.f32 %v2887_v42, %v2369_v48  ;;  %vm2398_vm9 = vweird.f32 %v2887_v42 }
 0x90b   :  { %v2367_v6 = vadd.f32 1e-06, %v2359_v28  ;;  %vm2399_vm10 = vmor %vm2397_vm8, %vm2398_vm9 }
 0x90c   :  { %v2406_v9 = vmul.f32 %v2885_v2, %v2405_v12  ;;  %v2393_v58 = vmul.f32 %v2887_v42, %v2392_v40  ;;  %v2430_v7 = vpop.permute.xlu1 %2429 }
 0x90d   :  { %v2889_v47 = vpop.eup %2888  ;;  %2890 = vrsqrt.f32 %v2367_v6  ;;  %vm2377_vm15 = vweird.f32 %v2367_v6 }
 0x90e   :  { %v2410_v49 = vsel %vm2409_vm7, %v2885_v2, %v2406_v9  ;;  %v2394_v25 = vmul.f32 0.5, %v2393_v58  ;;  %v2382_v23 = vmul.f32 %v2889_v47, %v2368_v59  ;;  %vm2388_vm11 = vweird.f32 %v2889_v47 }
 0x90f   :  { %v2414_v30 = vmul.f32 %v2410_v49, %v2366_v55  ;;  %vm2389_vm13 = vmor %vm2387_vm12, %vm2388_vm11 }
 0x910   :  { %v2395_v54 = vsub.f32 1.5, %v2394_v25  ;;  %v2383_v10 = vmul.f32 %v2889_v47, %v2382_v23 }
 0x911   :  { %v2419_v0 = vmul.f32 %v2415_v14, %v2414_v30 }
 0x912   :  { %v2396_v34 = vmul.f32 %v2887_v42, %v2395_v54  ;;  %v2384_v36 = vmul.f32 0.5, %v2383_v10 }
 0x913   :  { %v2424_v51 = vadd.f32 %v2420_v57, %v2419_v0  ;;  %v2891_v43 = vpop.eup %2890 }
 0x914   :  { %v2400_v63 = vsel %vm2399_vm10, %v2887_v42, %v2396_v34  ;;  %v2385_v4 = vsub.f32 1.5, %v2384_v36  ;;  %v2372_v52 = vmul.f32 %v2891_v43, %v2367_v6  ;;  %vm2378_vm14 = vweird.f32 %v2891_v43 }
 0x915   :  { %2568 = vmatpush.xpose.msk.msrb.mxu0 %vm812_vm2, %v2424_v51  ;;  %v2413_v56 = vmul.f32 %v2400_v63, %v2365_v13  ;;  %vm2379_vm0 = vmor %vm2377_vm15, %vm2378_vm14 }
 0x916   :  { %v2386_v60 = vmul.f32 %v2889_v47, %v2385_v4  ;;  %v2373_v44 = vmul.f32 %v2891_v43, %v2372_v52 }
 0x917   :  { %v2418_v16 = vmul.f32 %v2415_v14, %v2413_v56 }
 0x918   :  { %v2390_v17 = vsel %vm2389_vm13, %v2889_v47, %v2386_v60  ;;  %v2374_v27 = vmul.f32 0.5, %v2373_v44 }
 0x919   :  { %v2412_v38 = vmul.f32 %v2390_v17, %v2364_v18  ;;  %v2423_v26 = vadd.f32 %v2420_v57, %v2418_v16 }
 0x91a   :  { %v2375_v11 = vsub.f32 1.5, %v2374_v27 }
 0x91b   :  { %v2417_v32 = vmul.f32 %v2415_v14, %v2412_v38  ;;  %2569 = vmatpush.xpose.msk.msrb.mxu0 %vm812_vm2, %v2423_v26 }
 0x91c   :  { %v2376_v53 = vmul.f32 %v2891_v43, %v2375_v11 }
 0x91d   :  { %v2422_v24 = vadd.f32 %v2420_v57, %v2417_v32 }
 0x91e   :  { %v2380_v35 = vsel %vm2379_vm0, %v2891_v43, %v2376_v53 }
 0x91f   :  { %2570 = vmatpush.xpose.msk.msrb.mxu0 %vm812_vm2, %v2422_v24  ;;  %v2411_v39 = vmul.f32 %v2380_v35, %v2363_v62 }
 0x921   :  { %v2416_v46 = vmul.f32 %v2415_v14, %v2411_v39 }
 0x923   :  { %v2421_v8 = vadd.f32 %v2420_v57, %v2416_v46 }
 0x925   :  { %2571 = vmatpush.xpose.msk.msrb.mxu0 %vm812_vm2, %v2421_v8 }
 0x928   :  { %2572 = vmatmul.msk.f32.vlgmr.msrb.gmra.mxu0 %vm812_vm2, %v2425_v1 }
 0x9a5   :  { %v2464_v33 = vpop.f32.mrf.mxu0 }
 0x9a6   :  { %v2465_v5 = vadd.f32 %v2464_v33, %v2430_v7 }
 0x9a8   :  { %2468 = vst.msk [vmem:[#allocation2] sm:$0x1] %vm2467_vm1, %v2465_v5 }
 0x9a9   :  { %2479 = dma.vmem_to_hbm [thread:$0]  %s2475_s9, 16, %s2477_s12, [#allocation3]  }
 0x9aa   :  { %2917 = dma.done.wait [#allocation3], 16  }
 0x9ab   :  { %2918 = vsyncadd [#allocation3], 4294967280 }
 0x9ac   :  { %2484 = vsyncpa [#allocation3], 1 }

</bundles_post_ra>
